<compile_context>
chip_gen: v7x
topology: tpu7x:2x2x1
jax: 0.10.0
libtpu: 0.0.40
codegen_flags: <defaults>
</compile_context>

<pallas_src>
import math
import functools

import jax
import jax.numpy as jnp
from jax import lax
from jax.experimental import pallas as pl
from jax.experimental.pallas import tpu as pltpu


# ---------------------------------------------------------------------------
# Kernel
# ---------------------------------------------------------------------------

def _segmented_softmax(logits, num_heads, seg):
    """Row-wise softmax applied independently within each `seg`-lane head
    segment of the last axis. f32 in, f32 out.  Per-head max/sum are static
    slices (a row-global max across heads would underflow weaker heads)."""
    max_parts = []
    for i in range(num_heads):
        sl = logits[..., i * seg:(i + 1) * seg]
        max_parts.append(jnp.broadcast_to(
            jnp.max(sl, axis=-1, keepdims=True), sl.shape))
    e = jnp.exp(logits - jnp.concatenate(max_parts, axis=-1))   # full-width EUP
    inv_parts = []
    for i in range(num_heads):
        es = e[..., i * seg:(i + 1) * seg]
        inv = pl.reciprocal(jnp.sum(es, axis=-1, keepdims=True), approx=True)
        inv_parts.append(jnp.broadcast_to(inv, es.shape))
    return e * jnp.concatenate(inv_parts, axis=-1)


def _mhpp_kernel(x_ref, wr_ref, wc_ref, wo_ref, mask_ref, out_ref, *,
                 num_heads, num_patches, scale):
    """One grid step == one block of B_blk batch elements.

    x_ref   : (B_blk, S, d_model)   compute dtype (bf16 for f32 user inputs)
    wr_ref  : (d_model, d_model)          fused dim-reduction, (in, out) layout
    wc_ref  : (d_model, H*P)              block-diagonal classifier, (in, out)
    wo_ref  : (d_model, d_model)          fc_out, (in, out) layout
    mask_ref: (H*P, d_model) f32          0/1 block-diagonal head mask
    out_ref : (B_blk, S, d_model)         output dtype == user input dtype
    """
    b_blk, s, d_model = x_ref.shape
    m = b_blk * s
    p = num_patches
    hp = num_heads * p
    cdt = x_ref.dtype                      # MXU operand dtype

    x = x_ref[...].reshape(m, d_model)     # leading-dim merge, no relayout
    wr = wr_ref[...]
    wc = wc_ref[...]
    wo = wo_ref[...]
    mask = mask_ref[...]

    # (1) fused per-head dim reduction: one full-width matmul, f32 accumulate.
    h2 = jnp.dot(x, wr, preferred_element_type=jnp.float32).astype(cdt)   # (m, dm)

    # (2) fused classifier logits for all heads (block-diagonal weight),
    #     then per-head-segment softmax over the P patches.
    logits = jnp.dot(h2, wc, preferred_element_type=jnp.float32)          # (m, H*P)
    y = _segmented_softmax(logits, num_heads, p).astype(cdt)              # (m, H*P)

    # Leading-dim split back to batched form for the per-element contractions.
    h3 = h2.reshape(b_blk, s, d_model)
    y3 = y.reshape(b_blk, s, hp)

    # (3) keys for all heads at once: batched matmul contracting S.
    #     keys3[b, i*P+q, c] = sum_s y3[b,s,i*P+q] * h3[b,s,c]
    keys3 = lax.dot_general(y3, h3, (((1,), (1,)), ((0,), (0,))),
                            preferred_element_type=jnp.float32)           # (b, H*P, dm)
    keys_m = keys3 * mask                  # zero cross-head blocks (f32)
    keys_o = keys_m.astype(cdt)            # used for the output matmul
    keys_s = (keys_m * scale).astype(cdt)  # 1/sqrt(hd) folded into small side

    # (4) similarity logits for all heads: batched matmul contracting d_model.
    sim3 = lax.dot_general(h3, keys_s, (((2,), (2,)), ((0,), (0,))),
                           preferred_element_type=jnp.float32)            # (b, S, H*P)
    attn3 = _segmented_softmax(sim3, num_heads, p).astype(cdt)

    # (5) per-head attention outputs, already laid out as the head concat.
    o3 = lax.dot_general(attn3, keys_o, (((2,), (1,)), ((0,), (0,))),
                         preferred_element_type=jnp.float32)              # (b, S, dm)

    # (6) fc_out: one full-width matmul over all M rows; single store per step.
    out = jnp.dot(o3.reshape(m, d_model).astype(cdt), wo,
                  preferred_element_type=jnp.float32)                     # (m, dm)
    out_ref[...] = out.reshape(b_blk, s, d_model).astype(out_ref.dtype)


# ---------------------------------------------------------------------------
# Host-side helpers
# ---------------------------------------------------------------------------

def pack_weights(w_red, w_cls, w_out, compute_dtype=None):
    """Repack PyTorch-layout weights once (call outside the per-step path).

    w_red: (num_heads, head_dim, d_model)  nn.Linear(d_model, head_dim) weights
    w_cls: (num_heads, P, head_dim)        classifier Linear(head_dim, P) weights
    w_out: (d_model, d_model)              fc_out Linear(d_model, d_model) weight
    """
    num_heads, head_dim, d_model = w_red.shape
    num_patches = w_cls.shape[1]
    if compute_dtype is None:
        compute_dtype = jnp.bfloat16 if w_out.dtype == jnp.float32 else w_out.dtype
    cdt = compute_dtype

    # fused dim reduction in (in, out) layout: column block i == w_red[i].T
    wr_all = jnp.transpose(w_red.reshape(num_heads * head_dim, d_model)).astype(cdt)
    # block-diagonal classifier in (in, out) layout + 0/1 head-block key mask
    wc_bd = jnp.zeros((d_model, num_heads * num_patches), cdt)
    mask = jnp.zeros((num_heads * num_patches, d_model), jnp.float32)
    for i in range(num_heads):
        wc_bd = wc_bd.at[i * head_dim:(i + 1) * head_dim,
                         i * num_patches:(i + 1) * num_patches].set(
                             jnp.transpose(w_cls[i]).astype(cdt))
        mask = mask.at[i * num_patches:(i + 1) * num_patches,
                       i * head_dim:(i + 1) * head_dim].set(1.0)
    # fc_out in (in, out) layout
    wo_t = jnp.transpose(w_out).astype(cdt)
    return dict(wr=wr_all, wc=wc_bd, wo=wo_t, mask=mask,
                num_heads=num_heads, head_dim=head_dim, num_patches=num_patches)


def _num_tensorcores():
    """Best-effort TensorCore count (v7x has 2); defaults to 1."""
    try:
        info = pltpu.get_tpu_info()
        for attr in ("num_cores", "cores_per_chip", "tensorcores_per_chip",
                     "num_tensorcores"):
            v = getattr(info, attr, None)
            if v:
                return int(v)
    except Exception:
        pass
    return 1


def _pick_batch_block(n, s, target_rows):
    """B_blk*S ~ target MXU M fill.  Only require multiple grid steps when the
    chip actually has >=2 TensorCores (then aim for >=4 parallel steps)."""
    b = max(1, min(n, max(1, target_rows // max(s, 1))))
    min_steps = 4 if _num_tensorcores() >= 2 else 1
    while b > 1 and pl.cdiv(n, b) < min_steps:
        b -= 1
    while b > 1 and n % b != 0:
        b -= 1
    return max(b, 1)


def _vmem_limit_bytes(b_blk, s, d_model, hp, cdt_bytes, out_bytes):
    """Derive the VMEM budget from the actual block sizes (+headroom)."""
    m = b_blk * s
    io = 2 * m * d_model * (cdt_bytes + out_bytes)                 # x/out, dbl-buffered
    weights = 2 * ((2 * d_model * d_model + d_model * hp) * cdt_bytes
                   + hp * d_model * 4)                              # wr+wo+wc+mask
    interm = m * (3 * d_model + 3 * hp) * 4 + 2 * b_blk * hp * d_model * 4
    budget = 4 * (io + weights + interm)                            # headroom
    return int(min(max(budget, 16 << 20), 48 << 20))


def multi_head_pp_attention(x, packed, *, batch_block=None, target_rows=None):
    """x: (N, H, W, d_model) NHWC; `packed` from pack_weights().
    Returns (N, H, W, d_model) in x.dtype."""
    n, hh, ww, d_model = x.shape
    s = hh * ww
    num_heads = packed["num_heads"]
    head_dim = packed["head_dim"]
    num_patches = packed["num_patches"]
    hp = num_heads * num_patches
    cdt = packed["wr"].dtype
    out_dtype = x.dtype

    cdt_bytes = jnp.dtype(cdt).itemsize
    out_bytes = jnp.dtype(out_dtype).itemsize
    if target_rows is None:
        # ~2 MiB of double-buffered x/out per step, clamped to [512, 2048] rows.
        per_row = 2 * d_model * (cdt_bytes + out_bytes)
        target_rows = int(max(512, min(2048, (2 << 20) // max(per_row, 1))))

    if batch_block is None:
        b_blk = _pick_batch_block(n, s, target_rows)
        n_pad = n                                  # picker guarantees b_blk | n
    else:
        b_blk = max(1, min(int(batch_block), n))
        n_pad = pl.cdiv(n, b_blk) * b_blk          # pad instead of dropping tail

    x2 = x.reshape(n, s, d_model)
    if n_pad != n:
        x2 = jnp.pad(x2, ((0, n_pad - n), (0, 0), (0, 0)))
    x2 = x2.astype(cdt)                            # bf16 MXU operands for f32 input

    grid = (n_pad // b_blk,)
    vmem_limit = _vmem_limit_bytes(b_blk, s, d_model, hp, cdt_bytes, out_bytes)

    kernel = functools.partial(
        _mhpp_kernel, num_heads=num_heads, num_patches=num_patches,
        scale=1.0 / math.sqrt(float(head_dim)))

    out = pl.pallas_call(
        kernel,
        out_shape=jax.ShapeDtypeStruct((n_pad, s, d_model), out_dtype),
        grid_spec=pltpu.PrefetchScalarGridSpec(
            num_scalar_prefetch=0,
            grid=grid,
            in_specs=[
                pl.BlockSpec((b_blk, s, d_model), lambda i: (i, 0, 0)),
                pl.BlockSpec(packed["wr"].shape, lambda i: (0, 0)),
                pl.BlockSpec(packed["wc"].shape, lambda i: (0, 0)),
                pl.BlockSpec(packed["wo"].shape, lambda i: (0, 0)),
                pl.BlockSpec(packed["mask"].shape, lambda i: (0, 0)),
            ],
            out_specs=pl.BlockSpec((b_blk, s, d_model), lambda i: (i, 0, 0)),
        ),
        compiler_params=pltpu.CompilerParams(
            dimension_semantics=("parallel",),
            vmem_limit_bytes=vmem_limit,
        ),
    )(x2, packed["wr"], packed["wc"], packed["wo"], packed["mask"])

    if n_pad != n:
        out = out[:n]
    return out.reshape(n, hh, ww, d_model)


# ---------------------------------------------------------------------------
# Reference & demo
# ---------------------------------------------------------------------------

def _reference(x, w_red, w_cls, w_out):
    """Plain-JAX f32 reference matching the PyTorch forward semantics."""
    num_heads, head_dim, _ = w_red.shape
    heads = []
    for i in range(num_heads):
        h = jnp.einsum("nhwc,dc->nhwd", x, w_red[i])
        y = jax.nn.softmax(jnp.einsum("nhwd,pd->nhwp", h, w_cls[i]), axis=-1)
        keys = jnp.einsum("nhwc,nhwp->npc", h, y)
        sim = jnp.einsum("npc,nhwc->nhwp", keys, h) / math.sqrt(head_dim)
        sim = jax.nn.softmax(sim, axis=-1)
        heads.append(jnp.einsum("nhwp,npc->nhwc", sim, keys))
    mh = jnp.concatenate(heads, axis=-1)
    return jnp.einsum("nhwc,dc->nhwd", mh, w_out)


if __name__ == "__main__":
    # Small deterministic problem: N=2, H=W=8, d_model=32, 4 heads, 16 patches.
    N, H, W = 2, 8, 8
    d_model, num_heads, num_patches = 32, 4, 16
    head_dim = d_model // num_heads

    key = jax.random.PRNGKey(0)
    kx, kr, kc, ko = jax.random.split(key, 4)

    x = jax.random.normal(kx, (N, H, W, d_model), dtype=jnp.float32)
    # nn.Linear(d_model, head_dim, bias=False) weight: (head_dim, d_model)
    w_red = jax.random.normal(kr, (num_heads, head_dim, d_model), jnp.float32) * 0.1
    # classifier Linear(head_dim, num_patches) weight: (num_patches, head_dim)
    w_cls = jax.random.normal(kc, (num_heads, num_patches, head_dim), jnp.float32) * 0.1
    # fc_out Linear(d_model, d_model) weight: (d_model, d_model)
    w_out = jax.random.normal(ko, (d_model, d_model), jnp.float32) * 0.1

    packed = pack_weights(w_red, w_cls, w_out)          # once, outside hot path
    out = multi_head_pp_attention(x, packed)
    out = jax.block_until_ready(out)

    ref = _reference(x, w_red, w_cls, w_out)
    assert out.shape == (N, H, W, d_model)
    # bf16 MXU operands (f32 accumulation) plus approx=True softmax reciprocals
    # give ~1e-3 absolute deviation on ~0.06-magnitude outputs; 2e-2 tolerance
    # leaves >10x margin.  Use compute_dtype=jnp.float32 / approx=False for
    # bit-closer parity.
    assert jnp.allclose(out, ref, atol=2e-2, rtol=2e-2), "mismatch vs reference"

    print("KERNEL_OK")
</pallas_src>

<mosaic_0001>
module attributes {stable_mosaic.version = 11 : i64} {
  func.func @_mhpp_kernel(%arg0: i32, %arg1: memref<2x64x32xbf16, #tpu.memory_space<vmem>>, %arg2: memref<32x32xbf16, #tpu.memory_space<vmem>>, %arg3: memref<32x64xbf16, #tpu.memory_space<vmem>>, %arg4: memref<32x32xbf16, #tpu.memory_space<vmem>>, %arg5: memref<64x32xf32, #tpu.memory_space<vmem>>, %arg6: memref<2x64x32xf32, #tpu.memory_space<vmem>>) attributes {dimension_semantics = [#tpu.dimension_semantics<parallel>], iteration_bounds = array<i64: 1>, scalar_prefetch = 0 : i64, scratch_operands = 0 : i64, tpu.core_type = #tpu.core_type<tc>, window_params = [{transform_indices = @transform_0, window_bounds = array<i64: 2, 64, 32>}, {pipeline_mode = #tpu.pipeline_mode<synchronous>, transform_indices = @transform_1, window_bounds = array<i64: 32, 32>}, {pipeline_mode = #tpu.pipeline_mode<synchronous>, transform_indices = @transform_2, window_bounds = array<i64: 32, 64>}, {pipeline_mode = #tpu.pipeline_mode<synchronous>, transform_indices = @transform_3, window_bounds = array<i64: 32, 32>}, {pipeline_mode = #tpu.pipeline_mode<synchronous>, transform_indices = @transform_4, window_bounds = array<i64: 64, 32>}, {transform_indices = @transform_5, window_bounds = array<i64: 2, 64, 32>}]} {
    %c0 = arith.constant 0 : index
    %c0_0 = arith.constant 0 : index
    %c0_1 = arith.constant 0 : index
    %0 = vector.load %arg1[%c0, %c0_0, %c0_1] : memref<2x64x32xbf16, #tpu.memory_space<vmem>>, vector<2x64x32xbf16>
    %1 = vector.shape_cast %0 : vector<2x64x32xbf16> to vector<128x32xbf16>
    %c0_2 = arith.constant 0 : index
    %c0_3 = arith.constant 0 : index
    %2 = vector.load %arg2[%c0_2, %c0_3] : memref<32x32xbf16, #tpu.memory_space<vmem>>, vector<32x32xbf16>
    %c0_4 = arith.constant 0 : index
    %c0_5 = arith.constant 0 : index
    %3 = vector.load %arg3[%c0_4, %c0_5] : memref<32x64xbf16, #tpu.memory_space<vmem>>, vector<32x64xbf16>
    %c0_6 = arith.constant 0 : index
    %c0_7 = arith.constant 0 : index
    %4 = vector.load %arg4[%c0_6, %c0_7] : memref<32x32xbf16, #tpu.memory_space<vmem>>, vector<32x32xbf16>
    %c0_8 = arith.constant 0 : index
    %c0_9 = arith.constant 0 : index
    %5 = vector.load %arg5[%c0_8, %c0_9] : memref<64x32xf32, #tpu.memory_space<vmem>>, vector<64x32xf32>
    %cst = arith.constant dense<0.000000e+00> : vector<128x32xf32>
    %6 = tpu.matmul %1, %2, %cst {dimension_numbers = #tpu.dot_dimension_numbers<[1], [0], [0], [1], [0, 0, 1, 1], [], []>} : vector<128x32xbf16>, vector<32x32xbf16>, vector<128x32xf32> -> vector<128x32xf32>
    %7 = arith.truncf %6 : vector<128x32xf32> to vector<128x32xbf16>
    %cst_10 = arith.constant dense<0.000000e+00> : vector<128x64xf32>
    %8 = tpu.matmul %7, %3, %cst_10 {dimension_numbers = #tpu.dot_dimension_numbers<[1], [0], [0], [1], [0, 0, 1, 1], [], []>} : vector<128x32xbf16>, vector<32x64xbf16>, vector<128x64xf32> -> vector<128x64xf32>
    %9 = vector.extract_strided_slice %8 {offsets = [0, 0], sizes = [128, 16], strides = [1, 1]} : vector<128x64xf32> to vector<128x16xf32>
    %cst_11 = arith.constant dense<0xFF800000> : vector<128xf32>
    %10 = vector.multi_reduction <maximumf>, %9, %cst_11 [1] : vector<128x16xf32> to vector<128xf32>
    %11 = vector.shape_cast %10 : vector<128xf32> to vector<128x1xf32>
    %12 = vector.shape_cast %11 : vector<128x1xf32> to vector<128x1xf32>
    %13 = vector.broadcast %12 : vector<128x1xf32> to vector<128x16xf32>
    %14 = vector.extract_strided_slice %8 {offsets = [0, 16], sizes = [128, 16], strides = [1, 1]} : vector<128x64xf32> to vector<128x16xf32>
    %cst_12 = arith.constant dense<0xFF800000> : vector<128xf32>
    %15 = vector.multi_reduction <maximumf>, %14, %cst_12 [1] : vector<128x16xf32> to vector<128xf32>
    %16 = vector.shape_cast %15 : vector<128xf32> to vector<128x1xf32>
    %17 = vector.shape_cast %16 : vector<128x1xf32> to vector<128x1xf32>
    %18 = vector.broadcast %17 : vector<128x1xf32> to vector<128x16xf32>
    %19 = vector.extract_strided_slice %8 {offsets = [0, 32], sizes = [128, 16], strides = [1, 1]} : vector<128x64xf32> to vector<128x16xf32>
    %cst_13 = arith.constant dense<0xFF800000> : vector<128xf32>
    %20 = vector.multi_reduction <maximumf>, %19, %cst_13 [1] : vector<128x16xf32> to vector<128xf32>
    %21 = vector.shape_cast %20 : vector<128xf32> to vector<128x1xf32>
    %22 = vector.shape_cast %21 : vector<128x1xf32> to vector<128x1xf32>
    %23 = vector.broadcast %22 : vector<128x1xf32> to vector<128x16xf32>
    %24 = vector.extract_strided_slice %8 {offsets = [0, 48], sizes = [128, 16], strides = [1, 1]} : vector<128x64xf32> to vector<128x16xf32>
    %cst_14 = arith.constant dense<0xFF800000> : vector<128xf32>
    %25 = vector.multi_reduction <maximumf>, %24, %cst_14 [1] : vector<128x16xf32> to vector<128xf32>
    %26 = vector.shape_cast %25 : vector<128xf32> to vector<128x1xf32>
    %27 = vector.shape_cast %26 : vector<128x1xf32> to vector<128x1xf32>
    %28 = vector.broadcast %27 : vector<128x1xf32> to vector<128x16xf32>
    %29 = tpu.concatenate %13, %18, %23, %28 in 1 : vector<128x16xf32>, vector<128x16xf32>, vector<128x16xf32>, vector<128x16xf32> -> vector<128x64xf32>
    %30 = arith.subf %8, %29 : vector<128x64xf32>
    %31 = math.exp %30 : vector<128x64xf32>
    %32 = vector.extract_strided_slice %31 {offsets = [0, 0], sizes = [128, 16], strides = [1, 1]} : vector<128x64xf32> to vector<128x16xf32>
    %cst_15 = arith.constant dense<0.000000e+00> : vector<128xf32>
    %33 = vector.multi_reduction <add>, %32, %cst_15 [1] : vector<128x16xf32> to vector<128xf32>
    %34 = vector.shape_cast %33 : vector<128xf32> to vector<128x1xf32>
    %35 = tpu.reciprocal %34 {approx = true} : vector<128x1xf32> -> vector<128x1xf32>
    %36 = vector.shape_cast %35 : vector<128x1xf32> to vector<128x1xf32>
    %37 = vector.broadcast %36 : vector<128x1xf32> to vector<128x16xf32>
    %38 = vector.extract_strided_slice %31 {offsets = [0, 16], sizes = [128, 16], strides = [1, 1]} : vector<128x64xf32> to vector<128x16xf32>
    %cst_16 = arith.constant dense<0.000000e+00> : vector<128xf32>
    %39 = vector.multi_reduction <add>, %38, %cst_16 [1] : vector<128x16xf32> to vector<128xf32>
    %40 = vector.shape_cast %39 : vector<128xf32> to vector<128x1xf32>
    %41 = tpu.reciprocal %40 {approx = true} : vector<128x1xf32> -> vector<128x1xf32>
    %42 = vector.shape_cast %41 : vector<128x1xf32> to vector<128x1xf32>
    %43 = vector.broadcast %42 : vector<128x1xf32> to vector<128x16xf32>
    %44 = vector.extract_strided_slice %31 {offsets = [0, 32], sizes = [128, 16], strides = [1, 1]} : vector<128x64xf32> to vector<128x16xf32>
    %cst_17 = arith.constant dense<0.000000e+00> : vector<128xf32>
    %45 = vector.multi_reduction <add>, %44, %cst_17 [1] : vector<128x16xf32> to vector<128xf32>
    %46 = vector.shape_cast %45 : vector<128xf32> to vector<128x1xf32>
    %47 = tpu.reciprocal %46 {approx = true} : vector<128x1xf32> -> vector<128x1xf32>
    %48 = vector.shape_cast %47 : vector<128x1xf32> to vector<128x1xf32>
    %49 = vector.broadcast %48 : vector<128x1xf32> to vector<128x16xf32>
    %50 = vector.extract_strided_slice %31 {offsets = [0, 48], sizes = [128, 16], strides = [1, 1]} : vector<128x64xf32> to vector<128x16xf32>
    %cst_18 = arith.constant dense<0.000000e+00> : vector<128xf32>
    %51 = vector.multi_reduction <add>, %50, %cst_18 [1] : vector<128x16xf32> to vector<128xf32>
    %52 = vector.shape_cast %51 : vector<128xf32> to vector<128x1xf32>
    %53 = tpu.reciprocal %52 {approx = true} : vector<128x1xf32> -> vector<128x1xf32>
    %54 = vector.shape_cast %53 : vector<128x1xf32> to vector<128x1xf32>
    %55 = vector.broadcast %54 : vector<128x1xf32> to vector<128x16xf32>
    %56 = tpu.concatenate %37, %43, %49, %55 in 1 : vector<128x16xf32>, vector<128x16xf32>, vector<128x16xf32>, vector<128x16xf32> -> vector<128x64xf32>
    %57 = arith.mulf %31, %56 : vector<128x64xf32>
    %58 = arith.truncf %57 : vector<128x64xf32> to vector<128x64xbf16>
    %59 = vector.shape_cast %7 : vector<128x32xbf16> to vector<2x64x32xbf16>
    %60 = vector.shape_cast %58 : vector<128x64xbf16> to vector<2x64x64xbf16>
    %cst_19 = arith.constant dense<0.000000e+00> : vector<2x64x32xf32>
    %61 = tpu.matmul %60, %59, %cst_19 {dimension_numbers = #tpu.dot_dimension_numbers<[1], [1], [2], [2], [0, 0, 0, 2, 1, 2], [0], [0]>} : vector<2x64x64xbf16>, vector<2x64x32xbf16>, vector<2x64x32xf32> -> vector<2x64x32xf32>
    %62 = vector.shape_cast %5 : vector<64x32xf32> to vector<1x64x32xf32>
    %63 = vector.broadcast %62 : vector<1x64x32xf32> to vector<2x64x32xf32>
    %64 = arith.mulf %61, %63 : vector<2x64x32xf32>
    %65 = arith.truncf %64 : vector<2x64x32xf32> to vector<2x64x32xbf16>
    %cst_20 = arith.constant 0.353553385 : f32
    %66 = vector.broadcast %cst_20 : f32 to vector<2x64x32xf32>
    %67 = arith.mulf %64, %66 : vector<2x64x32xf32>
    %68 = arith.truncf %67 : vector<2x64x32xf32> to vector<2x64x32xbf16>
    %cst_21 = arith.constant dense<0.000000e+00> : vector<2x64x64xf32>
    %69 = tpu.matmul %59, %68, %cst_21 {dimension_numbers = #tpu.dot_dimension_numbers<[2], [2], [1], [1], [0, 0, 0, 1, 1, 1], [0], [0]>} : vector<2x64x32xbf16>, vector<2x64x32xbf16>, vector<2x64x64xf32> -> vector<2x64x64xf32>
    %70 = vector.extract_strided_slice %69 {offsets = [0, 0, 0], sizes = [2, 64, 16], strides = [1, 1, 1]} : vector<2x64x64xf32> to vector<2x64x16xf32>
    %cst_22 = arith.constant dense<0xFF800000> : vector<2x64xf32>
    %71 = vector.multi_reduction <maximumf>, %70, %cst_22 [2] : vector<2x64x16xf32> to vector<2x64xf32>
    %72 = vector.shape_cast %71 : vector<2x64xf32> to vector<2x64x1xf32>
    %73 = vector.shape_cast %72 : vector<2x64x1xf32> to vector<2x64x1xf32>
    %74 = vector.broadcast %73 : vector<2x64x1xf32> to vector<2x64x16xf32>
    %75 = vector.extract_strided_slice %69 {offsets = [0, 0, 16], sizes = [2, 64, 16], strides = [1, 1, 1]} : vector<2x64x64xf32> to vector<2x64x16xf32>
    %cst_23 = arith.constant dense<0xFF800000> : vector<2x64xf32>
    %76 = vector.multi_reduction <maximumf>, %75, %cst_23 [2] : vector<2x64x16xf32> to vector<2x64xf32>
    %77 = vector.shape_cast %76 : vector<2x64xf32> to vector<2x64x1xf32>
    %78 = vector.shape_cast %77 : vector<2x64x1xf32> to vector<2x64x1xf32>
    %79 = vector.broadcast %78 : vector<2x64x1xf32> to vector<2x64x16xf32>
    %80 = vector.extract_strided_slice %69 {offsets = [0, 0, 32], sizes = [2, 64, 16], strides = [1, 1, 1]} : vector<2x64x64xf32> to vector<2x64x16xf32>
    %cst_24 = arith.constant dense<0xFF800000> : vector<2x64xf32>
    %81 = vector.multi_reduction <maximumf>, %80, %cst_24 [2] : vector<2x64x16xf32> to vector<2x64xf32>
    %82 = vector.shape_cast %81 : vector<2x64xf32> to vector<2x64x1xf32>
    %83 = vector.shape_cast %82 : vector<2x64x1xf32> to vector<2x64x1xf32>
    %84 = vector.broadcast %83 : vector<2x64x1xf32> to vector<2x64x16xf32>
    %85 = vector.extract_strided_slice %69 {offsets = [0, 0, 48], sizes = [2, 64, 16], strides = [1, 1, 1]} : vector<2x64x64xf32> to vector<2x64x16xf32>
    %cst_25 = arith.constant dense<0xFF800000> : vector<2x64xf32>
    %86 = vector.multi_reduction <maximumf>, %85, %cst_25 [2] : vector<2x64x16xf32> to vector<2x64xf32>
    %87 = vector.shape_cast %86 : vector<2x64xf32> to vector<2x64x1xf32>
    %88 = vector.shape_cast %87 : vector<2x64x1xf32> to vector<2x64x1xf32>
    %89 = vector.broadcast %88 : vector<2x64x1xf32> to vector<2x64x16xf32>
    %90 = tpu.concatenate %74, %79, %84, %89 in 2 : vector<2x64x16xf32>, vector<2x64x16xf32>, vector<2x64x16xf32>, vector<2x64x16xf32> -> vector<2x64x64xf32>
    %91 = arith.subf %69, %90 : vector<2x64x64xf32>
    %92 = math.exp %91 : vector<2x64x64xf32>
    %93 = vector.extract_strided_slice %92 {offsets = [0, 0, 0], sizes = [2, 64, 16], strides = [1, 1, 1]} : vector<2x64x64xf32> to vector<2x64x16xf32>
    %cst_26 = arith.constant dense<0.000000e+00> : vector<2x64xf32>
    %94 = vector.multi_reduction <add>, %93, %cst_26 [2] : vector<2x64x16xf32> to vector<2x64xf32>
    %95 = vector.shape_cast %94 : vector<2x64xf32> to vector<2x64x1xf32>
    %96 = tpu.reciprocal %95 {approx = true} : vector<2x64x1xf32> -> vector<2x64x1xf32>
    %97 = vector.shape_cast %96 : vector<2x64x1xf32> to vector<2x64x1xf32>
    %98 = vector.broadcast %97 : vector<2x64x1xf32> to vector<2x64x16xf32>
    %99 = vector.extract_strided_slice %92 {offsets = [0, 0, 16], sizes = [2, 64, 16], strides = [1, 1, 1]} : vector<2x64x64xf32> to vector<2x64x16xf32>
    %cst_27 = arith.constant dense<0.000000e+00> : vector<2x64xf32>
    %100 = vector.multi_reduction <add>, %99, %cst_27 [2] : vector<2x64x16xf32> to vector<2x64xf32>
    %101 = vector.shape_cast %100 : vector<2x64xf32> to vector<2x64x1xf32>
    %102 = tpu.reciprocal %101 {approx = true} : vector<2x64x1xf32> -> vector<2x64x1xf32>
    %103 = vector.shape_cast %102 : vector<2x64x1xf32> to vector<2x64x1xf32>
    %104 = vector.broadcast %103 : vector<2x64x1xf32> to vector<2x64x16xf32>
    %105 = vector.extract_strided_slice %92 {offsets = [0, 0, 32], sizes = [2, 64, 16], strides = [1, 1, 1]} : vector<2x64x64xf32> to vector<2x64x16xf32>
    %cst_28 = arith.constant dense<0.000000e+00> : vector<2x64xf32>
    %106 = vector.multi_reduction <add>, %105, %cst_28 [2] : vector<2x64x16xf32> to vector<2x64xf32>
    %107 = vector.shape_cast %106 : vector<2x64xf32> to vector<2x64x1xf32>
    %108 = tpu.reciprocal %107 {approx = true} : vector<2x64x1xf32> -> vector<2x64x1xf32>
    %109 = vector.shape_cast %108 : vector<2x64x1xf32> to vector<2x64x1xf32>
    %110 = vector.broadcast %109 : vector<2x64x1xf32> to vector<2x64x16xf32>
    %111 = vector.extract_strided_slice %92 {offsets = [0, 0, 48], sizes = [2, 64, 16], strides = [1, 1, 1]} : vector<2x64x64xf32> to vector<2x64x16xf32>
    %cst_29 = arith.constant dense<0.000000e+00> : vector<2x64xf32>
    %112 = vector.multi_reduction <add>, %111, %cst_29 [2] : vector<2x64x16xf32> to vector<2x64xf32>
    %113 = vector.shape_cast %112 : vector<2x64xf32> to vector<2x64x1xf32>
    %114 = tpu.reciprocal %113 {approx = true} : vector<2x64x1xf32> -> vector<2x64x1xf32>
    %115 = vector.shape_cast %114 : vector<2x64x1xf32> to vector<2x64x1xf32>
    %116 = vector.broadcast %115 : vector<2x64x1xf32> to vector<2x64x16xf32>
    %117 = tpu.concatenate %98, %104, %110, %116 in 2 : vector<2x64x16xf32>, vector<2x64x16xf32>, vector<2x64x16xf32>, vector<2x64x16xf32> -> vector<2x64x64xf32>
    %118 = arith.mulf %92, %117 : vector<2x64x64xf32>
    %119 = arith.truncf %118 : vector<2x64x64xf32> to vector<2x64x64xbf16>
    %cst_30 = arith.constant dense<0.000000e+00> : vector<2x64x32xf32>
    %120 = tpu.matmul %119, %65, %cst_30 {dimension_numbers = #tpu.dot_dimension_numbers<[2], [1], [1], [2], [0, 0, 0, 1, 1, 2], [0], [0]>} : vector<2x64x64xbf16>, vector<2x64x32xbf16>, vector<2x64x32xf32> -> vector<2x64x32xf32>
    %121 = vector.shape_cast %120 : vector<2x64x32xf32> to vector<128x32xf32>
    %122 = arith.truncf %121 : vector<128x32xf32> to vector<128x32xbf16>
    %cst_31 = arith.constant dense<0.000000e+00> : vector<128x32xf32>
    %123 = tpu.matmul %122, %4, %cst_31 {dimension_numbers = #tpu.dot_dimension_numbers<[1], [0], [0], [1], [0, 0, 1, 1], [], []>} : vector<128x32xbf16>, vector<32x32xbf16>, vector<128x32xf32> -> vector<128x32xf32>
    %124 = vector.shape_cast %123 : vector<128x32xf32> to vector<2x64x32xf32>
    %c0_32 = arith.constant 0 : index
    %c0_33 = arith.constant 0 : index
    %c0_34 = arith.constant 0 : index
    %125 = vector.load %arg6[%c0_32, %c0_33, %c0_34] : memref<2x64x32xf32, #tpu.memory_space<vmem>>, vector<2x64x32xf32>
    tpu.vector_store %arg6[%c0_32, %c0_33, %c0_34], %124 {strides = array<i32>} : memref<2x64x32xf32, #tpu.memory_space<vmem>>, vector<2x64x32xf32>,
    return
  }
  func.func @transform_0(%arg0: i32) -> (i32, i32, i32) {
    %c0_i32 = arith.constant 0 : i32
    %c0_i32_0 = arith.constant 0 : i32
    %c0_i32_1 = arith.constant 0 : i32
    return %arg0, %c0_i32, %c0_i32_0 : i32, i32, i32
  }
  func.func @transform_1(%arg0: i32) -> (i32, i32) {
    %c0_i32 = arith.constant 0 : i32
    %c0_i32_0 = arith.constant 0 : i32
    %c0_i32_1 = arith.constant 0 : i32
    return %c0_i32, %c0_i32_0 : i32, i32
  }
  func.func @transform_2(%arg0: i32) -> (i32, i32) {
    %c0_i32 = arith.constant 0 : i32
    %c0_i32_0 = arith.constant 0 : i32
    %c0_i32_1 = arith.constant 0 : i32
    return %c0_i32, %c0_i32_0 : i32, i32
  }
  func.func @transform_3(%arg0: i32) -> (i32, i32) {
    %c0_i32 = arith.constant 0 : i32
    %c0_i32_0 = arith.constant 0 : i32
    %c0_i32_1 = arith.constant 0 : i32
    return %c0_i32, %c0_i32_0 : i32, i32
  }
  func.func @transform_4(%arg0: i32) -> (i32, i32) {
    %c0_i32 = arith.constant 0 : i32
    %c0_i32_0 = arith.constant 0 : i32
    %c0_i32_1 = arith.constant 0 : i32
    return %c0_i32, %c0_i32_0 : i32, i32
  }
  func.func @transform_5(%arg0: i32) -> (i32, i32, i32) {
    %c0_i32 = arith.constant 0 : i32
    %c0_i32_0 = arith.constant 0 : i32
    %c0_i32_1 = arith.constant 0 : i32
    return %arg0, %c0_i32, %c0_i32_0 : i32, i32, i32
  }
}

</mosaic_0001>

<bundles_post_ra>
// kernel: tpu_custom_call.1
= control target key start
LH: loop header
LB: loop body
LE: loop exit
PB: predicated region body
PF: predicated region fallthrough
CT: control target
= control target key end

     0   :  { %vm109_vm0 = vcmask 261120   ;;  %vm372_vm1 = vcmask 130048   ;;  %vm421_vm2 = vcmask 261248   ;;  %vm470_vm3 = vcmask 392448   ;;  %s3281_s16 = smov 80   ;;  %s4673_s1 = inlined_call_operand.vmem [shape: bf16[32,32], index: 1, kind: input, shape index: {}]   ;;  %s4674_s0 = inlined_call_operand.vmem [shape: bf16[2,64,32], index: 0, kind: input, shape index: {}]   ;;  %s4675_s2 = inlined_call_operand.vmem [shape: bf16[32,64], index: 2, kind: input, shape index: {}]   ;;  %s4676_s4 = inlined_call_operand.vmem [shape: f32[64,32], index: 4, kind: input, shape index: {}]   ;;  %s4677_s3 = inlined_call_operand.vmem [shape: bf16[32,32], index: 3, kind: input, shape index: {}]   ;;  %s4678_s5 = inlined_call_operand.vmem [shape: f32[2,64,32], index: 5, kind: output, shape index: {}]  }
   0x1   :  { %v2945_v0 = vld [vmem:[%s4673_s1] sm:$0xff]   ;;  %v2946_v1 = vld [vmem:[%s4673_s1 + $0x8] sm:$0xff]   ;;  %v2949_v4 = vld [vmem:[%s4674_s0 + $0x10] sm:$0xff]   ;;  %vm519_vm4 = vcmask 523648   ;;  %vm600_vm5 = vcmask 392192   ;;  %vm1169_vm6 = vcmask 523264  }
   0x2   :  { %2773 = vmatprep.subr.bf16.mxu0 %v2945_v0  ;;  %v2947_v2 = vld [vmem:[%s4674_s0] sm:$0xff]   ;;  %2929 = vmatprep.subr.bf16.mxu1 %v2945_v0  ;;  %v2948_v3 = vld [vmem:[%s4674_s0 + $0x8] sm:$0xff]   ;;  %v2953_v7 = vld [vmem:[%s4674_s0 + $0x30] sm:$0xff]  }
   0x3   :  { %2774 = vmatpush3.bf16.msra.mxu0 %v2945_v0  ;;  %2931 = vmatpush3.bf16.msra.mxu1 %v2945_v0  ;;  %v2951_v5 = vld [vmem:[%s4674_s0 + $0x20] sm:$0xff]   ;;  %v2952_v6 = vld [vmem:[%s4674_s0 + $0x28] sm:$0xff]   ;;  %v2950_v10 = vld [vmem:[%s4674_s0 + $0x18] sm:$0xff]  }
   0x4   :  { %2775 = vmatprep.subr.bf16.mxu0 %v2946_v1  ;;  %2777 = vmatprep.mubr.msk.bf16.mxu0 %vm109_vm0, %v2947_v2  ;;  %v2955_v8 = vld [vmem:[%s4675_s2] sm:$0xff]   ;;  %v2956_v9 = vld [vmem:[%s4675_s2 + $0x8] sm:$0xff]   ;;  %v2954_v11 = vld [vmem:[%s4674_s0 + $0x38] sm:$0xff]   ;;  %s3279_s0 = smov 112   ;;  %s3280_s2 = smov 96  }
   0x5   :  { %2930 = vmatprep.subr.bf16.mxu1 %v2946_v1  ;;  %2785 = vmatprep.mubr.msk.bf16.mxu1 %vm109_vm0, %v2951_v5 }
   0x7   :  { %2776 = vmatpush3.bf16.msra.mxu0 %v2946_v1  ;;  %2932 = vmatpush3.bf16.msra.mxu1 %v2946_v1 }
   0x8   :  { %2793 = vmatprep.subr.bf16.mxu1 %v2955_v8 }
   0xa   :  { %2778 = vmatmul.mubr.msk.bf16.vlgmr.msra.gmra.mrb[0].mxu0 %vm109_vm0, %v2948_v3  ;;  %2786 = vmatmul.mubr.msk.bf16.vlgmr.msra.gmra.mrb[0].mxu1 %vm109_vm0, %v2952_v6 }
   0xb   :  { %2781 = vmatprep.mubr.msk.bf16.mxu0 %vm109_vm0, %v2949_v4  ;;  %2789 = vmatprep.mubr.msk.bf16.mxu1 %vm109_vm0, %v2953_v7 }
   0xc   :  { %2794 = vmatpush3.bf16.msra.mxu1 %v2955_v8 }
   0xd   :  { %2795 = vmatprep.subr.bf16.mxu1 %v2956_v9 }
  0x10   :  { %2796 = vmatpush3.bf16.msra.mxu1 %v2956_v9 }
  0x12   :  { %2782 = vmatmul.mubr.msk.bf16.gmra.mrb[4].mxu0 %vm109_vm0, %v2950_v10  ;;  %2790 = vmatmul.mubr.msk.bf16.gmra.mrb[4].mxu1 %vm109_vm0, %v2954_v11 }
  0xdd   :  { %v2779_v12 = vpop.f32.mrb[0].mxu0  ;;  %v2787_v13 = vpop.f32.mrb[0].mxu1 }
  0xde   :  { %v168_v14 = vpop.f32.mrb[1].mxu0  ;;  %v200_v15 = vpop.f32.mrb[1].mxu1 }
  0xdf   :  { %v2780_v16 = vpop.f32.mrb[2].mxu0  ;;  %v2788_v17 = vpop.f32.mrb[2].mxu1 }
  0xe0   :  { %v3356_v18 = vpack.c.bf16 %v2780_v16, %v2779_v12  ;;  %v171_v19 = vpop.f32.mrb[3].mxu0  ;;  %v3358_v20 = vpack.c.bf16 %v2788_v17, %v2787_v13  ;;  %v203_v21 = vpop.f32.mrb[3].mxu1 }
  0xe1   :  { %v3360_v22 = vpack.c.bf16 %v171_v19, %v168_v14  ;;  %v3362_v23 = vpack.c.bf16 %v203_v21, %v200_v15 }
  0xe2   :  { %4682 = vst [vmem:[#allocation2_spill] sm:$0xff] %v3358_v20 }
  0xe3   :  { %2797 = vmatprep.mubr.msk.bf16.mxu1 %vm109_vm0, %v3360_v22  ;;  %2813 = vmatprep.subr.bf16.mxu0 %v3360_v22 }
  0xe4   :  { %2798 = vmatmul.mubr.msk.bf16.vlgmr.msra.gmra.mrb[8].mxu1 %vm109_vm0, %v3356_v18  ;;  %2814 = vmatpush3.bf16.msra.mxu0 %v3360_v22 }
  0xe5   :  { %2815 = vmatprep.subr.bf16.mxu0 %v3356_v18  ;;  %v2783_v24 = vpop.f32.mrb[4].mxu0  ;;  %v2791_v25 = vpop.f32.mrb[4].mxu1  ;;  %2829 = vmatprep.subr.bf16.mxu1 %v3362_v23 }
  0xe6   :  { %v184_v26 = vpop.f32.mrb[5].mxu0  ;;  %v216_v27 = vpop.f32.mrb[5].mxu1  ;;  %2830 = vmatpush3.bf16.msra.mxu1 %v3362_v23 }
  0xe7   :  { %v2784_v28 = vpop.f32.mrb[6].mxu0  ;;  %v2792_v29 = vpop.f32.mrb[6].mxu1  ;;  %2831 = vmatprep.subr.bf16.mxu1 %v3358_v20 }
  0xe8   :  { %2816 = vmatpush3.bf16.msra.mxu0 %v3356_v18  ;;  %v3375_v30 = vpack.c.bf16 %v2784_v28, %v2783_v24  ;;  %v187_v31 = vpop.f32.mrb[7].mxu0  ;;  %v3377_v32 = vpack.c.bf16 %v2792_v29, %v2791_v25  ;;  %v219_v33 = vpop.f32.mrb[7].mxu1 }
  0xe9   :  { %v3379_v34 = vpack.c.bf16 %v187_v31, %v184_v26  ;;  %v3381_v35 = vpack.c.bf16 %v219_v33, %v216_v27 }
  0xea   :  { %4683 = vst [vmem:[#allocation3_spill] sm:$0xff] %v3377_v32  ;;  %2832 = vmatpush3.bf16.msra.mxu1 %v3358_v20 }
  0xeb   :  { %4684 = vst [vmem:[#allocation4_spill] sm:$0xff] %v3381_v35  ;;  %2801 = vmatprep.mubr.msk.bf16.mxu1 %vm109_vm0, %v3379_v34  ;;  %2817 = vmatprep.subr.bf16.mxu0 %v3379_v34 }
  0xec   :  { %2802 = vmatmul.mubr.msk.bf16.gmra.mrb[12].mxu1 %vm109_vm0, %v3375_v30  ;;  %2818 = vmatpush3.bf16.msra.mxu0 %v3379_v34 }
  0xed   :  { %2805 = vmatprep.mubr.msk.bf16.mxu1 %vm109_vm0, %v3362_v23  ;;  %2819 = vmatprep.subr.bf16.mxu0 %v3375_v30 }
  0xee   :  { %2833 = vmatprep.subr.bf16.mxu1 %v3381_v35 }
  0xef   :  { %2834 = vmatpush3.bf16.msra.mxu1 %v3381_v35 }
  0xf0   :  { %2820 = vmatpush3.bf16.msra.mxu0 %v3375_v30  ;;  %2835 = vmatprep.subr.bf16.mxu1 %v3377_v32 }
  0xf3   :  { %2836 = vmatpush3.bf16.msra.mxu1 %v3377_v32 }
  0xf4   :  { %2806 = vmatmul.mubr.msk.bf16.gmra.mrb[16].mxu1 %vm109_vm0, %v3358_v20 }
  0xf5   :  { %2809 = vmatprep.mubr.msk.bf16.mxu1 %vm109_vm0, %v3381_v35 }
  0xfc   :  { %2810 = vmatmul.mubr.msk.bf16.gmra.mrb[20].mxu1 %vm109_vm0, %v3377_v32 }
 0x1b7   :  { %v3404_v36 = vpop.f32.mrb[8].mxu1 }
 0x1b8   :  { %v3406_v37 = vpop.f32.mrb[9].mxu1  ;;  %v379_v38 = vsel %vm372_vm1, %v3404_v36, -inf  ;;  %v428_v42 = vsel %vm421_vm2, %v3404_v36, -inf  ;;  %v477_v45 = vsel %vm470_vm3, %v3404_v36, -inf  ;;  %v526_v50 = vsel %vm519_vm4, %v3404_v36, -inf }
 0x1b9   :  { %380 = vmax.xlane.f32.xlu0 %v379_v38  ;;  %v3410_v39 = vpop.f32.mrb[10].mxu1  ;;  %v422_v40 = vsel %vm421_vm2, %v3406_v37, -inf  ;;  %v373_v53 = vsel %vm372_vm1, %v3406_v37, -inf  ;;  %v471_v58 = vsel %vm470_vm3, %v3406_v37, -inf  ;;  %v520_v61 = vsel %vm519_vm4, %v3406_v37, -inf }
 0x1ba   :  { %423 = vmax.xlane.f32.xlu1 %v422_v40  ;;  %v3414_v41 = vpop.f32.mrb[11].mxu1  ;;  %v382_v43 = vsel %vm372_vm1, %v3410_v39, -inf  ;;  %v431_v47 = vsel %vm421_vm2, %v3410_v39, -inf  ;;  %v480_v51 = vsel %vm470_vm3, %v3410_v39, -inf  ;;  %v529_v55 = vsel %vm519_vm4, %v3410_v39, -inf }
 0x1bb   :  { %v425_v59 = vsel %vm421_vm2, %v3414_v41, -inf  ;;  %v474_v63 = vsel %vm470_vm3, %v3414_v41, -inf  ;;  %v376_v2 = vsel %vm372_vm1, %v3414_v41, -inf  ;;  %v523_v3 = vsel %vm519_vm4, %v3414_v41, -inf }
 0x1bd   :  { %429 = vmax.xlane.f32.xlu0 %v428_v42 }
 0x1be   :  { %383 = vmax.xlane.f32.xlu1 %v382_v43 }
 0x1bf   :  { %v3420_v44 = vpop.f32.mrb[12].mxu1 }
 0x1c0   :  { %v3424_v46 = vpop.f32.mrb[13].mxu1  ;;  %v391_v4 = vsel %vm372_vm1, %v3420_v44, -inf  ;;  %v440_v6 = vsel %vm421_vm2, %v3420_v44, -inf  ;;  %v489_v8 = vsel %vm470_vm3, %v3420_v44, -inf  ;;  %v538_v10 = vsel %vm519_vm4, %v3420_v44, -inf }
 0x1c1   :  { %478 = vmax.xlane.f32.xlu0 %v477_v45  ;;  %v3428_v48 = vpop.f32.mrb[14].mxu1  ;;  %v385_v12 = vsel %vm372_vm1, %v3424_v46, -inf  ;;  %v434_v14 = vsel %vm421_vm2, %v3424_v46, -inf  ;;  %v483_v16 = vsel %vm470_vm3, %v3424_v46, -inf  ;;  %v532_v19 = vsel %vm519_vm4, %v3424_v46, -inf }
 0x1c2   :  { %432 = vmax.xlane.f32.xlu1 %v431_v47  ;;  %v3430_v49 = vpop.f32.mrb[15].mxu1  ;;  %v394_v5 = vsel %vm372_vm1, %v3428_v48, -inf  ;;  %v443_v7 = vsel %vm421_vm2, %v3428_v48, -inf  ;;  %v492_v9 = vsel %vm470_vm3, %v3428_v48, -inf  ;;  %v541_v11 = vsel %vm519_vm4, %v3428_v48, -inf }
 0x1c3   :  { %v388_v13 = vsel %vm372_vm1, %v3430_v49, -inf  ;;  %v437_v15 = vsel %vm421_vm2, %v3430_v49, -inf  ;;  %v486_v17 = vsel %vm470_vm3, %v3430_v49, -inf  ;;  %v535_v21 = vsel %vm519_vm4, %v3430_v49, -inf }
 0x1c5   :  { %527 = vmax.xlane.f32.xlu0 %v526_v50 }
 0x1c6   :  { %481 = vmax.xlane.f32.xlu1 %v480_v51 }
 0x1c7   :  { %v3436_v52 = vpop.f32.mrb[16].mxu1 }
 0x1c8   :  { %v3440_v54 = vpop.f32.mrb[17].mxu1  ;;  %v403_v24 = vsel %vm372_vm1, %v3436_v52, -inf  ;;  %v452_v26 = vsel %vm421_vm2, %v3436_v52, -inf  ;;  %v501_v28 = vsel %vm470_vm3, %v3436_v52, -inf  ;;  %v550_v31 = vsel %vm519_vm4, %v3436_v52, -inf }
 0x1c9   :  { %374 = vmax.xlane.f32.xlu0 %v373_v53  ;;  %v3444_v56 = vpop.f32.mrb[18].mxu1  ;;  %v397_v38 = vsel %vm372_vm1, %v3440_v54, -inf  ;;  %v446_v42 = vsel %vm421_vm2, %v3440_v54, -inf  ;;  %v495_v45 = vsel %vm470_vm3, %v3440_v54, -inf  ;;  %v544_v50 = vsel %vm519_vm4, %v3440_v54, -inf }
 0x1ca   :  { %530 = vmax.xlane.f32.xlu1 %v529_v55  ;;  %v3446_v57 = vpop.f32.mrb[19].mxu1  ;;  %v406_v25 = vsel %vm372_vm1, %v3444_v56, -inf  ;;  %v455_v27 = vsel %vm421_vm2, %v3444_v56, -inf  ;;  %v504_v29 = vsel %vm470_vm3, %v3444_v56, -inf  ;;  %v553_v33 = vsel %vm519_vm4, %v3444_v56, -inf }
 0x1cb   :  { %v400_v40 = vsel %vm372_vm1, %v3446_v57, -inf  ;;  %v449_v43 = vsel %vm421_vm2, %v3446_v57, -inf  ;;  %v498_v47 = vsel %vm470_vm3, %v3446_v57, -inf  ;;  %v547_v51 = vsel %vm519_vm4, %v3446_v57, -inf }
 0x1cd   :  { %472 = vmax.xlane.f32.xlu0 %v471_v58 }
 0x1ce   :  { %426 = vmax.xlane.f32.xlu1 %v425_v59 }
 0x1cf   :  { %v3452_v60 = vpop.f32.mrb[20].mxu1 }
 0x1d0   :  { %v3456_v62 = vpop.f32.mrb[21].mxu1  ;;  %v415_v53 = vsel %vm372_vm1, %v3452_v60, -inf  ;;  %v464_v58 = vsel %vm421_vm2, %v3452_v60, -inf }
 0x1d1   :  { %521 = vmax.xlane.f32.xlu0 %v520_v61  ;;  %v3460_v0 = vpop.f32.mrb[22].mxu1  ;;  %v513_v61 = vsel %vm470_vm3, %v3452_v60, -inf }
 0x1d2   :  { %475 = vmax.xlane.f32.xlu1 %v474_v63  ;;  %v3462_v1 = vpop.f32.mrb[23].mxu1  ;;  %v418_v55 = vsel %vm372_vm1, %v3460_v0, -inf  ;;  %v467_v59 = vsel %vm421_vm2, %v3460_v0, -inf  ;;  %v516_v63 = vsel %vm470_vm3, %v3460_v0, -inf }
 0x1d5   :  { %377 = vmax.xlane.f32.xlu0 %v376_v2  ;;  %v562_v2 = vsel %vm519_vm4, %v3452_v60, -inf }
 0x1d6   :  { %524 = vmax.xlane.f32.xlu1 %v523_v3  ;;  %v565_v3 = vsel %vm519_vm4, %v3460_v0, -inf }
 0x1d9   :  { %392 = vmax.xlane.f32.xlu0 %v391_v4  ;;  %v409_v4 = vsel %vm372_vm1, %v3456_v62, -inf }
 0x1da   :  { %395 = vmax.xlane.f32.xlu1 %v394_v5  ;;  %v412_v5 = vsel %vm372_vm1, %v3462_v1, -inf }
 0x1dd   :  { %441 = vmax.xlane.f32.xlu0 %v440_v6  ;;  %v458_v6 = vsel %vm421_vm2, %v3456_v62, -inf }
 0x1de   :  { %444 = vmax.xlane.f32.xlu1 %v443_v7  ;;  %v461_v7 = vsel %vm421_vm2, %v3462_v1, -inf }
 0x1e1   :  { %490 = vmax.xlane.f32.xlu0 %v489_v8  ;;  %v507_v8 = vsel %vm470_vm3, %v3456_v62, -inf }
 0x1e2   :  { %493 = vmax.xlane.f32.xlu1 %v492_v9  ;;  %v510_v9 = vsel %vm470_vm3, %v3462_v1, -inf }
 0x1e5   :  { %539 = vmax.xlane.f32.xlu0 %v538_v10  ;;  %v556_v10 = vsel %vm519_vm4, %v3456_v62, -inf }
 0x1e6   :  { %542 = vmax.xlane.f32.xlu1 %v541_v11  ;;  %v559_v11 = vsel %vm519_vm4, %v3462_v1, -inf }
 0x1e9   :  { %386 = vmax.xlane.f32.xlu0 %v385_v12 }
 0x1ea   :  { %389 = vmax.xlane.f32.xlu1 %v388_v13 }
 0x1ed   :  { %435 = vmax.xlane.f32.xlu0 %v434_v14 }
 0x1ee   :  { %438 = vmax.xlane.f32.xlu1 %v437_v15 }
 0x1f1   :  { %484 = vmax.xlane.f32.xlu0 %v483_v16 }
 0x1f2   :  { %487 = vmax.xlane.f32.xlu1 %v486_v17 }
 0x1f5   :  { %533 = vmax.xlane.f32.xlu0 %v532_v19 }
 0x1f6   :  { %536 = vmax.xlane.f32.xlu1 %v535_v21 }
 0x1f9   :  { %404 = vmax.xlane.f32.xlu0 %v403_v24 }
 0x1fa   :  { %407 = vmax.xlane.f32.xlu1 %v406_v25 }
 0x1fd   :  { %453 = vmax.xlane.f32.xlu0 %v452_v26 }
 0x1fe   :  { %456 = vmax.xlane.f32.xlu1 %v455_v27 }
 0x201   :  { %502 = vmax.xlane.f32.xlu0 %v501_v28 }
 0x202   :  { %505 = vmax.xlane.f32.xlu1 %v504_v29 }
 0x205   :  { %551 = vmax.xlane.f32.xlu0 %v550_v31 }
 0x206   :  { %554 = vmax.xlane.f32.xlu1 %v553_v33 }
 0x209   :  { %398 = vmax.xlane.f32.xlu0 %v397_v38 }
 0x20a   :  { %401 = vmax.xlane.f32.xlu1 %v400_v40 }
 0x20d   :  { %447 = vmax.xlane.f32.xlu0 %v446_v42 }
 0x20e   :  { %450 = vmax.xlane.f32.xlu1 %v449_v43 }
 0x211   :  { %496 = vmax.xlane.f32.xlu0 %v495_v45 }
 0x212   :  { %499 = vmax.xlane.f32.xlu1 %v498_v47 }
 0x215   :  { %545 = vmax.xlane.f32.xlu0 %v544_v50 }
 0x216   :  { %548 = vmax.xlane.f32.xlu1 %v547_v51 }
 0x219   :  { %416 = vmax.xlane.f32.xlu0 %v415_v53 }
 0x21a   :  { %419 = vmax.xlane.f32.xlu1 %v418_v55 }
 0x21d   :  { %465 = vmax.xlane.f32.xlu0 %v464_v58 }
 0x21e   :  { %468 = vmax.xlane.f32.xlu1 %v467_v59 }
 0x221   :  { %514 = vmax.xlane.f32.xlu0 %v513_v61 }
 0x222   :  { %517 = vmax.xlane.f32.xlu1 %v516_v63 }
 0x225   :  { %563 = vmax.xlane.f32.xlu0 %v562_v2 }
 0x226   :  { %566 = vmax.xlane.f32.xlu1 %v565_v3 }
 0x229   :  { %410 = vmax.xlane.f32.xlu0 %v409_v4 }
 0x22a   :  { %413 = vmax.xlane.f32.xlu1 %v412_v5 }
 0x22d   :  { %459 = vmax.xlane.f32.xlu0 %v458_v6 }
 0x22e   :  { %462 = vmax.xlane.f32.xlu1 %v461_v7 }
 0x231   :  { %508 = vmax.xlane.f32.xlu0 %v507_v8 }
 0x232   :  { %511 = vmax.xlane.f32.xlu1 %v510_v9 }
 0x235   :  { %557 = vmax.xlane.f32.xlu0 %v556_v10 }
 0x236   :  { %560 = vmax.xlane.f32.xlu1 %v559_v11 }
 0x246   :  { %v381_v12 = vpop.xlane.xlu0 %380 }
 0x247   :  { %v424_v13 = vpop.xlane.xlu1 %423 }
 0x24a   :  { %v430_v14 = vpop.xlane.xlu0 %429 }
 0x24b   :  { %v384_v15 = vpop.xlane.xlu1 %383  ;;  %v570_v19 = vsel %vm372_vm1, %v381_v12, %v430_v14 }
 0x24e   :  { %v479_v16 = vpop.xlane.xlu0 %478 }
 0x24f   :  { %v433_v17 = vpop.xlane.xlu1 %432  ;;  %v586_v21 = vsel %vm109_vm0, %v570_v19, %v479_v16 }
 0x250   :  { %v571_v38 = vsel %vm372_vm1, %v384_v15, %v433_v17 }
 0x252   :  { %v528_v24 = vpop.xlane.xlu0 %527 }
 0x253   :  { %v603_v25 = vsel %vm600_vm5, %v586_v21, %v528_v24  ;;  %v482_v26 = vpop.xlane.xlu1 %481 }
 0x254   :  { %v619_v27 = vsub.f32 %v3404_v36, %v603_v25  ;;  %v587_v42 = vsel %vm109_vm0, %v571_v38, %v482_v26 }
 0x256   :  { %v637_v28 = vmul.f32 1.442695, %v619_v27  ;;  %v375_v29 = vpop.xlane.xlu0 %374 }
 0x257   :  { %v531_v31 = vpop.xlane.xlu1 %530  ;;  %v568_v43 = vsel %vm372_vm1, %v375_v29, %v424_v13 }
 0x258   :  { %2959 = vpow2.f32 %v637_v28  ;;  %v604_v45 = vsel %vm600_vm5, %v587_v42, %v531_v31 }
 0x259   :  { %v620_v36 = vsub.f32 %v3410_v39, %v604_v45 }
 0x25a   :  { %v473_v33 = vpop.xlane.xlu0 %472 }
 0x25b   :  { %v427_v40 = vpop.xlane.xlu1 %426  ;;  %v584_v47 = vsel %vm109_vm0, %v568_v43, %v473_v33  ;;  %v639_v2 = vmul.f32 1.442695, %v620_v36 }
 0x25e   :  { %v522_v50 = vpop.xlane.xlu0 %521 }
 0x25f   :  { %v601_v51 = vsel %vm600_vm5, %v584_v47, %v522_v50  ;;  %v476_v55 = vpop.xlane.xlu1 %475 }
 0x260   :  { %v617_v53 = vsub.f32 %v3406_v37, %v601_v51 }
 0x262   :  { %v3576_v58 = vpop.eup %2959  ;;  %v633_v59 = vmul.f32 1.442695, %v617_v53  ;;  %v378_v61 = vpop.xlane.xlu0 %377 }
 0x263   :  { %v569_v63 = vsel %vm372_vm1, %v378_v61, %v427_v40  ;;  %749 = vrot.lane.b32.xlu0 %v3576_v58, %s3279_s0  ;;  %v525_v3 = vpop.xlane.xlu1 %524  ;;  %v671_v16 = vsel %vm372_vm1, %v3576_v58, 0.0 }
 0x264   :  { %2961 = vpow2.f32 %v633_v59  ;;  %v585_v4 = vsel %vm109_vm0, %v569_v63, %v476_v55 }
 0x265   :  { %2963 = vpow2.f32 %v639_v2  ;;  %v602_v37 = vsel %vm600_vm5, %v585_v4, %v525_v3 }
 0x266   :  { %v618_v39 = vsub.f32 %v3414_v41, %v602_v37  ;;  %v393_v8 = vpop.xlane.xlu0 %392 }
 0x267   :  { %861 = vrot.lane.b32.xlu0 %v3576_v58, %s3280_s2  ;;  %v396_v12 = vpop.xlane.xlu1 %395 }
 0x268   :  { %v635_v6 = vmul.f32 1.442695, %v618_v39 }
 0x26a   :  { %2965 = vpow2.f32 %v635_v6  ;;  %v442_v41 = vpop.xlane.xlu0 %441 }
 0x26b   :  { %973 = vrot.lane.b32.xlu0 %v3576_v58, %s3281_s16  ;;  %v445_v14 = vpop.xlane.xlu1 %444  ;;  %v574_v15 = vsel %vm372_vm1, %v393_v8, %v442_v41 }
 0x26c   :  { %v575_v43 = vsel %vm372_vm1, %v396_v12, %v445_v14 }
 0x26e   :  { %v3588_v5 = vpop.eup %2961  ;;  %v491_v10 = vpop.xlane.xlu0 %490 }
 0x26f   :  { %745 = vrot.lane.b32.xlu0 %v3588_v5, %s3279_s0  ;;  %857 = vrot.lane.b32.xlu1 %v3588_v5, %s3280_s2  ;;  %v3594_v7 = vpop.eup %2963  ;;  %v590_v17 = vsel %vm109_vm0, %v574_v15, %v491_v10  ;;  %v494_v21 = vpop.xlane.xlu1 %493  ;;  %v665_v24 = vsel %vm372_vm1, %v3588_v5, 0.0 }
 0x270   :  { %v591_v47 = vsel %vm109_vm0, %v575_v43, %v494_v21  ;;  %v674_v36 = vsel %vm372_vm1, %v3594_v7, 0.0 }
 0x272   :  { %v540_v11 = vpop.xlane.xlu0 %539 }
 0x273   :  { %969 = vrot.lane.b32.xlu0 %v3588_v5, %s3281_s16  ;;  %751 = vrot.lane.b32.xlu1 %v3594_v7, %s3279_s0  ;;  %v607_v25 = vsel %vm600_vm5, %v590_v17, %v540_v11  ;;  %v543_v28 = vpop.xlane.xlu1 %542 }
 0x274   :  { %v3604_v9 = vpop.eup %2965  ;;  %v623_v26 = vsub.f32 %v3420_v44, %v607_v25  ;;  %v608_v51 = vsel %vm600_vm5, %v591_v47, %v543_v28 }
 0x275   :  { %v624_v55 = vsub.f32 %v3428_v48, %v608_v51 }
 0x276   :  { %v387_v13 = vpop.xlane.xlu0 %386  ;;  %v645_v31 = vmul.f32 1.442695, %v623_v26 }
 0x277   :  { %863 = vrot.lane.b32.xlu1 %v3594_v7, %s3280_s2  ;;  %v390_v40 = vpop.xlane.xlu1 %389  ;;  %v647_v63 = vmul.f32 1.442695, %v624_v55 }
 0x278   :  { %2967 = vpow2.f32 %v645_v31 }
 0x27a   :  { %v436_v19 = vpop.xlane.xlu0 %435 }
 0x27b   :  { %975 = vrot.lane.b32.xlu1 %v3594_v7, %s3281_s16  ;;  %v572_v29 = vsel %vm372_vm1, %v387_v13, %v436_v19  ;;  %v439_v50 = vpop.xlane.xlu1 %438 }
 0x27c   :  { %v573_v61 = vsel %vm372_vm1, %v390_v40, %v439_v50 }
 0x27e   :  { %v485_v27 = vpop.xlane.xlu0 %484 }
 0x27f   :  { %747 = vrot.lane.b32.xlu1 %v3604_v9, %s3279_s0  ;;  %v588_v33 = vsel %vm109_vm0, %v572_v29, %v485_v27  ;;  %v488_v59 = vpop.xlane.xlu1 %487 }
 0x280   :  { %v589_v2 = vsel %vm109_vm0, %v573_v61, %v488_v59 }
 0x282   :  { %v534_v38 = vpop.xlane.xlu0 %533  ;;  %v3629_v53 = vpop.eup %2967 }
 0x283   :  { %859 = vrot.lane.b32.xlu1 %v3604_v9, %s3280_s2  ;;  %v605_v42 = vsel %vm600_vm5, %v588_v33, %v534_v38  ;;  %v537_v3 = vpop.xlane.xlu1 %536 }
 0x284   :  { %v621_v45 = vsub.f32 %v3424_v46, %v605_v42  ;;  %v668_v46 = vsel %vm372_vm1, %v3604_v9, 0.0  ;;  %v606_v48 = vsel %vm600_vm5, %v589_v2, %v537_v3 }
 0x285   :  { %v622_v37 = vsub.f32 %v3430_v49, %v606_v48 }
 0x286   :  { %v641_v44 = vmul.f32 1.442695, %v621_v45  ;;  %v405_v8 = vpop.xlane.xlu0 %404 }
 0x287   :  { %971 = vrot.lane.b32.xlu1 %v3604_v9, %s3281_s16  ;;  %v643_v39 = vmul.f32 1.442695, %v622_v37  ;;  %v408_v12 = vpop.xlane.xlu1 %407 }
 0x288   :  { %2969 = vpow2.f32 %v641_v44 }
 0x289   :  { %2971 = vpow2.f32 %v647_v63 }
 0x28a   :  { %2973 = vpow2.f32 %v643_v39  ;;  %v454_v41 = vpop.xlane.xlu0 %453 }
 0x28b   :  { %v457_v14 = vpop.xlane.xlu1 %456  ;;  %v578_v15 = vsel %vm372_vm1, %v405_v8, %v454_v41 }
 0x28c   :  { %v579_v43 = vsel %vm372_vm1, %v408_v12, %v457_v14 }
 0x28e   :  { %v503_v10 = vpop.xlane.xlu0 %502 }
 0x28f   :  { %v594_v17 = vsel %vm109_vm0, %v578_v15, %v503_v10  ;;  %v506_v21 = vpop.xlane.xlu1 %505 }
 0x290   :  { %v595_v47 = vsel %vm109_vm0, %v579_v43, %v506_v21 }
 0x292   :  { %672 = vadd.xlane.f32.xlu0 %v671_v16  ;;  %v3643_v4 = vpop.eup %2969  ;;  %v552_v11 = vpop.xlane.xlu0 %551  ;;  %v683_v16 = vsel %vm372_vm1, %v3629_v53, 0.0 }
 0x293   :  { %v3650_v6 = vpop.eup %2971  ;;  %v611_v25 = vsel %vm600_vm5, %v594_v17, %v552_v11  ;;  %v555_v28 = vpop.xlane.xlu1 %554 }
 0x294   :  { %v3660_v49 = vpop.eup %2973  ;;  %v627_v26 = vsub.f32 %v3436_v52, %v611_v25  ;;  %v612_v44 = vsel %vm600_vm5, %v595_v47, %v555_v28  ;;  %v686_v51 = vsel %vm372_vm1, %v3650_v6, 0.0 }
 0x295   :  { %v628_v55 = vsub.f32 %v3444_v56, %v612_v44 }
 0x296   :  { %666 = vadd.xlane.f32.xlu0 %v665_v24  ;;  %v399_v13 = vpop.xlane.xlu0 %398  ;;  %v677_v24 = vsel %vm372_vm1, %v3643_v4, 0.0  ;;  %v653_v31 = vmul.f32 1.442695, %v627_v26 }
 0x297   :  { %v402_v40 = vpop.xlane.xlu1 %401  ;;  %v655_v61 = vmul.f32 1.442695, %v628_v55 }
 0x298   :  { %2975 = vpow2.f32 %v653_v31 }
 0x29a   :  { %v448_v19 = vpop.xlane.xlu0 %447 }
 0x29b   :  { %v576_v29 = vsel %vm372_vm1, %v399_v13, %v448_v19  ;;  %v451_v50 = vpop.xlane.xlu1 %450 }
 0x29e   :  { %v497_v27 = vpop.xlane.xlu0 %496 }
 0x29f   :  { %v592_v33 = vsel %vm109_vm0, %v576_v29, %v497_v27  ;;  %v500_v59 = vpop.xlane.xlu1 %499 }
 0x2a2   :  { %v546_v38 = vpop.xlane.xlu0 %545 }
 0x2a3   :  { %v609_v42 = vsel %vm600_vm5, %v592_v33, %v546_v38  ;;  %v549_v2 = vpop.xlane.xlu1 %548 }
 0x2a4   :  { %v625_v45 = vsub.f32 %v3440_v54, %v609_v42  ;;  %v680_v54 = vsel %vm372_vm1, %v3660_v49, 0.0 }
 0x2a6   :  { %v649_v52 = vmul.f32 1.442695, %v625_v45  ;;  %v417_v8 = vpop.xlane.xlu0 %416 }
 0x2a7   :  { %v420_v11 = vpop.xlane.xlu1 %419 }
 0x2a8   :  { %2977 = vpow2.f32 %v649_v52 }
 0x2a9   :  { %2979 = vpow2.f32 %v655_v61 }
 0x2aa   :  { %v466_v41 = vpop.xlane.xlu0 %465 }
 0x2ab   :  { %675 = vadd.xlane.f32.xlu1 %v674_v36  ;;  %v3685_v36 = vpop.eup %2975  ;;  %v469_v13 = vpop.xlane.xlu1 %468  ;;  %v582_v15 = vsel %vm372_vm1, %v417_v8, %v466_v41 }
 0x2ac   :  { %757 = vrot.lane.b32.xlu0 %v3629_v53, %s3279_s0  ;;  %v583_v43 = vsel %vm372_vm1, %v420_v11, %v469_v13 }
 0x2ae   :  { %v515_v10 = vpop.xlane.xlu0 %514 }
 0x2af   :  { %669 = vadd.xlane.f32.xlu1 %v668_v46  ;;  %v577_v46 = vsel %vm372_vm1, %v402_v40, %v451_v50  ;;  %v518_v17 = vpop.xlane.xlu1 %517  ;;  %v598_v19 = vsel %vm109_vm0, %v582_v15, %v515_v10 }
 0x2b0   :  { %869 = vrot.lane.b32.xlu0 %v3629_v53, %s3280_s2  ;;  %v593_v63 = vsel %vm109_vm0, %v577_v46, %v500_v59  ;;  %v599_v50 = vsel %vm109_vm0, %v583_v43, %v518_v17 }
 0x2b1   :  { %v610_v56 = vsel %vm600_vm5, %v593_v63, %v549_v2 }
 0x2b2   :  { %v3699_v3 = vpop.eup %2977  ;;  %v626_v48 = vsub.f32 %v3446_v57, %v610_v56  ;;  %v564_v12 = vpop.xlane.xlu0 %563 }
 0x2b3   :  { %v3706_v39 = vpop.eup %2979  ;;  %v615_v25 = vsel %vm600_vm5, %v598_v19, %v564_v12  ;;  %v567_v26 = vpop.xlane.xlu1 %566 }
 0x2b4   :  { %981 = vrot.lane.b32.xlu0 %v3629_v53, %s3281_s16  ;;  %v651_v37 = vmul.f32 1.442695, %v626_v48  ;;  %v631_v27 = vsub.f32 %v3452_v60, %v615_v25  ;;  %v616_v44 = vsel %vm600_vm5, %v599_v50, %v567_v26  ;;  %v698_v55 = vsel %vm372_vm1, %v3706_v39, 0.0 }
 0x2b6   :  { %2981 = vpow2.f32 %v651_v37  ;;  %v411_v14 = vpop.xlane.xlu0 %410  ;;  %v661_v31 = vmul.f32 1.442695, %v631_v27 }
 0x2b7   :  { %v414_v33 = vpop.xlane.xlu1 %413 }
 0x2b8   :  { %753 = vrot.lane.b32.xlu0 %v3643_v4, %s3279_s0  ;;  %2983 = vpow2.f32 %v661_v31 }
 0x2ba   :  { %v460_v21 = vpop.xlane.xlu0 %459 }
 0x2bb   :  { %v580_v29 = vsel %vm372_vm1, %v411_v14, %v460_v21  ;;  %v463_v45 = vpop.xlane.xlu1 %462 }
 0x2bc   :  { %865 = vrot.lane.b32.xlu0 %v3643_v4, %s3280_s2  ;;  %v581_v61 = vsel %vm372_vm1, %v414_v33, %v463_v45 }
 0x2be   :  { %v509_v28 = vpop.xlane.xlu0 %508 }
 0x2bf   :  { %v596_v38 = vsel %vm109_vm0, %v580_v29, %v509_v28 }
 0x2c0   :  { %977 = vrot.lane.b32.xlu0 %v3643_v4, %s3281_s16  ;;  %759 = vrot.lane.b32.xlu1 %v3650_v6, %s3279_s0  ;;  %v3716_v57 = vpop.eup %2981 }
 0x2c1   :  { %v692_v46 = vsel %vm372_vm1, %v3716_v57, 0.0 }
 0x2c2   :  { %v558_v40 = vpop.xlane.xlu0 %557  ;;  %v3741_v59 = vpop.eup %2983 }
 0x2c3   :  { %v613_v42 = vsel %vm600_vm5, %v596_v38, %v558_v40  ;;  %v707_v31 = vsel %vm372_vm1, %v3741_v59, 0.0 }
 0x2c4   :  { %871 = vrot.lane.b32.xlu1 %v3650_v6, %s3280_s2  ;;  %v629_v47 = vsub.f32 %v3456_v62, %v613_v42 }
 0x2c6   :  { %v657_v60 = vmul.f32 1.442695, %v629_v47 }
 0x2c8   :  { %983 = vrot.lane.b32.xlu1 %v3650_v6, %s3281_s16  ;;  %2985 = vpow2.f32 %v657_v60 }
 0x2cc   :  { %755 = vrot.lane.b32.xlu1 %v3660_v49, %s3279_s0 }
 0x2d0   :  { %867 = vrot.lane.b32.xlu1 %v3660_v49, %s3280_s2 }
 0x2d2   :  { %v3755_v8 = vpop.eup %2985 }
 0x2d3   :  { %v701_v40 = vsel %vm372_vm1, %v3755_v8, 0.0 }
 0x2d4   :  { %979 = vrot.lane.b32.xlu1 %v3660_v49, %s3281_s16 }
 0x2d5   :  { %v750_v52 = vpop.permute.xlu0 %749 }
 0x2d6   :  { %v799_v42 = vsel %vm372_vm1, %v750_v52, 0.0 }
 0x2d9   :  { %v862_v62 = vpop.permute.xlu0 %861 }
 0x2da   :  { %v911_v47 = vsel %vm372_vm1, %v862_v62, 0.0 }
 0x2dd   :  { %v974_v48 = vpop.permute.xlu0 %973 }
 0x2df   :  { %684 = vadd.xlane.f32.xlu0 %v683_v16  ;;  %v695_v16 = vsel %vm372_vm1, %v3685_v36, 0.0 }
 0x2e1   :  { %v746_v10 = vpop.permute.xlu0 %745 }
 0x2e3   :  { %678 = vadd.xlane.f32.xlu0 %v677_v24  ;;  %v689_v24 = vsel %vm372_vm1, %v3699_v3, 0.0 }
 0x2e5   :  { %v970_v14 = vpop.permute.xlu0 %969 }
 0x2f8   :  { %687 = vadd.xlane.f32.xlu1 %v686_v51  ;;  %v512_v51 = vpop.xlane.xlu1 %511 }
 0x2f9   :  { %765 = vrot.lane.b32.xlu0 %v3685_v36, %s3279_s0  ;;  %v597_v56 = vsel %vm109_vm0, %v581_v61, %v512_v51 }
 0x2fc   :  { %681 = vadd.xlane.f32.xlu1 %v680_v54  ;;  %v632_v54 = vsub.f32 %v3460_v0, %v616_v44  ;;  %v561_v63 = vpop.xlane.xlu1 %560  ;;  %v1023_v44 = vsel %vm372_vm1, %v974_v48, 0.0 }
 0x2fd   :  { %877 = vrot.lane.b32.xlu0 %v3685_v36, %s3280_s2  ;;  %v614_v0 = vsel %vm600_vm5, %v597_v56, %v561_v63  ;;  %v1017_v63 = vsel %vm372_vm1, %v970_v14, 0.0 }
 0x2fe   :  { %v663_v2 = vmul.f32 1.442695, %v632_v54  ;;  %v630_v41 = vsub.f32 %v3462_v1, %v614_v0 }
 0x300   :  { %v858_v37 = vpop.permute.xlu1 %857  ;;  %2987 = vpow2.f32 %v663_v2  ;;  %v659_v12 = vmul.f32 1.442695, %v630_v41 }
 0x301   :  { %989 = vrot.lane.b32.xlu0 %v3685_v36, %s3281_s16 }
 0x302   :  { %2989 = vpow2.f32 %v659_v12 }
 0x304   :  { %v752_v11 = vpop.permute.xlu1 %751 }
 0x305   :  { %761 = vrot.lane.b32.xlu0 %v3699_v3, %s3279_s0 }
 0x308   :  { %v864_v15 = vpop.permute.xlu1 %863 }
 0x309   :  { %873 = vrot.lane.b32.xlu0 %v3699_v3, %s3280_s2  ;;  %v914_v12 = vsel %vm372_vm1, %v864_v15, 0.0 }
 0x30a   :  { %v3762_v13 = vpop.eup %2987 }
 0x30b   :  { %v710_v62 = vsel %vm372_vm1, %v3762_v13, 0.0 }
 0x30c   :  { %v976_v1 = vpop.permute.xlu1 %975  ;;  %v3776_v19 = vpop.eup %2989 }
 0x30d   :  { %985 = vrot.lane.b32.xlu0 %v3699_v3, %s3281_s16  ;;  %767 = vrot.lane.b32.xlu1 %v3706_v39, %s3279_s0  ;;  %v704_v2 = vsel %vm372_vm1, %v3776_v19, 0.0 }
 0x310   :  { %v748_v21 = vpop.permute.xlu1 %747 }
 0x311   :  { %879 = vrot.lane.b32.xlu1 %v3706_v39, %s3280_s2  ;;  %v796_v48 = vsel %vm372_vm1, %v748_v21, 0.0 }
 0x314   :  { %v860_v25 = vpop.permute.xlu1 %859 }
 0x315   :  { %991 = vrot.lane.b32.xlu1 %v3706_v39, %s3281_s16 }
 0x318   :  { %v972_v27 = vpop.permute.xlu1 %971 }
 0x319   :  { %763 = vrot.lane.b32.xlu1 %v3716_v57, %s3279_s0 }
 0x31d   :  { %875 = vrot.lane.b32.xlu1 %v3716_v57, %s3280_s2 }
 0x321   :  { %987 = vrot.lane.b32.xlu1 %v3716_v57, %s3281_s16 }
 0x32c   :  { %696 = vadd.xlane.f32.xlu0 %v695_v16  ;;  %v3768_v16 = vpop.xlane.xlu0 %672 }
 0x32d   :  { %2991 = vrcp.f32 %v3768_v16 }
 0x330   :  { %690 = vadd.xlane.f32.xlu0 %v689_v24  ;;  %v3774_v17 = vpop.xlane.xlu0 %666 }
 0x331   :  { %2993 = vrcp.f32 %v3774_v17 }
 0x334   :  { %v758_v24 = vpop.permute.xlu0 %757 }
 0x335   :  { %v811_v41 = vsel %vm372_vm1, %v758_v24, 0.0  ;;  %v908_v24 = vsel %vm372_vm1, %v860_v25, 0.0 }
 0x338   :  { %v870_v26 = vpop.permute.xlu0 %869  ;;  %v3784_v29 = vpop.xlane.xlu1 %675 }
 0x339   :  { %v923_v14 = vsel %vm372_vm1, %v870_v26, 0.0  ;;  %v1020_v26 = vsel %vm372_vm1, %v972_v27, 0.0  ;;  %2995 = vrcp.f32 %v3784_v29 }
 0x33c   :  { %v982_v28 = vpop.permute.xlu0 %981  ;;  %v3788_v38 = vpop.xlane.xlu1 %669 }
 0x33d   :  { %2997 = vrcp.f32 %v3788_v38 }
 0x340   :  { %v754_v33 = vpop.permute.xlu0 %753  ;;  %v760_v45 = vpop.permute.xlu1 %759 }
 0x344   :  { %v866_v43 = vpop.permute.xlu0 %865  ;;  %v872_v60 = vpop.permute.xlu1 %871 }
 0x345   :  { %699 = vadd.xlane.f32.xlu1 %v698_v55  ;;  %v793_v55 = vsel %vm372_vm1, %v746_v10, 0.0 }
 0x346   :  { %773 = vrot.lane.b32.xlu0 %v3741_v59, %s3279_s0 }
 0x348   :  { %v978_v50 = vpop.permute.xlu0 %977  ;;  %v984_v54 = vpop.permute.xlu1 %983 }
 0x349   :  { %693 = vadd.xlane.f32.xlu1 %v692_v46  ;;  %v905_v46 = vsel %vm372_vm1, %v858_v37, 0.0  ;;  %v802_v37 = vsel %vm372_vm1, %v752_v11, 0.0  ;;  %v1029_v25 = vsel %vm372_vm1, %v978_v50, 0.0 }
 0x34a   :  { %885 = vrot.lane.b32.xlu0 %v3741_v59, %s3280_s2 }
 0x34c   :  { %v756_v61 = vpop.permute.xlu1 %755 }
 0x34e   :  { %997 = vrot.lane.b32.xlu0 %v3741_v59, %s3281_s16 }
 0x350   :  { %v868_v0 = vpop.permute.xlu1 %867 }
 0x352   :  { %769 = vrot.lane.b32.xlu0 %v3755_v8, %s3279_s0 }
 0x356   :  { %881 = vrot.lane.b32.xlu0 %v3755_v8, %s3280_s2 }
 0x35a   :  { %993 = vrot.lane.b32.xlu0 %v3755_v8, %s3281_s16  ;;  %775 = vrot.lane.b32.xlu1 %v3762_v13, %s3279_s0 }
 0x35e   :  { %887 = vrot.lane.b32.xlu1 %v3762_v13, %s3280_s2 }
 0x362   :  { %999 = vrot.lane.b32.xlu1 %v3762_v13, %s3281_s16 }
 0x366   :  { %771 = vrot.lane.b32.xlu1 %v3776_v19, %s3279_s0 }
 0x36a   :  { %883 = vrot.lane.b32.xlu1 %v3776_v19, %s3280_s2 }
 0x36c   :  { %v3795_v51 = vpop.xlane.xlu0 %684 }
 0x36e   :  { %995 = vrot.lane.b32.xlu1 %v3776_v19, %s3281_s16 }
 0x370   :  { %v3799_v52 = vpop.xlane.xlu0 %678 }
 0x374   :  { %v766_v56 = vpop.permute.xlu0 %765 }
 0x378   :  { %v878_v10 = vpop.permute.xlu0 %877 }
 0x379   :  { %708 = vadd.xlane.f32.xlu0 %v707_v31  ;;  %v980_v31 = vpop.permute.xlu1 %979 }
 0x37c   :  { %v990_v21 = vpop.permute.xlu0 %989 }
 0x37d   :  { %702 = vadd.xlane.f32.xlu0 %v701_v40  ;;  %v1026_v40 = vsel %vm372_vm1, %v976_v1, 0.0  ;;  %v917_v1 = vsel %vm372_vm1, %v866_v43, 0.0  ;;  %v935_v43 = vsel %vm372_vm1, %v878_v10, 0.0  ;;  %v1032_v10 = vsel %vm372_vm1, %v980_v31, 0.0 }
 0x380   :  { %v762_v15 = vpop.permute.xlu0 %761 }
 0x381   :  { %800 = vadd.xlane.f32.xlu0 %v799_v42  ;;  %v1035_v42 = vsel %vm372_vm1, %v982_v28, 0.0 }
 0x384   :  { %v874_v28 = vpop.permute.xlu0 %873 }
 0x385   :  { %912 = vadd.xlane.f32.xlu0 %v911_v47  ;;  %v3813_v11 = vpop.xlane.xlu1 %687  ;;  %v805_v47 = vsel %vm372_vm1, %v754_v33, 0.0  ;;  %v926_v33 = vsel %vm372_vm1, %v872_v60, 0.0  ;;  %v1047_v60 = vsel %vm372_vm1, %v990_v21, 0.0 }
 0x388   :  { %v986_v27 = vpop.permute.xlu0 %985 }
 0x389   :  { %1024 = vadd.xlane.f32.xlu0 %v1023_v44  ;;  %v3818_v44 = vpop.xlane.xlu1 %681 }
 0x38d   :  { %794 = vadd.xlane.f32.xlu0 %v793_v55  ;;  %v814_v55 = vsel %vm372_vm1, %v760_v45, 0.0 }
 0x391   :  { %906 = vadd.xlane.f32.xlu0 %v905_v46  ;;  %v768_v46 = vpop.permute.xlu1 %767 }
 0x392   :  { %711 = vadd.xlane.f32.xlu1 %v710_v62  ;;  %v823_v62 = vsel %vm372_vm1, %v766_v56, 0.0  ;;  %v920_v56 = vsel %vm372_vm1, %v868_v0, 0.0 }
 0x395   :  { %1018 = vadd.xlane.f32.xlu0 %v1017_v63  ;;  %v1038_v63 = vsel %vm372_vm1, %v984_v54, 0.0  ;;  %v817_v54 = vsel %vm372_vm1, %v762_v15, 0.0 }
 0x396   :  { %705 = vadd.xlane.f32.xlu1 %v704_v2  ;;  %v880_v2 = vpop.permute.xlu1 %879 }
 0x399   :  { %797 = vadd.xlane.f32.xlu0 %v796_v48  ;;  %v808_v48 = vsel %vm372_vm1, %v756_v61, 0.0  ;;  %v929_v61 = vsel %vm372_vm1, %v874_v28, 0.0 }
 0x39a   :  { %803 = vadd.xlane.f32.xlu1 %v802_v37  ;;  %v992_v50 = vpop.permute.xlu1 %991 }
 0x39b   :  { %v1050_v15 = vsel %vm372_vm1, %v992_v50, 0.0 }
 0x39d   :  { %812 = vadd.xlane.f32.xlu0 %v811_v41 }
 0x39e   :  { %915 = vadd.xlane.f32.xlu1 %v914_v12  ;;  %v764_v12 = vpop.permute.xlu1 %763 }
 0x3a1   :  { %924 = vadd.xlane.f32.xlu0 %v923_v14 }
 0x3a2   :  { %1027 = vadd.xlane.f32.xlu1 %v1026_v40  ;;  %v826_v40 = vsel %vm372_vm1, %v768_v46, 0.0  ;;  %v876_v21 = vpop.permute.xlu1 %875 }
 0x3a5   :  { %1036 = vadd.xlane.f32.xlu0 %v1035_v42  ;;  %v1041_v42 = vsel %vm372_vm1, %v986_v27, 0.0 }
 0x3a6   :  { %909 = vadd.xlane.f32.xlu1 %v908_v24  ;;  %v938_v24 = vsel %vm372_vm1, %v880_v2, 0.0 }
 0x3a9   :  { %806 = vadd.xlane.f32.xlu0 %v805_v47 }
 0x3aa   :  { %1021 = vadd.xlane.f32.xlu1 %v1020_v26  ;;  %v988_v26 = vpop.permute.xlu1 %987 }
 0x3ab   :  { %v1044_v2 = vsel %vm372_vm1, %v988_v26, 0.0 }
 0x3ad   :  { %918 = vadd.xlane.f32.xlu0 %v917_v1 }
 0x3ae   :  { %815 = vadd.xlane.f32.xlu1 %v814_v55  ;;  %v820_v55 = vsel %vm372_vm1, %v764_v12, 0.0 }
 0x3b1   :  { %1030 = vadd.xlane.f32.xlu0 %v1029_v25 }
 0x3b2   :  { %927 = vadd.xlane.f32.xlu1 %v926_v33  ;;  %v932_v33 = vsel %vm372_vm1, %v876_v21, 0.0 }
 0x3b5   :  { %824 = vadd.xlane.f32.xlu0 %v823_v62 }
 0x3b6   :  { %1039 = vadd.xlane.f32.xlu1 %v1038_v63 }
 0x3b9   :  { %v3827_v45 = vpop.xlane.xlu0 %696  ;;  %936 = vadd.xlane.f32.xlu0 %v935_v43 }
 0x3ba   :  { %809 = vadd.xlane.f32.xlu1 %v808_v48 }
 0x3bd   :  { %v3831_v37 = vpop.xlane.xlu0 %690  ;;  %1048 = vadd.xlane.f32.xlu0 %v1047_v60 }
 0x3be   :  { %921 = vadd.xlane.f32.xlu1 %v920_v56 }
 0x3c1   :  { %v774_v41 = vpop.permute.xlu0 %773  ;;  %818 = vadd.xlane.f32.xlu0 %v817_v54 }
 0x3c2   :  { %1033 = vadd.xlane.f32.xlu1 %v1032_v10  ;;  %v835_v47 = vsel %vm372_vm1, %v774_v41, 0.0 }
 0x3c5   :  { %v886_v14 = vpop.permute.xlu0 %885  ;;  %930 = vadd.xlane.f32.xlu0 %v929_v61 }
 0x3c6   :  { %827 = vadd.xlane.f32.xlu1 %v826_v40  ;;  %v947_v1 = vsel %vm372_vm1, %v886_v14, 0.0 }
 0x3c9   :  { %v998_v0 = vpop.permute.xlu0 %997  ;;  %1042 = vadd.xlane.f32.xlu0 %v1041_v42 }
 0x3ca   :  { %939 = vadd.xlane.f32.xlu1 %v938_v24  ;;  %v1059_v56 = vsel %vm372_vm1, %v998_v0, 0.0 }
 0x3cd   :  { %v770_v31 = vpop.permute.xlu0 %769  ;;  %836 = vadd.xlane.f32.xlu0 %v835_v47 }
 0x3ce   :  { %1051 = vadd.xlane.f32.xlu1 %v1050_v15  ;;  %v829_v25 = vsel %vm372_vm1, %v770_v31, 0.0 }
 0x3d1   :  { %948 = vadd.xlane.f32.xlu0 %v947_v1  ;;  %v882_v46 = vpop.permute.xlu0 %881 }
 0x3d2   :  { %821 = vadd.xlane.f32.xlu1 %v820_v55  ;;  %v3844_v28 = vpop.xlane.xlu1 %699  ;;  %v941_v27 = vsel %vm372_vm1, %v882_v46, 0.0 }
 0x3d5   :  { %830 = vadd.xlane.f32.xlu0 %v829_v25  ;;  %v994_v63 = vpop.permute.xlu0 %993 }
 0x3d6   :  { %933 = vadd.xlane.f32.xlu1 %v932_v33  ;;  %v3848_v62 = vpop.xlane.xlu1 %693  ;;  %v1053_v48 = vsel %vm372_vm1, %v994_v63, 0.0 }
 0x3d9   :  { %942 = vadd.xlane.f32.xlu0 %v941_v27 }
 0x3da   :  { %1045 = vadd.xlane.f32.xlu1 %v1044_v2  ;;  %v776_v43 = vpop.permute.xlu1 %775 }
 0x3db   :  { %v838_v50 = vsel %vm372_vm1, %v776_v43, 0.0 }
 0x3dd   :  { %1054 = vadd.xlane.f32.xlu0 %v1053_v48 }
 0x3de   :  { %839 = vadd.xlane.f32.xlu1 %v838_v50  ;;  %v888_v60 = vpop.permute.xlu1 %887 }
 0x3df   :  { %v950_v54 = vsel %vm372_vm1, %v888_v60, 0.0  ;;  %v2992_v60 = vpop.eup %2991 }
 0x3e0   :  { %v2994_v17 = vpop.eup %2993 }
 0x3e1   :  { %1060 = vadd.xlane.f32.xlu0 %v1059_v56  ;;  %v2996_v56 = vpop.eup %2995 }
 0x3e2   :  { %951 = vadd.xlane.f32.xlu1 %v950_v54  ;;  %v1000_v41 = vpop.permute.xlu1 %999  ;;  %v2998_v29 = vpop.eup %2997 }
 0x3e3   :  { %v1062_v42 = vsel %vm372_vm1, %v1000_v41, 0.0 }
 0x3e6   :  { %v772_v10 = vpop.permute.xlu1 %771 }
 0x3e7   :  { %v832_v12 = vsel %vm372_vm1, %v772_v10, 0.0 }
 0x3e8   :  { %833 = vadd.xlane.f32.xlu1 %v832_v12 }
 0x3ea   :  { %v884_v61 = vpop.permute.xlu1 %883 }
 0x3eb   :  { %v944_v14 = vsel %vm372_vm1, %v884_v61, 0.0 }
 0x3ec   :  { %945 = vadd.xlane.f32.xlu1 %v944_v14 }
 0x3ee   :  { %v996_v40 = vpop.permute.xlu1 %995 }
 0x3ef   :  { %v1056_v21 = vsel %vm372_vm1, %v996_v40, 0.0 }
 0x3f0   :  { %1057 = vadd.xlane.f32.xlu1 %v1056_v21 }
 0x3f4   :  { %1063 = vadd.xlane.f32.xlu1 %v1062_v42 }
 0x406   :  { %v3860_v0 = vpop.xlane.xlu0 %708 }
 0x40a   :  { %v3862_v24 = vpop.xlane.xlu0 %702 }
 0x40e   :  { %v801_v47 = vpop.xlane.xlu0 %800 }
 0x40f   :  { %2999 = vrcp.f32 %v801_v47 }
 0x412   :  { %v913_v31 = vpop.xlane.xlu0 %912 }
 0x413   :  { %3001 = vrcp.f32 %v913_v31 }
 0x416   :  { %v1025_v15 = vpop.xlane.xlu0 %1024 }
 0x419   :  { %v3000_v54 = vpop.eup %2999 }
 0x41a   :  { %v795_v26 = vpop.xlane.xlu0 %794 }
 0x41b   :  { %3003 = vrcp.f32 %v795_v26 }
 0x41d   :  { %v3002_v10 = vpop.eup %3001 }
 0x41e   :  { %v907_v1 = vpop.xlane.xlu0 %906 }
 0x41f   :  { %v3864_v55 = vpop.xlane.xlu1 %711  ;;  %3005 = vrcp.f32 %v907_v1 }
 0x422   :  { %v1019_v46 = vpop.xlane.xlu0 %1018 }
 0x423   :  { %v3866_v25 = vpop.xlane.xlu1 %705  ;;  %3007 = vrcp.f32 %v1019_v46 }
 0x425   :  { %v3004_v12 = vpop.eup %3003 }
 0x426   :  { %v798_v33 = vpop.xlane.xlu0 %797 }
 0x427   :  { %v804_v27 = vpop.xlane.xlu1 %803  ;;  %3009 = vrcp.f32 %v798_v33  ;;  %v1081_v33 = vsel %vm372_vm1, %v2994_v17, %v3004_v12 }
 0x428   :  { %3011 = vrcp.f32 %v804_v27 }
 0x429   :  { %v3006_v61 = vpop.eup %3005 }
 0x42a   :  { %v813_v63 = vpop.xlane.xlu0 %812 }
 0x42b   :  { %v916_v2 = vpop.xlane.xlu1 %915 }
 0x42c   :  { %3013 = vrcp.f32 %v916_v2  ;;  %v1097_v2 = vsel %vm109_vm0, %v1081_v33, %v3006_v61 }
 0x42d   :  { %v3008_v40 = vpop.eup %3007 }
 0x42e   :  { %v925_v43 = vpop.xlane.xlu0 %924 }
 0x42f   :  { %v1028_v48 = vpop.xlane.xlu1 %1027 }
 0x431   :  { %v3010_v42 = vpop.eup %3009 }
 0x432   :  { %v3872_v50 = vpop.xlane.xlu0 %1036  ;;  %v3012_v47 = vpop.eup %3011 }
 0x433   :  { %v910_v16 = vpop.xlane.xlu1 %909 }
 0x434   :  { %3015 = vrcp.f32 %v910_v16  ;;  %v1113_v16 = vsel %vm600_vm5, %v1097_v2, %v3008_v40 }
 0x435   :  { %3017 = vrcp.f32 %v1028_v48  ;;  %v1082_v48 = vsel %vm372_vm1, %v2998_v29, %v3010_v42  ;;  %v1083_v29 = vsel %vm372_vm1, %v2992_v60, %v3000_v54 }
 0x436   :  { %v807_v38 = vpop.xlane.xlu0 %806  ;;  %3019 = vrcp.f32 %v1025_v15  ;;  %v3014_v31 = vpop.eup %3013  ;;  %v1099_v40 = vsel %vm109_vm0, %v1083_v29, %v3002_v10 }
 0x437   :  { %v1022_v41 = vpop.xlane.xlu1 %1021 }
 0x438   :  { %3021 = vrcp.f32 %v1022_v41  ;;  %v1084_v41 = vsel %vm372_vm1, %v2996_v56, %v3012_v47  ;;  %v1129_v56 = vmul.f32 %v3588_v5, %v1113_v16 }
 0x439   :  { %3023 = vrcp.f32 %v3795_v51  ;;  %v1100_v17 = vsel %vm109_vm0, %v1084_v41, %v3014_v31 }
 0x43a   :  { %v919_v14 = vpop.xlane.xlu0 %918  ;;  %3025 = vrcp.f32 %v3799_v52 }
 0x43b   :  { %v816_v21 = vpop.xlane.xlu1 %815  ;;  %3027 = vrcp.f32 %v3813_v11 }
 0x43c   :  { %3029 = vrcp.f32 %v3818_v44 }
 0x43d   :  { %3031 = vrcp.f32 %v813_v63 }
 0x43e   :  { %v1031_v26 = vpop.xlane.xlu0 %1030  ;;  %v3016_v1 = vpop.eup %3015  ;;  %3033 = vrcp.f32 %v925_v43 }
 0x43f   :  { %v928_v46 = vpop.xlane.xlu1 %927  ;;  %v3018_v27 = vpop.eup %3017  ;;  %v1098_v20 = vsel %vm109_vm0, %v1082_v48, %v3016_v1  ;;  %3035 = vrcp.f32 %v807_v38 }
 0x440   :  { %v3020_v15 = vpop.eup %3019  ;;  %v1116_v61 = vsel %vm600_vm5, %v1100_v17, %v3018_v27  ;;  %3037 = vrcp.f32 %v919_v14 }
 0x441   :  { %v1115_v42 = vsel %vm600_vm5, %v1099_v40, %v3020_v15  ;;  %3039 = vrcp.f32 %v816_v21 }
 0x442   :  { %v3022_v32 = vpop.eup %3021  ;;  %v3881_v35 = vpop.xlane.xlu0 %824  ;;  %v1131_v44 = vmul.f32 %v3576_v58, %v1115_v42  ;;  %3041 = vrcp.f32 %v1031_v26 }
 0x443   :  { %v1040_v12 = vpop.xlane.xlu1 %1039  ;;  %v1114_v51 = vsel %vm600_vm5, %v1098_v20, %v3022_v32  ;;  %v1132_v20 = vmul.f32 %v3594_v7, %v1116_v61  ;;  %v3024_v63 = vpop.eup %3023  ;;  %3043 = vrcp.f32 %v928_v46 }
 0x444   :  { %v1130_v52 = vmul.f32 %v3604_v9, %v1114_v51  ;;  %v3026_v43 = vpop.eup %3025 }
 0x445   :  { %v1146_v9 = vpack.c.bf16 %v1132_v20, %v1131_v44  ;;  %v3028_v54 = vpop.eup %3027 }
 0x446   :  { %v3894_v11 = vpop.xlane.xlu0 %936  ;;  %v1145_v47 = vpack.c.bf16 %v1130_v52, %v1129_v56  ;;  %v3030_v7 = vpop.eup %3029 }
 0x447   :  { %v810_v32 = vpop.xlane.xlu1 %809  ;;  %v3032_v10 = vpop.eup %3031 }
 0x448   :  { %1153 = vxpose.xlu0.c.b16.start [1/4] (short) (narrow) %v1145_v47, 64  ;;  %3045 = vrcp.f32 %v810_v32  ;;  %v3034_v14 = vpop.eup %3033 }
 0x449   :  { %v3036_v21 = vpop.eup %3035 }
 0x44a   :  { %v3898_v5 = vpop.xlane.xlu0 %1048  ;;  %v3038_v31 = vpop.eup %3037  ;;  %v1085_v41 = vsel %vm372_vm1, %v3026_v43, %v3036_v21 }
 0x44b   :  { %v922_v60 = vpop.xlane.xlu1 %921  ;;  %v3040_v1 = vpop.eup %3039 }
 0x44c   :  { %1154 = vxpose.xlu0.c.b16.cont [2/4] (short) (narrow) %v1146_v9, 64  ;;  %3047 = vrcp.f32 %v922_v60  ;;  %v3042_v33 = vpop.eup %3041  ;;  %v1088_v61 = vsel %vm372_vm1, %v3028_v54, %v3040_v1 }
 0x44d   :  { %3049 = vrcp.f32 %v1040_v12  ;;  %v3044_v27 = vpop.eup %3043  ;;  %v1101_v12 = vsel %vm109_vm0, %v1085_v41, %v3038_v31 }
 0x44e   :  { %v819_v38 = vpop.xlane.xlu0 %818  ;;  %3051 = vrcp.f32 %v3872_v50  ;;  %v1117_v29 = vsel %vm600_vm5, %v1101_v12, %v3042_v33  ;;  %v1104_v40 = vsel %vm109_vm0, %v1088_v61, %v3044_v27 }
 0x44f   :  { %v1034_v58 = vpop.xlane.xlu1 %1033  ;;  %v1133_v44 = vmul.f32 %v3643_v4, %v1117_v29 }
 0x450   :  { %3053 = vrcp.f32 %v1034_v58 }
 0x451   :  { %3055 = vrcp.f32 %v3827_v45  ;;  %v1087_v45 = vsel %vm372_vm1, %v3024_v63, %v3032_v10 }
 0x452   :  { %v931_v26 = vpop.xlane.xlu0 %930  ;;  %v3046_v2 = vpop.eup %3045  ;;  %3057 = vrcp.f32 %v3831_v37  ;;  %v1103_v9 = vsel %vm109_vm0, %v1087_v45, %v3034_v14 }
 0x453   :  { %v828_v46 = vpop.xlane.xlu1 %827  ;;  %v1086_v51 = vsel %vm372_vm1, %v3030_v7, %v3046_v2  ;;  %3059 = vrcp.f32 %v3844_v28 }
 0x454   :  { %3061 = vrcp.f32 %v3848_v62 }
 0x455   :  { %3063 = vrcp.f32 %v3881_v35 }
 0x456   :  { %v1043_v15 = vpop.xlane.xlu0 %1042  ;;  %v3048_v48 = vpop.eup %3047  ;;  %3065 = vrcp.f32 %v3894_v11 }
 0x457   :  { %v940_v16 = vpop.xlane.xlu1 %939  ;;  %v3050_v17 = vpop.eup %3049  ;;  %v1102_v52 = vsel %vm109_vm0, %v1086_v51, %v3048_v48  ;;  %3067 = vrcp.f32 %v819_v38 }
 0x458   :  { %v3052_v50 = vpop.eup %3051  ;;  %v1120_v20 = vsel %vm600_vm5, %v1104_v40, %v3050_v17  ;;  %3069 = vrcp.f32 %v931_v26 }
 0x459   :  { %v1119_v28 = vsel %vm600_vm5, %v1103_v9, %v3052_v50  ;;  %v1136_v63 = vmul.f32 %v3650_v6, %v1120_v20  ;;  %3071 = vrcp.f32 %v828_v46 }
 0x45a   :  { %v3054_v56 = vpop.eup %3053  ;;  %v3915_v32 = vpop.xlane.xlu0 %836  ;;  %v1135_v62 = vmul.f32 %v3629_v53, %v1119_v28  ;;  %3073 = vrcp.f32 %v1043_v15 }
 0x45b   :  { %v1052_v42 = vpop.xlane.xlu1 %1051  ;;  %v1118_v47 = vsel %vm600_vm5, %v1102_v52, %v3054_v56  ;;  %v3056_v54 = vpop.eup %3055  ;;  %3075 = vrcp.f32 %v940_v16 }
 0x45c   :  { %v1134_v37 = vmul.f32 %v3660_v49, %v1118_v47  ;;  %v1148_v49 = vpack.c.bf16 %v1136_v63, %v1135_v62  ;;  %v3058_v7 = vpop.eup %3057 }
 0x45d   :  { %v3060_v11 = vpop.eup %3059 }
 0x45e   :  { %v1147_v60 = vpack.c.bf16 %v1134_v37, %v1133_v44  ;;  %v949_v4 = vpop.xlane.xlu0 %948  ;;  %v3062_v10 = vpop.eup %3061 }
 0x45f   :  { %v822_v43 = vpop.xlane.xlu1 %821  ;;  %v3064_v6 = vpop.eup %3063 }
 0x460   :  { %1155 = vxpose.xlu0.c.b16.cont [3/4] (short) (narrow) %v1147_v60, 64  ;;  %3077 = vrcp.f32 %v822_v43  ;;  %v3066_v58 = vpop.eup %3065  ;;  %v1091_v52 = vsel %vm372_vm1, %v3056_v54, %v3064_v6 }
 0x461   :  { %v3068_v14 = vpop.eup %3067 }
 0x462   :  { %v831_v53 = vpop.xlane.xlu0 %830  ;;  %v3070_v21 = vpop.eup %3069  ;;  %v1089_v15 = vsel %vm372_vm1, %v3058_v7, %v3068_v14 }
 0x463   :  { %v934_v35 = vpop.xlane.xlu1 %933  ;;  %v3072_v31 = vpop.eup %3071  ;;  %v1105_v16 = vsel %vm109_vm0, %v1089_v15, %v3070_v21 }
 0x464   :  { %1156 = vxpose.xlu0.c.b16.end [4/4] (short) (narrow) %v1148_v49, 64  ;;  %3079 = vrcp.f32 %v934_v35  ;;  %v3074_v1 = vpop.eup %3073  ;;  %v1092_v50 = vsel %vm372_vm1, %v3060_v11, %v3072_v31 }
 0x465   :  { %3081 = vrcp.f32 %v1052_v42  ;;  %v3076_v46 = vpop.eup %3075  ;;  %v1121_v12 = vsel %vm600_vm5, %v1105_v16, %v3074_v1 }
 0x466   :  { %3083 = vrcp.f32 %v3898_v5  ;;  %v943_v27 = vpop.xlane.xlu0 %942  ;;  %v1108_v61 = vsel %vm109_vm0, %v1092_v50, %v3076_v46  ;;  %v1137_v47 = vmul.f32 %v3699_v3, %v1121_v12 }
 0x467   :  { %v1046_v38 = vpop.xlane.xlu1 %1045 }
 0x468   :  { %3085 = vrcp.f32 %v1046_v38 }
 0x469   :  { %3087 = vrcp.f32 %v3860_v0  ;;  %v1107_v0 = vsel %vm109_vm0, %v1091_v52, %v3066_v58 }
 0x46a   :  { %v3078_v33 = vpop.eup %3077  ;;  %3089 = vrcp.f32 %v3862_v24  ;;  %v1055_v42 = vpop.xlane.xlu0 %1054 }
 0x46b   :  { %v840_v26 = vpop.xlane.xlu1 %839  ;;  %v1090_v17 = vsel %vm372_vm1, %v3062_v10, %v3078_v33  ;;  %3091 = vrcp.f32 %v3866_v25 }
 0x46c   :  { %3093 = vrcp.f32 %v3915_v32 }
 0x46d   :  { %3095 = vrcp.f32 %v949_v4 }
 0x46e   :  { %v3080_v2 = vpop.eup %3079  ;;  %3097 = vrcp.f32 %v831_v53  ;;  %v1061_v9 = vpop.xlane.xlu0 %1060 }
 0x46f   :  { %v3082_v48 = vpop.eup %3081  ;;  %v952_v5 = vpop.xlane.xlu1 %951  ;;  %v1106_v29 = vsel %vm109_vm0, %v1090_v17, %v3080_v2  ;;  %3099 = vrcp.f32 %v943_v27 }
 0x470   :  { %v3084_v41 = vpop.eup %3083  ;;  %v1124_v40 = vsel %vm600_vm5, %v1108_v61, %v3082_v48  ;;  %3101 = vrcp.f32 %v1055_v42 }
 0x471   :  { %v1123_v24 = vsel %vm600_vm5, %v1107_v0, %v3084_v41  ;;  %v1140_v37 = vmul.f32 %v3706_v39, %v1124_v40  ;;  %v52_v40 = vld [vmem:[%s4676_s4 + $0x18] sm:$0xff] }
 0x472   :  { %v3086_v51 = vpop.eup %3085  ;;  %v1139_v25 = vmul.f32 %v3685_v36, %v1123_v24 }
 0x473   :  { %v1122_v56 = vsel %vm600_vm5, %v1106_v29, %v3086_v51  ;;  %v3088_v28 = vpop.eup %3087 }
 0x474   :  { %v1138_v45 = vmul.f32 %v3716_v57, %v1122_v56  ;;  %v1150_v57 = vpack.c.bf16 %v1140_v37, %v1139_v25  ;;  %v3090_v32 = vpop.eup %3089  ;;  %v51_v56 = vld [vmem:[%s4676_s4 + $0x10] sm:$0xff] }
 0x475   :  { %v834_v20 = vpop.xlane.xlu1 %833  ;;  %v3092_v63 = vpop.eup %3091 }
 0x476   :  { %v1149_v44 = vpack.c.bf16 %v1138_v45, %v1137_v47  ;;  %3103 = vrcp.f32 %v834_v20  ;;  %v3094_v39 = vpop.eup %3093  ;;  %v50_v45 = vld [vmem:[%s4676_s4 + $0x8] sm:$0xff] }
 0x477   :  { %v3096_v43 = vpop.eup %3095  ;;  %v1095_v31 = vsel %vm372_vm1, %v3088_v28, %v3094_v39 }
 0x478   :  { %1247 = vxpose.xlu1.c.b16.start [1/4] (short) (narrow) %v1149_v44, 64  ;;  %v3098_v36 = vpop.eup %3097  ;;  %v1111_v33 = vsel %vm109_vm0, %v1095_v31, %v3096_v43 }
 0x479   :  { %v946_v3 = vpop.xlane.xlu1 %945  ;;  %v3100_v4 = vpop.eup %3099  ;;  %v1093_v7 = vsel %vm372_vm1, %v3090_v32, %v3098_v36  ;;  %v55_v32 = vld [vmem:[%s4676_s4 + $0x30] sm:$0xff]  ;;  %v3998_v36 = vld [vmem:[%s4676_s4 + $0x38] sm:$0xff] }
 0x47a   :  { %3105 = vrcp.f32 %v946_v3  ;;  %v3102_v49 = vpop.eup %3101  ;;  %v1109_v10 = vsel %vm109_vm0, %v1093_v7, %v3100_v4 }
 0x47b   :  { %3107 = vrcp.f32 %v840_v26  ;;  %v1125_v58 = vsel %vm600_vm5, %v1109_v10, %v3102_v49  ;;  %v4003_v49 = vld [vmem:[%s4676_s4 + $0x28] sm:$0xff] }
 0x47c   :  { %1248 = vxpose.xlu1.c.b16.cont [2/4] (short) (narrow) %v1150_v57, 64  ;;  %3109 = vrcp.f32 %v1061_v9  ;;  %v1141_v1 = vmul.f32 %v3755_v8, %v1125_v58 }
 0x47d   :  { %v1058_v60 = vpop.xlane.xlu1 %1057 }
 0x47e   :  { %3111 = vrcp.f32 %v1058_v60 }
 0x47f   :  { %3113 = vrcp.f32 %v952_v5 }
 0x480   :  { %3115 = vrcp.f32 %v3864_v55  ;;  %v3104_v54 = vpop.eup %3103 }
 0x481   :  { %v1064_v62 = vpop.xlane.xlu1 %1063  ;;  %v1094_v38 = vsel %vm372_vm1, %v3092_v63, %v3104_v54  ;;  %v3993_v63 = vld [vmem:[%s4676_s4 + $0x20] sm:$0xff] }
 0x482   :  { %3117 = vrcp.f32 %v1064_v62 }
 0x484   :  { %v3106_v35 = vpop.eup %3105 }
 0x485   :  { %v3108_v11 = vpop.eup %3107  ;;  %v1110_v55 = vsel %vm109_vm0, %v1094_v38, %v3106_v35 }
 0x486   :  { %v3110_v6 = vpop.eup %3109 }
 0x487   :  { %v1127_v2 = vsel %vm600_vm5, %v1111_v33, %v3110_v6 }
 0x488   :  { %v3112_v53 = vpop.eup %3111  ;;  %v1143_v5 = vmul.f32 %v3741_v59, %v1127_v2 }
 0x489   :  { %v3114_v14 = vpop.eup %3113  ;;  %v1126_v21 = vsel %vm600_vm5, %v1110_v55, %v3112_v53 }
 0x48a   :  { %v3116_v26 = vpop.eup %3115  ;;  %v1142_v46 = vmul.f32 %v3776_v19, %v1126_v21 }
 0x48b   :  { %v1096_v27 = vsel %vm372_vm1, %v3116_v26, %v3108_v11 }
 0x48c   :  { %v3118_v15 = vpop.eup %3117  ;;  %v1151_v48 = vpack.c.bf16 %v1142_v46, %v1141_v1  ;;  %v1112_v16 = vsel %vm109_vm0, %v1096_v27, %v3114_v14 }
 0x48d   :  { %v1128_v41 = vsel %vm600_vm5, %v1112_v16, %v3118_v15 }
 0x48e   :  { %1249 = vxpose.xlu1.c.b16.cont [3/4] (short) (narrow) %v1151_v48, 64  ;;  %v1144_v17 = vmul.f32 %v3762_v13, %v1128_v41 }
 0x490   :  { %v1152_v8 = vpack.c.bf16 %v1144_v17, %v1143_v5 }
 0x492   :  { %1250 = vxpose.xlu1.c.b16.end [4/4] (short) (narrow) %v1152_v8, 64 }
 0x4be   :  { %v1161_v19 = vpop.trf.xlu0 }
 0x4bf   :  { %2821 = vmatprep.mubr.msk.bf16.mxu0 %vm1169_vm6, %v1161_v19 }
 0x4c2   :  { %v1162_v12 = vpop.trf.xlu0 }
 0x4c3   :  { %2822 = vmatmul.mubr.msk.bf16.vlgmr.msra.gmra.mrb[8].mxu0 %vm1169_vm6, %v1162_v12 }
 0x4c6   :  { %v1163_v50 = vpop.trf.xlu0 }
 0x4c7   :  { %2825 = vmatprep.mubr.msk.bf16.mxu0 %vm1169_vm6, %v1163_v50 }
 0x4ca   :  { %v1164_v51 = vpop.trf.xlu0 }
 0x4cb   :  { %2826 = vmatmul.mubr.msk.bf16.gmra.mrb[12].mxu0 %vm1169_vm6, %v1164_v51 }
 0x4cc   :  { %2853 = vmatprep.mubr.msk.bf16.mxu0 %vm109_vm0, %v3360_v22  ;;  %v49_v22 = vld [vmem:[%s4676_s4] sm:$0xff] }
 0x4ec   :  { %v1255_v59 = vpop.trf.xlu1 }
 0x4ed   :  { %2837 = vmatprep.mubr.msk.bf16.mxu1 %vm1169_vm6, %v1255_v59 }
 0x4f0   :  { %v1256_v13 = vpop.trf.xlu1 }
 0x4f1   :  { %2838 = vmatmul.mubr.msk.bf16.vlgmr.msra.gmra.mrb[24].mxu1 %vm1169_vm6, %v1256_v13 }
 0x4f4   :  { %v1257_v29 = vpop.trf.xlu1 }
 0x4f5   :  { %2841 = vmatprep.mubr.msk.bf16.mxu1 %vm1169_vm6, %v1257_v29 }
 0x4f8   :  { %v1258_v61 = vpop.trf.xlu1 }
 0x4f9   :  { %2842 = vmatmul.mubr.msk.bf16.gmra.mrb[28].mxu1 %vm1169_vm6, %v1258_v61 }
 0x4fa   :  { %2869 = vmatprep.mubr.msk.bf16.mxu1 %vm109_vm0, %v3362_v23 }
 0x596   :  { %v2823_v52 = vpop.f32.mrb[8].mxu0 }
 0x597   :  { %v1342_v42 = vmul.f32 %v2823_v52, %v51_v56  ;;  %v1216_v47 = vpop.f32.mrb[9].mxu0 }
 0x598   :  { %v1340_v23 = vmul.f32 %v1216_v47, %v49_v22  ;;  %v2824_v0 = vpop.f32.mrb[10].mxu0 }
 0x599   :  { %v1343_v20 = vmul.f32 %v2824_v0, %v52_v40  ;;  %v1219_v24 = vpop.f32.mrb[11].mxu0  ;;  %v1366_v37 = vmul.f32 0.35355338, %v1342_v42 }
 0x59a   :  { %v1341_v44 = vmul.f32 %v1219_v24, %v50_v45  ;;  %v1364_v9 = vmul.f32 0.35355338, %v1340_v23 }
 0x59b   :  { %v1357_v25 = vpack.c.bf16 %v1343_v20, %v1342_v42  ;;  %v1367_v3 = vmul.f32 0.35355338, %v1343_v20 }
 0x59c   :  { %v1356_v57 = vpack.c.bf16 %v1341_v44, %v1340_v23  ;;  %v1365_v28 = vmul.f32 0.35355338, %v1341_v44 }
 0x59d   :  { %v1381_v60 = vpack.c.bf16 %v1367_v3, %v1366_v37 }
 0x59e   :  { %v1380_v39 = vpack.c.bf16 %v1365_v28, %v1364_v9  ;;  %v2827_v43 = vpop.f32.mrb[12].mxu0  ;;  %v4686_v28 = vld [vmem:[#allocation4_spill] sm:$0xff] }
 0x59f   :  { %v1346_v62 = vmul.f32 %v2827_v43, %v55_v32  ;;  %v1232_v4 = vpop.f32.mrb[13].mxu0  ;;  %v1392_v1 = vsel %vm109_vm0, %v1381_v60, 0 }
 0x5a0   :  { %2933 = vmatprep.subr.msk.bf16.mxu0 %vm109_vm0, %v1380_v39  ;;  %v1389_v54 = vsel %vm109_vm0, %v1380_v39, 0  ;;  %v1344_v35 = vmul.f32 %v1232_v4, %v3993_v63  ;;  %v2828_v7 = vpop.f32.mrb[14].mxu0 }
 0x5a1   :  { %2846 = vmatpush3.bf16.xpose.msra.mxu0 %v1389_v54  ;;  %v1370_v11 = vmul.f32 0.35355338, %v1346_v62  ;;  %v1347_v10 = vmul.f32 %v2828_v7, %v3998_v36  ;;  %v1235_v6 = vpop.f32.mrb[15].mxu0 }
 0x5a2   :  { %2934 = vmatprep.subr.msk.bf16.mxu0 %vm109_vm0, %v1381_v60  ;;  %v1368_v38 = vmul.f32 0.35355338, %v1344_v35  ;;  %v1345_v58 = vmul.f32 %v1235_v6, %v4003_v49 }
 0x5a3   :  { %v1359_v53 = vpack.c.bf16 %v1347_v10, %v1346_v62  ;;  %v1371_v55 = vmul.f32 0.35355338, %v1347_v10 }
 0x5a4   :  { %v1358_v14 = vpack.c.bf16 %v1345_v58, %v1344_v35  ;;  %v1369_v21 = vmul.f32 0.35355338, %v1345_v58 }
 0x5a5   :  { %v1383_v31 = vpack.c.bf16 %v1371_v55, %v1370_v11 }
 0x5a6   :  { %v1382_v26 = vpack.c.bf16 %v1369_v21, %v1368_v38 }
 0x5a7   :  { %v1398_v33 = vsel %vm109_vm0, %v1383_v31, 0 }
 0x5a8   :  { %v1395_v46 = vsel %vm109_vm0, %v1382_v26, 0 }
 0x5a9   :  { %2848 = vmatpush3.bf16.xpose.msra.mxu0 %v1392_v1 }
 0x5aa   :  { %2935 = vmatprep.subr.msk.bf16.mxu0 %vm109_vm0, %v1382_v26 }
 0x5b1   :  { %2850 = vmatpush3.bf16.xpose.msra.mxu0 %v1395_v46 }
 0x5b2   :  { %2936 = vmatprep.subr.msk.bf16.mxu0 %vm109_vm0, %v1383_v31 }
 0x5b9   :  { %2852 = vmatpush3.bf16.xpose.msra.mxu0 %v1398_v33 }
 0x5ba   :  { %2877 = vmatprep.subr.bf16.mxu0 %v1356_v57 }
 0x5c0   :  { %2854 = vmatmul.mubr.msk.bf16.vlgmr.msra.gmra.mrb[16].mxu0 %vm109_vm0, %v3356_v18 }
 0x5c1   :  { %2857 = vmatprep.mubr.msk.bf16.mxu0 %vm109_vm0, %v3379_v34  ;;  %2878 = vmatpush3.bf16.msra.mxu0 %v1356_v57  ;;  %v4685_v57 = vld [vmem:[#allocation2_spill] sm:$0xff] }
 0x5c2   :  { %2879 = vmatprep.subr.bf16.mxu0 %v1357_v25 }
 0x5c4   :  { %v2839_v27 = vpop.f32.mrb[24].mxu1 }
 0x5c5   :  { %v1350_v2 = vmul.f32 %v2839_v27, %v51_v56  ;;  %v1309_v15 = vpop.f32.mrb[25].mxu1  ;;  %2880 = vmatpush3.bf16.msra.mxu0 %v1357_v25 }
 0x5c6   :  { %v1348_v48 = vmul.f32 %v1309_v15, %v49_v22  ;;  %v2840_v16 = vpop.f32.mrb[26].mxu1  ;;  %2881 = vmatprep.subr.bf16.mxu0 %v1358_v14 }
 0x5c7   :  { %v1374_v41 = vmul.f32 0.35355338, %v1350_v2  ;;  %v1351_v5 = vmul.f32 %v2840_v16, %v52_v40  ;;  %v1312_v17 = vpop.f32.mrb[27].mxu1 }
 0x5c8   :  { %v1372_v8 = vmul.f32 0.35355338, %v1348_v48  ;;  %v1349_v19 = vmul.f32 %v1312_v17, %v50_v45  ;;  %2858 = vmatmul.mubr.msk.bf16.gmra.mrb[20].mxu0 %vm109_vm0, %v3375_v30 }
 0x5c9   :  { %v1361_v18 = vpack.c.bf16 %v1351_v5, %v1350_v2  ;;  %v1375_v12 = vmul.f32 0.35355338, %v1351_v5  ;;  %2882 = vmatpush3.bf16.msra.mxu0 %v1358_v14 }
 0x5ca   :  { %v1360_v34 = vpack.c.bf16 %v1349_v19, %v1348_v48  ;;  %v1373_v50 = vmul.f32 0.35355338, %v1349_v19  ;;  %2883 = vmatprep.subr.bf16.mxu0 %v1359_v53 }
 0x5cb   :  { %v1385_v51 = vpack.c.bf16 %v1375_v12, %v1374_v41 }
 0x5cc   :  { %v1384_v59 = vpack.c.bf16 %v1373_v50, %v1372_v8  ;;  %v2843_v13 = vpop.f32.mrb[28].mxu1 }
 0x5cd   :  { %2884 = vmatpush3.bf16.msra.mxu0 %v1359_v53  ;;  %v1354_v29 = vmul.f32 %v2843_v13, %v55_v32  ;;  %v1325_v61 = vpop.f32.mrb[29].mxu1  ;;  %v1469_v25 = vsel %vm109_vm0, %v1385_v51, 0  ;;  %v4687_v32 = vld [vmem:[#allocation3_spill] sm:$0xff] }
 0x5ce   :  { %2937 = vmatprep.subr.msk.bf16.mxu1 %vm109_vm0, %v1384_v59  ;;  %v1466_v56 = vsel %vm109_vm0, %v1384_v59, 0  ;;  %v1352_v22 = vmul.f32 %v1325_v61, %v3993_v63  ;;  %v2844_v52 = vpop.f32.mrb[30].mxu1 }
 0x5cf   :  { %2862 = vmatpush3.bf16.xpose.msra.mxu1 %v1466_v56  ;;  %v1378_v30 = vmul.f32 0.35355338, %v1354_v29  ;;  %v1355_v40 = vmul.f32 %v2844_v52, %v3998_v36  ;;  %v1328_v42 = vpop.f32.mrb[31].mxu1 }
 0x5d0   :  { %v1376_v47 = vmul.f32 0.35355338, %v1352_v22  ;;  %2938 = vmatprep.subr.msk.bf16.mxu1 %vm109_vm0, %v1385_v51  ;;  %v1353_v45 = vmul.f32 %v1328_v42, %v4003_v49 }
 0x5d1   :  { %v1363_v23 = vpack.c.bf16 %v1355_v40, %v1354_v29  ;;  %v1379_v0 = vmul.f32 0.35355338, %v1355_v40 }
 0x5d2   :  { %v1362_v20 = vpack.c.bf16 %v1353_v45, %v1352_v22  ;;  %v1377_v24 = vmul.f32 0.35355338, %v1353_v45 }
 0x5d3   :  { %v1387_v44 = vpack.c.bf16 %v1379_v0, %v1378_v30 }
 0x5d4   :  { %v1386_v37 = vpack.c.bf16 %v1377_v24, %v1376_v47 }
 0x5d5   :  { %v1475_v9 = vsel %vm109_vm0, %v1387_v44, 0 }
 0x5d6   :  { %v1472_v3 = vsel %vm109_vm0, %v1386_v37, 0 }
 0x5d7   :  { %2864 = vmatpush3.bf16.xpose.msra.mxu1 %v1469_v25 }
 0x5d8   :  { %2939 = vmatprep.subr.msk.bf16.mxu1 %vm109_vm0, %v1386_v37 }
 0x5df   :  { %2866 = vmatpush3.bf16.xpose.msra.mxu1 %v1472_v3 }
 0x5e0   :  { %2940 = vmatprep.subr.msk.bf16.mxu1 %vm109_vm0, %v1387_v44 }
 0x5e7   :  { %2868 = vmatpush3.bf16.xpose.msra.mxu1 %v1475_v9 }
 0x5e8   :  { %2893 = vmatprep.subr.bf16.mxu1 %v1360_v34 }
 0x5ee   :  { %2870 = vmatmul.mubr.msk.bf16.vlgmr.msra.gmra.mrb[32].mxu1 %vm109_vm0, %v4685_v57 }
 0x5ef   :  { %2873 = vmatprep.mubr.msk.bf16.mxu1 %vm109_vm0, %v4686_v28  ;;  %2894 = vmatpush3.bf16.msra.mxu1 %v1360_v34 }
 0x5f0   :  { %2895 = vmatprep.subr.bf16.mxu1 %v1361_v18 }
 0x5f3   :  { %2896 = vmatpush3.bf16.msra.mxu1 %v1361_v18 }
 0x5f4   :  { %2897 = vmatprep.subr.bf16.mxu1 %v1362_v20 }
 0x5f6   :  { %2874 = vmatmul.mubr.msk.bf16.gmra.mrb[36].mxu1 %vm109_vm0, %v4687_v32 }
 0x5f7   :  { %2898 = vmatpush3.bf16.msra.mxu1 %v1362_v20 }
 0x5f8   :  { %2899 = vmatprep.subr.bf16.mxu1 %v1363_v23 }
 0x5fb   :  { %2900 = vmatpush3.bf16.msra.mxu1 %v1363_v23 }
 0x693   :  { %v4039_v60 = vpop.f32.mrb[16].mxu0 }
 0x694   :  { %v4041_v63 = vpop.f32.mrb[17].mxu0  ;;  %v1548_v39 = vsel %vm372_vm1, %v4039_v60, -inf  ;;  %v1596_v4 = vsel %vm421_vm2, %v4039_v60, -inf  ;;  %v1644_v7 = vsel %vm470_vm3, %v4039_v60, -inf  ;;  %v1692_v38 = vsel %vm519_vm4, %v4039_v60, -inf }
 0x695   :  { %1549 = vmax.xlane.f32.xlu0 %v1548_v39  ;;  %v4045_v43 = vpop.f32.mrb[18].mxu0  ;;  %v1542_v53 = vsel %vm372_vm1, %v4041_v63, -inf  ;;  %v1590_v14 = vsel %vm421_vm2, %v4041_v63, -inf  ;;  %v1638_v31 = vsel %vm470_vm3, %v4041_v63, -inf  ;;  %v1686_v1 = vsel %vm519_vm4, %v4041_v63, -inf }
 0x696   :  { %v4047_v36 = vpop.f32.mrb[19].mxu0  ;;  %v1551_v62 = vsel %vm372_vm1, %v4045_v43, -inf  ;;  %v1599_v49 = vsel %vm421_vm2, %v4045_v43, -inf  ;;  %v1647_v6 = vsel %vm470_vm3, %v4045_v43, -inf  ;;  %v1695_v58 = vsel %vm519_vm4, %v4045_v43, -inf }
 0x697   :  { %1552 = vmax.xlane.f32.xlu1 %v1551_v62  ;;  %v1545_v55 = vsel %vm372_vm1, %v4047_v36, -inf  ;;  %v1593_v21 = vsel %vm421_vm2, %v4047_v36, -inf  ;;  %v1641_v26 = vsel %vm470_vm3, %v4047_v36, -inf  ;;  %v1689_v46 = vsel %vm519_vm4, %v4047_v36, -inf }
 0x699   :  { %1597 = vmax.xlane.f32.xlu0 %v1596_v4 }
 0x69b   :  { %v4055_v54 = vpop.f32.mrb[20].mxu0  ;;  %1600 = vmax.xlane.f32.xlu1 %v1599_v49 }
 0x69c   :  { %v4057_v35 = vpop.f32.mrb[21].mxu0  ;;  %v1560_v33 = vsel %vm372_vm1, %v4055_v54, -inf  ;;  %v1608_v2 = vsel %vm421_vm2, %v4055_v54, -inf  ;;  %v1656_v48 = vsel %vm470_vm3, %v4055_v54, -inf  ;;  %v1704_v41 = vsel %vm519_vm4, %v4055_v54, -inf }
 0x69d   :  { %1645 = vmax.xlane.f32.xlu0 %v1644_v7  ;;  %v4061_v11 = vpop.f32.mrb[22].mxu0  ;;  %v1554_v12 = vsel %vm372_vm1, %v4057_v35, -inf  ;;  %v1602_v50 = vsel %vm421_vm2, %v4057_v35, -inf  ;;  %v1650_v56 = vsel %vm470_vm3, %v4057_v35, -inf  ;;  %v1698_v52 = vsel %vm519_vm4, %v4057_v35, -inf }
 0x69e   :  { %v4063_v10 = vpop.f32.mrb[23].mxu0  ;;  %v1563_v27 = vsel %vm372_vm1, %v4061_v11, -inf  ;;  %v1611_v15 = vsel %vm421_vm2, %v4061_v11, -inf  ;;  %v1659_v16 = vsel %vm470_vm3, %v4061_v11, -inf  ;;  %v1707_v8 = vsel %vm519_vm4, %v4061_v11, -inf }
 0x69f   :  { %1648 = vmax.xlane.f32.xlu1 %v1647_v6  ;;  %v1557_v34 = vsel %vm372_vm1, %v4063_v10, -inf  ;;  %v1605_v13 = vsel %vm421_vm2, %v4063_v10, -inf  ;;  %v1653_v22 = vsel %vm470_vm3, %v4063_v10, -inf  ;;  %v1701_v30 = vsel %vm519_vm4, %v4063_v10, -inf }
 0x6a1   :  { %1693 = vmax.xlane.f32.xlu0 %v1692_v38 }
 0x6a3   :  { %1696 = vmax.xlane.f32.xlu1 %v1695_v58 }
 0x6a5   :  { %1543 = vmax.xlane.f32.xlu0 %v1542_v53 }
 0x6a7   :  { %1546 = vmax.xlane.f32.xlu1 %v1545_v55 }
 0x6a9   :  { %1591 = vmax.xlane.f32.xlu0 %v1590_v14 }
 0x6ab   :  { %1594 = vmax.xlane.f32.xlu1 %v1593_v21 }
 0x6ad   :  { %1639 = vmax.xlane.f32.xlu0 %v1638_v31 }
 0x6af   :  { %1642 = vmax.xlane.f32.xlu1 %v1641_v26 }
 0x6b1   :  { %1687 = vmax.xlane.f32.xlu0 %v1686_v1 }
 0x6b3   :  { %1690 = vmax.xlane.f32.xlu1 %v1689_v46 }
 0x6b5   :  { %1561 = vmax.xlane.f32.xlu0 %v1560_v33 }
 0x6b7   :  { %1564 = vmax.xlane.f32.xlu1 %v1563_v27 }
 0x6b9   :  { %1609 = vmax.xlane.f32.xlu0 %v1608_v2 }
 0x6bb   :  { %1612 = vmax.xlane.f32.xlu1 %v1611_v15 }
 0x6bd   :  { %1657 = vmax.xlane.f32.xlu0 %v1656_v48 }
 0x6bf   :  { %1660 = vmax.xlane.f32.xlu1 %v1659_v16 }
 0x6c1   :  { %1705 = vmax.xlane.f32.xlu0 %v1704_v41  ;;  %v4101_v5 = vpop.f32.mrb[32].mxu1 }
 0x6c2   :  { %v4103_v17 = vpop.f32.mrb[33].mxu1  ;;  %v1572_v40 = vsel %vm372_vm1, %v4101_v5, -inf  ;;  %v1620_v47 = vsel %vm421_vm2, %v4101_v5, -inf  ;;  %v1668_v23 = vsel %vm470_vm3, %v4101_v5, -inf  ;;  %v1716_v20 = vsel %vm519_vm4, %v4101_v5, -inf }
 0x6c3   :  { %1708 = vmax.xlane.f32.xlu1 %v1707_v8  ;;  %v4107_v19 = vpop.f32.mrb[34].mxu1  ;;  %v1566_v44 = vsel %vm372_vm1, %v4103_v17, -inf  ;;  %v1614_v25 = vsel %vm421_vm2, %v4103_v17, -inf  ;;  %v1662_v9 = vsel %vm470_vm3, %v4103_v17, -inf  ;;  %v1710_v28 = vsel %vm519_vm4, %v4103_v17, -inf }
 0x6c4   :  { %v4109_v18 = vpop.f32.mrb[35].mxu1  ;;  %v1575_v42 = vsel %vm372_vm1, %v4107_v19, -inf  ;;  %v1623_v45 = vsel %vm421_vm2, %v4107_v19, -inf  ;;  %v1671_v0 = vsel %vm470_vm3, %v4107_v19, -inf  ;;  %v1719_v24 = vsel %vm519_vm4, %v4107_v19, -inf }
 0x6c5   :  { %1555 = vmax.xlane.f32.xlu0 %v1554_v12  ;;  %v1569_v37 = vsel %vm372_vm1, %v4109_v18, -inf  ;;  %v1617_v3 = vsel %vm421_vm2, %v4109_v18, -inf  ;;  %v1665_v57 = vsel %vm470_vm3, %v4109_v18, -inf  ;;  %v1713_v32 = vsel %vm519_vm4, %v4109_v18, -inf }
 0x6c7   :  { %1558 = vmax.xlane.f32.xlu1 %v1557_v34 }
 0x6c9   :  { %1603 = vmax.xlane.f32.xlu0 %v1602_v50  ;;  %v4117_v51 = vpop.f32.mrb[36].mxu1 }
 0x6ca   :  { %v4119_v59 = vpop.f32.mrb[37].mxu1  ;;  %v1584_v39 = vsel %vm372_vm1, %v4117_v51, -inf  ;;  %v1632_v4 = vsel %vm421_vm2, %v4117_v51, -inf  ;;  %v1680_v7 = vsel %vm470_vm3, %v4117_v51, -inf  ;;  %v1728_v38 = vsel %vm519_vm4, %v4117_v51, -inf }
 0x6cb   :  { %1606 = vmax.xlane.f32.xlu1 %v1605_v13  ;;  %v4123_v29 = vpop.f32.mrb[38].mxu1  ;;  %v1578_v53 = vsel %vm372_vm1, %v4119_v59, -inf  ;;  %v1626_v14 = vsel %vm421_vm2, %v4119_v59, -inf  ;;  %v1674_v31 = vsel %vm470_vm3, %v4119_v59, -inf  ;;  %v1722_v1 = vsel %vm519_vm4, %v4119_v59, -inf }
 0x6cc   :  { %v4125_v61 = vpop.f32.mrb[39].mxu1  ;;  %v1587_v62 = vsel %vm372_vm1, %v4123_v29, -inf  ;;  %v1635_v49 = vsel %vm421_vm2, %v4123_v29, -inf  ;;  %v1683_v6 = vsel %vm470_vm3, %v4123_v29, -inf  ;;  %v1731_v58 = vsel %vm519_vm4, %v4123_v29, -inf }
 0x6cd   :  { %1651 = vmax.xlane.f32.xlu0 %v1650_v56  ;;  %v1581_v55 = vsel %vm372_vm1, %v4125_v61, -inf  ;;  %v1629_v21 = vsel %vm421_vm2, %v4125_v61, -inf  ;;  %v1677_v26 = vsel %vm470_vm3, %v4125_v61, -inf  ;;  %v1725_v46 = vsel %vm519_vm4, %v4125_v61, -inf }
 0x6cf   :  { %1654 = vmax.xlane.f32.xlu1 %v1653_v22 }
 0x6d1   :  { %1699 = vmax.xlane.f32.xlu0 %v1698_v52 }
 0x6d3   :  { %1702 = vmax.xlane.f32.xlu1 %v1701_v30 }
 0x6d5   :  { %1573 = vmax.xlane.f32.xlu0 %v1572_v40 }
 0x6d7   :  { %1576 = vmax.xlane.f32.xlu1 %v1575_v42 }
 0x6d9   :  { %1621 = vmax.xlane.f32.xlu0 %v1620_v47 }
 0x6db   :  { %1624 = vmax.xlane.f32.xlu1 %v1623_v45 }
 0x6dd   :  { %1669 = vmax.xlane.f32.xlu0 %v1668_v23 }
 0x6df   :  { %1672 = vmax.xlane.f32.xlu1 %v1671_v0 }
 0x6e1   :  { %1717 = vmax.xlane.f32.xlu0 %v1716_v20 }
 0x6e3   :  { %1720 = vmax.xlane.f32.xlu1 %v1719_v24 }
 0x6e5   :  { %1567 = vmax.xlane.f32.xlu0 %v1566_v44 }
 0x6e7   :  { %1570 = vmax.xlane.f32.xlu1 %v1569_v37 }
 0x6e9   :  { %1615 = vmax.xlane.f32.xlu0 %v1614_v25 }
 0x6eb   :  { %1618 = vmax.xlane.f32.xlu1 %v1617_v3 }
 0x6ed   :  { %1663 = vmax.xlane.f32.xlu0 %v1662_v9 }
 0x6ef   :  { %1666 = vmax.xlane.f32.xlu1 %v1665_v57 }
 0x6f1   :  { %1711 = vmax.xlane.f32.xlu0 %v1710_v28 }
 0x6f3   :  { %1714 = vmax.xlane.f32.xlu1 %v1713_v32 }
 0x6f5   :  { %1585 = vmax.xlane.f32.xlu0 %v1584_v39 }
 0x6f7   :  { %1588 = vmax.xlane.f32.xlu1 %v1587_v62 }
 0x6f9   :  { %1633 = vmax.xlane.f32.xlu0 %v1632_v4 }
 0x6fb   :  { %1636 = vmax.xlane.f32.xlu1 %v1635_v49 }
 0x6fd   :  { %1681 = vmax.xlane.f32.xlu0 %v1680_v7 }
 0x6ff   :  { %1684 = vmax.xlane.f32.xlu1 %v1683_v6 }
 0x701   :  { %1729 = vmax.xlane.f32.xlu0 %v1728_v38 }
 0x703   :  { %1732 = vmax.xlane.f32.xlu1 %v1731_v58 }
 0x705   :  { %1579 = vmax.xlane.f32.xlu0 %v1578_v53 }
 0x707   :  { %1582 = vmax.xlane.f32.xlu1 %v1581_v55 }
 0x709   :  { %1627 = vmax.xlane.f32.xlu0 %v1626_v14 }
 0x70b   :  { %1630 = vmax.xlane.f32.xlu1 %v1629_v21 }
 0x70d   :  { %1675 = vmax.xlane.f32.xlu0 %v1674_v31 }
 0x70f   :  { %1678 = vmax.xlane.f32.xlu1 %v1677_v26 }
 0x711   :  { %1723 = vmax.xlane.f32.xlu0 %v1722_v1 }
 0x713   :  { %1726 = vmax.xlane.f32.xlu1 %v1725_v46 }
 0x722   :  { %v1550_v33 = vpop.xlane.xlu0 %1549 }
 0x724   :  { %v1553_v27 = vpop.xlane.xlu1 %1552 }
 0x726   :  { %v1598_v2 = vpop.xlane.xlu0 %1597 }
 0x727   :  { %v1736_v41 = vsel %vm372_vm1, %v1550_v33, %v1598_v2 }
 0x728   :  { %v1601_v15 = vpop.xlane.xlu1 %1600 }
 0x729   :  { %v1737_v34 = vsel %vm372_vm1, %v1553_v27, %v1601_v15 }
 0x72a   :  { %v1646_v48 = vpop.xlane.xlu0 %1645 }
 0x72b   :  { %v1752_v8 = vsel %vm109_vm0, %v1736_v41, %v1646_v48 }
 0x72c   :  { %v1649_v16 = vpop.xlane.xlu1 %1648 }
 0x72d   :  { %v1753_v13 = vsel %vm109_vm0, %v1737_v34, %v1649_v16 }
 0x72e   :  { %v1694_v12 = vpop.xlane.xlu0 %1693 }
 0x72f   :  { %v1768_v50 = vsel %vm600_vm5, %v1752_v8, %v1694_v12 }
 0x730   :  { %v1784_v56 = vsub.f32 %v4039_v60, %v1768_v50  ;;  %v1697_v22 = vpop.xlane.xlu1 %1696 }
 0x731   :  { %v1769_v52 = vsel %vm600_vm5, %v1753_v13, %v1697_v22 }
 0x732   :  { %v1802_v30 = vmul.f32 1.442695, %v1784_v56  ;;  %v1785_v40 = vsub.f32 %v4045_v43, %v1769_v52  ;;  %v1544_v42 = vpop.xlane.xlu0 %1543 }
 0x734   :  { %3119 = vpow2.f32 %v1802_v30  ;;  %v1804_v47 = vmul.f32 1.442695, %v1785_v40  ;;  %v1547_v45 = vpop.xlane.xlu1 %1546 }
 0x736   :  { %v1592_v23 = vpop.xlane.xlu0 %1591  ;;  %3121 = vpow2.f32 %v1804_v47 }
 0x737   :  { %v1734_v44 = vsel %vm372_vm1, %v1544_v42, %v1592_v23 }
 0x738   :  { %v1595_v0 = vpop.xlane.xlu1 %1594 }
 0x739   :  { %v1735_v3 = vsel %vm372_vm1, %v1547_v45, %v1595_v0 }
 0x73a   :  { %v1640_v20 = vpop.xlane.xlu0 %1639 }
 0x73b   :  { %v1750_v60 = vsel %vm109_vm0, %v1734_v44, %v1640_v20 }
 0x73c   :  { %v1643_v24 = vpop.xlane.xlu1 %1642 }
 0x73d   :  { %v1751_v9 = vsel %vm109_vm0, %v1735_v3, %v1643_v24 }
 0x73e   :  { %v4208_v37 = vpop.eup %3119  ;;  %v1688_v25 = vpop.xlane.xlu0 %1687 }
 0x73f   :  { %v1766_v43 = vsel %vm600_vm5, %v1750_v60, %v1688_v25  ;;  %2026 = vrot.lane.b32.xlu0 %v4208_v37, %s3280_s2  ;;  %1914 = vrot.lane.b32.xlu1 %v4208_v37, %s3279_s0  ;;  %v1836_v1 = vsel %vm372_vm1, %v4208_v37, 0.0 }
 0x740   :  { %v1782_v57 = vsub.f32 %v4041_v63, %v1766_v43  ;;  %v1691_v28 = vpop.xlane.xlu1 %1690  ;;  %v4220_v39 = vpop.eup %3121 }
 0x741   :  { %v1767_v32 = vsel %vm600_vm5, %v1751_v9, %v1691_v28  ;;  %v1839_v12 = vsel %vm372_vm1, %v4220_v39, 0.0 }
 0x742   :  { %v1798_v62 = vmul.f32 1.442695, %v1782_v57  ;;  %v1783_v4 = vsub.f32 %v4047_v36, %v1767_v32  ;;  %v1562_v7 = vpop.xlane.xlu0 %1561 }
 0x743   :  { %2138 = vrot.lane.b32.xlu0 %v4208_v37, %s3281_s16  ;;  %1916 = vrot.lane.b32.xlu1 %v4220_v39, %s3279_s0 }
 0x744   :  { %3123 = vpow2.f32 %v1798_v62  ;;  %v1800_v49 = vmul.f32 1.442695, %v1783_v4  ;;  %v1565_v6 = vpop.xlane.xlu1 %1564 }
 0x746   :  { %3125 = vpow2.f32 %v1800_v49  ;;  %v1610_v38 = vpop.xlane.xlu0 %1609 }
 0x747   :  { %2028 = vrot.lane.b32.xlu1 %v4220_v39, %s3280_s2  ;;  %v1740_v33 = vsel %vm372_vm1, %v1562_v7, %v1610_v38 }
 0x748   :  { %v1613_v58 = vpop.xlane.xlu1 %1612 }
 0x749   :  { %v1741_v48 = vsel %vm372_vm1, %v1565_v6, %v1613_v58 }
 0x74a   :  { %v1658_v53 = vpop.xlane.xlu0 %1657 }
 0x74b   :  { %2140 = vrot.lane.b32.xlu1 %v4220_v39, %s3281_s16  ;;  %v1756_v27 = vsel %vm109_vm0, %v1740_v33, %v1658_v53 }
 0x74c   :  { %v1661_v55 = vpop.xlane.xlu1 %1660 }
 0x74d   :  { %v1757_v41 = vsel %vm109_vm0, %v1741_v48, %v1661_v55 }
 0x74e   :  { %v4231_v63 = vpop.eup %3123  ;;  %v1706_v14 = vpop.xlane.xlu0 %1705 }
 0x74f   :  { %1910 = vrot.lane.b32.xlu0 %v4231_v63, %s3279_s0  ;;  %v1830_v15 = vsel %vm372_vm1, %v4231_v63, 0.0  ;;  %v1772_v16 = vsel %vm600_vm5, %v1756_v27, %v1706_v14 }
 0x750   :  { %v4235_v36 = vpop.eup %3125  ;;  %v1709_v21 = vpop.xlane.xlu1 %1708  ;;  %v1788_v34 = vsub.f32 %v4055_v54, %v1772_v16 }
 0x751   :  { %1912 = vrot.lane.b32.xlu1 %v4235_v36, %s3279_s0  ;;  %v1773_v8 = vsel %vm600_vm5, %v1757_v41, %v1709_v21  ;;  %v1833_v22 = vsel %vm372_vm1, %v4235_v36, 0.0 }
 0x752   :  { %v1556_v31 = vpop.xlane.xlu0 %1555  ;;  %v1789_v13 = vsub.f32 %v4061_v11, %v1773_v8  ;;  %v1810_v52 = vmul.f32 1.442695, %v1788_v34 }
 0x753   :  { %2022 = vrot.lane.b32.xlu0 %v4231_v63, %s3280_s2 }
 0x754   :  { %v1559_v26 = vpop.xlane.xlu1 %1558  ;;  %v1812_v30 = vmul.f32 1.442695, %v1789_v13  ;;  %3127 = vpow2.f32 %v1810_v52 }
 0x755   :  { %2024 = vrot.lane.b32.xlu1 %v4235_v36, %s3280_s2 }
 0x756   :  { %v1604_v46 = vpop.xlane.xlu0 %1603  ;;  %3129 = vpow2.f32 %v1812_v30 }
 0x757   :  { %2134 = vrot.lane.b32.xlu0 %v4231_v63, %s3281_s16  ;;  %v1738_v42 = vsel %vm372_vm1, %v1556_v31, %v1604_v46 }
 0x758   :  { %v1607_v2 = vpop.xlane.xlu1 %1606 }
 0x759   :  { %2136 = vrot.lane.b32.xlu1 %v4235_v36, %s3281_s16  ;;  %v1739_v54 = vsel %vm372_vm1, %v1559_v26, %v1607_v2 }
 0x75a   :  { %v1652_v50 = vpop.xlane.xlu0 %1651 }
 0x75b   :  { %v1754_v47 = vsel %vm109_vm0, %v1738_v42, %v1652_v50 }
 0x75c   :  { %v1655_v56 = vpop.xlane.xlu1 %1654 }
 0x75d   :  { %v1755_v11 = vsel %vm109_vm0, %v1739_v54, %v1655_v56 }
 0x75e   :  { %v1700_v40 = vpop.xlane.xlu0 %1699  ;;  %v4271_v60 = vpop.eup %3127 }
 0x75f   :  { %v1770_v23 = vsel %vm600_vm5, %v1754_v47, %v1700_v40  ;;  %v1848_v38 = vsel %vm372_vm1, %v4271_v60, 0.0 }
 0x760   :  { %v1703_v45 = vpop.xlane.xlu1 %1702  ;;  %v1786_v20 = vsub.f32 %v4057_v35, %v1770_v23  ;;  %v4275_v3 = vpop.eup %3129 }
 0x761   :  { %v1771_v0 = vsel %vm600_vm5, %v1755_v11, %v1703_v45  ;;  %v1851_v33 = vsel %vm372_vm1, %v4275_v3, 0.0 }
 0x762   :  { %v1787_v24 = vsub.f32 %v4063_v10, %v1771_v0  ;;  %v1806_v44 = vmul.f32 1.442695, %v1786_v20  ;;  %v1574_v43 = vpop.xlane.xlu0 %1573 }
 0x764   :  { %v1808_v25 = vmul.f32 1.442695, %v1787_v24  ;;  %3131 = vpow2.f32 %v1806_v44  ;;  %v1577_v9 = vpop.xlane.xlu1 %1576 }
 0x766   :  { %3133 = vpow2.f32 %v1808_v25  ;;  %v1622_v57 = vpop.xlane.xlu0 %1621 }
 0x767   :  { %v1744_v53 = vsel %vm372_vm1, %v1574_v43, %v1622_v57 }
 0x768   :  { %v1625_v28 = vpop.xlane.xlu1 %1624 }
 0x769   :  { %v1745_v31 = vsel %vm372_vm1, %v1577_v9, %v1625_v28 }
 0x76a   :  { %v1670_v32 = vpop.xlane.xlu0 %1669 }
 0x76b   :  { %v1760_v55 = vsel %vm109_vm0, %v1744_v53, %v1670_v32 }
 0x76c   :  { %v1673_v62 = vpop.xlane.xlu1 %1672 }
 0x76e   :  { %v4287_v35 = vpop.eup %3131  ;;  %v1718_v4 = vpop.xlane.xlu0 %1717 }
 0x76f   :  { %v1842_v21 = vsel %vm372_vm1, %v4287_v35, 0.0  ;;  %v1776_v26 = vsel %vm600_vm5, %v1760_v55, %v1718_v4 }
 0x770   :  { %v4291_v10 = vpop.eup %3133  ;;  %v1721_v49 = vpop.xlane.xlu1 %1720  ;;  %v1792_v27 = vsub.f32 %v4101_v5, %v1776_v26 }
 0x771   :  { %v1845_v16 = vsel %vm372_vm1, %v4291_v10, 0.0 }
 0x772   :  { %v1568_v7 = vpop.xlane.xlu0 %1567  ;;  %v1818_v41 = vmul.f32 1.442695, %v1792_v27 }
 0x774   :  { %v1571_v6 = vpop.xlane.xlu1 %1570  ;;  %3135 = vpow2.f32 %v1818_v41 }
 0x776   :  { %1837 = vadd.xlane.f32.xlu0 %v1836_v1  ;;  %v1616_v58 = vpop.xlane.xlu0 %1615  ;;  %v1761_v1 = vsel %vm109_vm0, %v1745_v31, %v1673_v62 }
 0x777   :  { %v1777_v46 = vsel %vm600_vm5, %v1761_v1, %v1721_v49  ;;  %v1742_v34 = vsel %vm372_vm1, %v1568_v7, %v1616_v58 }
 0x778   :  { %v1619_v14 = vpop.xlane.xlu1 %1618 }
 0x779   :  { %v1743_v5 = vsel %vm372_vm1, %v1571_v6, %v1619_v14 }
 0x77a   :  { %1831 = vadd.xlane.f32.xlu0 %v1830_v15  ;;  %v1664_v2 = vpop.xlane.xlu0 %1663  ;;  %v1793_v15 = vsub.f32 %v4107_v19, %v1777_v46 }
 0x77b   :  { %v1758_v50 = vsel %vm109_vm0, %v1742_v34, %v1664_v2 }
 0x77c   :  { %v1667_v48 = vpop.xlane.xlu1 %1666  ;;  %v1820_v8 = vmul.f32 1.442695, %v1793_v15 }
 0x77d   :  { %1840 = vadd.xlane.f32.xlu1 %v1839_v12  ;;  %v1759_v19 = vsel %vm109_vm0, %v1743_v5, %v1667_v48 }
 0x77e   :  { %v1712_v12 = vpop.xlane.xlu0 %1711  ;;  %3137 = vpow2.f32 %v1820_v8  ;;  %v4327_v42 = vpop.eup %3135 }
 0x77f   :  { %v1774_v56 = vsel %vm600_vm5, %v1758_v50, %v1712_v12  ;;  %v1860_v57 = vsel %vm372_vm1, %v4327_v42, 0.0 }
 0x780   :  { %v1715_v13 = vpop.xlane.xlu1 %1714  ;;  %v1790_v52 = vsub.f32 %v4103_v17, %v1774_v56 }
 0x781   :  { %1834 = vadd.xlane.f32.xlu1 %v1833_v22  ;;  %v1775_v22 = vsel %vm600_vm5, %v1759_v19, %v1715_v13 }
 0x782   :  { %v1791_v30 = vsub.f32 %v4109_v18, %v1775_v22  ;;  %v1814_v40 = vmul.f32 1.442695, %v1790_v52  ;;  %v1586_v54 = vpop.xlane.xlu0 %1585 }
 0x784   :  { %v1816_v47 = vmul.f32 1.442695, %v1791_v30  ;;  %3139 = vpow2.f32 %v1814_v40  ;;  %v1589_v23 = vpop.xlane.xlu1 %1588 }
 0x786   :  { %3141 = vpow2.f32 %v1816_v47  ;;  %v1634_v11 = vpop.xlane.xlu0 %1633 }
 0x787   :  { %v1748_v32 = vsel %vm372_vm1, %v1586_v54, %v1634_v11 }
 0x788   :  { %v4331_v45 = vpop.eup %3137  ;;  %v1637_v0 = vpop.xlane.xlu1 %1636 }
 0x789   :  { %v1749_v7 = vsel %vm372_vm1, %v1589_v23, %v1637_v0  ;;  %v1863_v53 = vsel %vm372_vm1, %v4331_v45, 0.0 }
 0x78a   :  { %v1682_v20 = vpop.xlane.xlu0 %1681 }
 0x78b   :  { %v1764_v4 = vsel %vm109_vm0, %v1748_v32, %v1682_v20 }
 0x78c   :  { %v1685_v24 = vpop.xlane.xlu1 %1684 }
 0x78e   :  { %v4343_v17 = vpop.eup %3139  ;;  %v1730_v44 = vpop.xlane.xlu0 %1729 }
 0x78f   :  { %v1854_v49 = vsel %vm372_vm1, %v4343_v17, 0.0  ;;  %v1780_v6 = vsel %vm600_vm5, %v1764_v4, %v1730_v44 }
 0x790   :  { %1922 = vrot.lane.b32.xlu0 %v4271_v60, %s3279_s0  ;;  %v4347_v18 = vpop.eup %3141  ;;  %v1733_v25 = vpop.xlane.xlu1 %1732  ;;  %v1796_v55 = vsub.f32 %v4117_v51, %v1780_v6 }
 0x791   :  { %v1857_v26 = vsel %vm372_vm1, %v4347_v18, 0.0 }
 0x792   :  { %1924 = vrot.lane.b32.xlu1 %v4275_v3, %s3279_s0  ;;  %v1580_v43 = vpop.xlane.xlu0 %1579  ;;  %v1826_v1 = vmul.f32 1.442695, %v1796_v55 }
 0x794   :  { %2034 = vrot.lane.b32.xlu0 %v4271_v60, %s3280_s2  ;;  %v1583_v9 = vpop.xlane.xlu1 %1582  ;;  %3143 = vpow2.f32 %v1826_v1 }
 0x796   :  { %2036 = vrot.lane.b32.xlu1 %v4275_v3, %s3280_s2  ;;  %v1628_v28 = vpop.xlane.xlu0 %1627 }
 0x797   :  { %v1746_v27 = vsel %vm372_vm1, %v1580_v43, %v1628_v28 }
 0x798   :  { %2146 = vrot.lane.b32.xlu0 %v4271_v60, %s3281_s16  ;;  %v1631_v62 = vpop.xlane.xlu1 %1630 }
 0x799   :  { %v1747_v51 = vsel %vm372_vm1, %v1583_v9, %v1631_v62 }
 0x79a   :  { %2148 = vrot.lane.b32.xlu1 %v4275_v3, %s3281_s16  ;;  %v1676_v14 = vpop.xlane.xlu0 %1675 }
 0x79b   :  { %v1762_v15 = vsel %vm109_vm0, %v1746_v27, %v1676_v14 }
 0x79c   :  { %1918 = vrot.lane.b32.xlu0 %v4287_v35, %s3279_s0 }
 0x79e   :  { %1920 = vrot.lane.b32.xlu1 %v4291_v10, %s3279_s0  ;;  %v4383_v5 = vpop.eup %3143 }
 0x79f   :  { %v1872_v62 = vsel %vm372_vm1, %v4383_v5, 0.0 }
 0x7a0   :  { %2030 = vrot.lane.b32.xlu0 %v4287_v35, %s3280_s2 }
 0x7a2   :  { %2032 = vrot.lane.b32.xlu1 %v4291_v10, %s3280_s2 }
 0x7a4   :  { %2142 = vrot.lane.b32.xlu0 %v4287_v35, %s3281_s16 }
 0x7a6   :  { %2144 = vrot.lane.b32.xlu1 %v4291_v10, %s3281_s16 }
 0x7c3   :  { %1849 = vadd.xlane.f32.xlu0 %v1848_v38  ;;  %v1765_v38 = vsel %vm109_vm0, %v1749_v7, %v1685_v24 }
 0x7c4   :  { %v1781_v58 = vsel %vm600_vm5, %v1765_v38, %v1733_v25 }
 0x7c5   :  { %v1797_v31 = vsub.f32 %v4123_v29, %v1781_v58 }
 0x7c7   :  { %1843 = vadd.xlane.f32.xlu0 %v1842_v21  ;;  %v1679_v21 = vpop.xlane.xlu1 %1678  ;;  %v1828_v46 = vmul.f32 1.442695, %v1797_v31 }
 0x7c8   :  { %v1763_v29 = vsel %vm109_vm0, %v1747_v51, %v1679_v21 }
 0x7c9   :  { %3145 = vpow2.f32 %v1828_v46 }
 0x7ca   :  { %1852 = vadd.xlane.f32.xlu1 %v1851_v33  ;;  %v1724_v33 = vpop.xlane.xlu0 %1723 }
 0x7cb   :  { %v1727_v2 = vpop.xlane.xlu1 %1726  ;;  %v1778_v48 = vsel %vm600_vm5, %v1762_v15, %v1724_v33 }
 0x7cc   :  { %v1794_v8 = vsub.f32 %v4119_v59, %v1778_v48 }
 0x7ce   :  { %1846 = vadd.xlane.f32.xlu1 %v1845_v16  ;;  %v1779_v16 = vsel %vm600_vm5, %v1763_v29, %v1727_v2  ;;  %v1822_v34 = vmul.f32 1.442695, %v1794_v8  ;;  %v2027_v50 = vpop.permute.xlu0 %2026 }
 0x7cf   :  { %v1915_v41 = vpop.permute.xlu1 %1914  ;;  %v1795_v12 = vsub.f32 %v4125_v61, %v1779_v16  ;;  %v2076_v14 = vsel %vm372_vm1, %v2027_v50, 0.0 }
 0x7d0   :  { %3147 = vpow2.f32 %v1822_v34  ;;  %v1964_v38 = vsel %vm372_vm1, %v1915_v41, 0.0 }
 0x7d1   :  { %v1824_v56 = vmul.f32 1.442695, %v1795_v12 }
 0x7d2   :  { %v2139_v22 = vpop.permute.xlu0 %2138 }
 0x7d3   :  { %v1917_v13 = vpop.permute.xlu1 %1916  ;;  %v4387_v19 = vpop.eup %3145  ;;  %3149 = vpow2.f32 %v1824_v56  ;;  %v2188_v1 = vsel %vm372_vm1, %v2139_v22, 0.0 }
 0x7d4   :  { %v1875_v6 = vsel %vm372_vm1, %v4387_v19, 0.0  ;;  %v1967_v31 = vsel %vm372_vm1, %v1917_v13, 0.0 }
 0x7d6   :  { %v1911_v61 = vpop.permute.xlu0 %1910 }
 0x7d7   :  { %v2029_v59 = vpop.permute.xlu1 %2028  ;;  %v1958_v27 = vsel %vm372_vm1, %v1911_v61, 0.0 }
 0x7d8   :  { %v2079_v33 = vsel %vm372_vm1, %v2029_v59, 0.0 }
 0x7da   :  { %v4399_v30 = vpop.eup %3147  ;;  %v2023_v47 = vpop.permute.xlu0 %2022 }
 0x7db   :  { %v2141_v52 = vpop.permute.xlu1 %2140  ;;  %v1866_v7 = vsel %vm372_vm1, %v4399_v30, 0.0  ;;  %v2070_v51 = vsel %vm372_vm1, %v2023_v47, 0.0 }
 0x7dc   :  { %v2191_v15 = vsel %vm372_vm1, %v2141_v52, 0.0 }
 0x7dd   :  { %1930 = vrot.lane.b32.xlu0 %v4327_v42, %s3279_s0  ;;  %v4403_v40 = vpop.eup %3149 }
 0x7de   :  { %v2135_v23 = vpop.permute.xlu0 %2134  ;;  %v1869_v55 = vsel %vm372_vm1, %v4403_v40, 0.0 }
 0x7df   :  { %1932 = vrot.lane.b32.xlu1 %v4331_v45, %s3279_s0  ;;  %v1913_v54 = vpop.permute.xlu1 %1912  ;;  %v2182_v41 = vsel %vm372_vm1, %v2135_v23, 0.0 }
 0x7e0   :  { %v1961_v50 = vsel %vm372_vm1, %v1913_v54, 0.0 }
 0x7e1   :  { %2042 = vrot.lane.b32.xlu0 %v4327_v42, %s3280_s2 }
 0x7e3   :  { %2044 = vrot.lane.b32.xlu1 %v4331_v45, %s3280_s2  ;;  %v2025_v11 = vpop.permute.xlu1 %2024 }
 0x7e4   :  { %v2073_v16 = vsel %vm372_vm1, %v2025_v11, 0.0 }
 0x7e5   :  { %2154 = vrot.lane.b32.xlu0 %v4327_v42, %s3281_s16 }
 0x7e7   :  { %2156 = vrot.lane.b32.xlu1 %v4331_v45, %s3281_s16  ;;  %v2137_v20 = vpop.permute.xlu1 %2136 }
 0x7e8   :  { %v2185_v12 = vsel %vm372_vm1, %v2137_v20, 0.0 }
 0x7e9   :  { %1926 = vrot.lane.b32.xlu0 %v4343_v17, %s3279_s0 }
 0x7eb   :  { %1928 = vrot.lane.b32.xlu1 %v4347_v18, %s3279_s0 }
 0x7ed   :  { %2038 = vrot.lane.b32.xlu0 %v4343_v17, %s3280_s2 }
 0x7ef   :  { %2040 = vrot.lane.b32.xlu1 %v4347_v18, %s3280_s2 }
 0x7f1   :  { %2150 = vrot.lane.b32.xlu0 %v4343_v17, %s3281_s16 }
 0x7f3   :  { %2152 = vrot.lane.b32.xlu1 %v4347_v18, %s3281_s16 }
 0x803   :  { %v4415_v0 = vpop.xlane.xlu0 %1837 }
 0x804   :  { %3151 = vrcp.f32 %v4415_v0 }
 0x807   :  { %v4417_v24 = vpop.xlane.xlu0 %1831 }
 0x808   :  { %3153 = vrcp.f32 %v4417_v24 }
 0x80a   :  { %v4419_v44 = vpop.xlane.xlu1 %1840 }
 0x80b   :  { %v1923_v25 = vpop.permute.xlu0 %1922  ;;  %3155 = vrcp.f32 %v4419_v44 }
 0x80c   :  { %v1976_v56 = vsel %vm372_vm1, %v1923_v25, 0.0 }
 0x80e   :  { %v4421_v43 = vpop.xlane.xlu1 %1834 }
 0x80f   :  { %v2035_v9 = vpop.permute.xlu0 %2034  ;;  %3157 = vrcp.f32 %v4421_v43 }
 0x810   :  { %1861 = vadd.xlane.f32.xlu0 %v1860_v57  ;;  %v2088_v52 = vsel %vm372_vm1, %v2035_v9, 0.0 }
 0x812   :  { %v1925_v57 = vpop.permute.xlu1 %1924 }
 0x813   :  { %v2147_v28 = vpop.permute.xlu0 %2146  ;;  %v1979_v13 = vsel %vm372_vm1, %v1925_v57, 0.0 }
 0x814   :  { %1855 = vadd.xlane.f32.xlu0 %v1854_v49  ;;  %v2200_v54 = vsel %vm372_vm1, %v2147_v28, 0.0 }
 0x816   :  { %v2037_v32 = vpop.permute.xlu1 %2036 }
 0x817   :  { %1864 = vadd.xlane.f32.xlu1 %v1863_v53  ;;  %v1919_v4 = vpop.permute.xlu0 %1918  ;;  %v2091_v61 = vsel %vm372_vm1, %v2037_v32, 0.0 }
 0x818   :  { %v1970_v25 = vsel %vm372_vm1, %v1919_v4, 0.0 }
 0x81a   :  { %v2149_v49 = vpop.permute.xlu1 %2148 }
 0x81b   :  { %1858 = vadd.xlane.f32.xlu1 %v1857_v26  ;;  %v2031_v58 = vpop.permute.xlu0 %2030  ;;  %v2203_v47 = vsel %vm372_vm1, %v2149_v49, 0.0 }
 0x81e   :  { %v1921_v53 = vpop.permute.xlu1 %1920 }
 0x81f   :  { %v2143_v21 = vpop.permute.xlu0 %2142  ;;  %v1973_v20 = vsel %vm372_vm1, %v1921_v53, 0.0 }
 0x822   :  { %v2033_v26 = vpop.permute.xlu1 %2032 }
 0x823   :  { %v2085_v9 = vsel %vm372_vm1, %v2033_v26, 0.0 }
 0x826   :  { %v2145_v2 = vpop.permute.xlu1 %2144 }
 0x827   :  { %v2197_v49 = vsel %vm372_vm1, %v2145_v2, 0.0 }
 0x82a   :  { %1938 = vrot.lane.b32.xlu0 %v4383_v5, %s3279_s0 }
 0x82c   :  { %1940 = vrot.lane.b32.xlu1 %v4387_v19, %s3279_s0 }
 0x82e   :  { %2050 = vrot.lane.b32.xlu0 %v4383_v5, %s3280_s2 }
 0x830   :  { %2052 = vrot.lane.b32.xlu1 %v4387_v19, %s3280_s2 }
 0x832   :  { %2162 = vrot.lane.b32.xlu0 %v4383_v5, %s3281_s16 }
 0x834   :  { %2164 = vrot.lane.b32.xlu1 %v4387_v19, %s3281_s16 }
 0x836   :  { %1934 = vrot.lane.b32.xlu0 %v4399_v30, %s3279_s0 }
 0x838   :  { %1936 = vrot.lane.b32.xlu1 %v4403_v40, %s3279_s0 }
 0x83a   :  { %2046 = vrot.lane.b32.xlu0 %v4399_v30, %s3280_s2 }
 0x83c   :  { %2048 = vrot.lane.b32.xlu1 %v4403_v40, %s3280_s2 }
 0x83e   :  { %2158 = vrot.lane.b32.xlu0 %v4399_v30, %s3281_s16 }
 0x840   :  { %2160 = vrot.lane.b32.xlu1 %v4403_v40, %s3281_s16 }
 0x850   :  { %v4435_v46 = vpop.xlane.xlu0 %1849 }
 0x854   :  { %v4441_v48 = vpop.xlane.xlu0 %1843 }
 0x857   :  { %v4443_v29 = vpop.xlane.xlu1 %1852 }
 0x858   :  { %v1931_v8 = vpop.permute.xlu0 %1930 }
 0x85b   :  { %v4448_v34 = vpop.xlane.xlu1 %1846 }
 0x85c   :  { %v2043_v22 = vpop.permute.xlu0 %2042 }
 0x85d   :  { %1873 = vadd.xlane.f32.xlu0 %v1872_v62  ;;  %v2082_v62 = vsel %vm372_vm1, %v2031_v58, 0.0 }
 0x85f   :  { %v1933_v59 = vpop.permute.xlu1 %1932 }
 0x860   :  { %v2155_v23 = vpop.permute.xlu0 %2154  ;;  %v1991_v4 = vsel %vm372_vm1, %v1933_v59, 0.0 }
 0x861   :  { %1867 = vadd.xlane.f32.xlu0 %v1866_v7  ;;  %v2194_v7 = vsel %vm372_vm1, %v2143_v21, 0.0  ;;  %v2212_v26 = vsel %vm372_vm1, %v2155_v23, 0.0 }
 0x863   :  { %v2045_v11 = vpop.permute.xlu1 %2044 }
 0x864   :  { %1876 = vadd.xlane.f32.xlu1 %v1875_v6  ;;  %v1927_v57 = vpop.permute.xlu0 %1926  ;;  %v2103_v58 = vsel %vm372_vm1, %v2045_v11, 0.0 }
 0x865   :  { %1965 = vadd.xlane.f32.xlu0 %v1964_v38  ;;  %v1988_v38 = vsel %vm372_vm1, %v1931_v8, 0.0  ;;  %v1982_v2 = vsel %vm372_vm1, %v1927_v57, 0.0 }
 0x867   :  { %v2157_v32 = vpop.permute.xlu1 %2156 }
 0x868   :  { %1870 = vadd.xlane.f32.xlu1 %v1869_v55  ;;  %v2039_v28 = vpop.permute.xlu0 %2038  ;;  %v2215_v21 = vsel %vm372_vm1, %v2157_v32, 0.0 }
 0x869   :  { %2077 = vadd.xlane.f32.xlu0 %v2076_v14  ;;  %v2100_v14 = vsel %vm372_vm1, %v2043_v22, 0.0 }
 0x86b   :  { %v1929_v6 = vpop.permute.xlu1 %1928 }
 0x86c   :  { %1968 = vadd.xlane.f32.xlu1 %v1967_v31  ;;  %v2151_v53 = vpop.permute.xlu0 %2150 }
 0x86d   :  { %2189 = vadd.xlane.f32.xlu0 %v2188_v1 }
 0x86f   :  { %v2041_v55 = vpop.permute.xlu1 %2040 }
 0x870   :  { %2080 = vadd.xlane.f32.xlu1 %v2079_v33 }
 0x871   :  { %1959 = vadd.xlane.f32.xlu0 %v1958_v27  ;;  %v1985_v27 = vsel %vm372_vm1, %v1929_v6, 0.0 }
 0x873   :  { %v2153_v1 = vpop.permute.xlu1 %2152 }
 0x874   :  { %2192 = vadd.xlane.f32.xlu1 %v2191_v15 }
 0x875   :  { %2071 = vadd.xlane.f32.xlu0 %v2070_v51 }
 0x878   :  { %2074 = vadd.xlane.f32.xlu1 %v2073_v16  ;;  %v2097_v16 = vsel %vm372_vm1, %v2041_v55, 0.0  ;;  %v4498_v55 = vld [vmem:[%s4677_s3] sm:$0xff]  }
 0x879   :  { %2183 = vadd.xlane.f32.xlu0 %v2182_v41  ;;  %v2094_v41 = vsel %vm372_vm1, %v2039_v28, 0.0  ;;  %2909 = vmatprep.subr.bf16.mxu0 %v4498_v55 }
 0x87c   :  { %2186 = vadd.xlane.f32.xlu1 %v2185_v12 }
 0x87d   :  { %1962 = vadd.xlane.f32.xlu0 %v1961_v50  ;;  %v2209_v50 = vsel %vm372_vm1, %v2153_v1, 0.0 }
 0x880   :  { %1980 = vadd.xlane.f32.xlu1 %v1979_v13  ;;  %v2206_v13 = vsel %vm372_vm1, %v2151_v53, 0.0 }
 0x881   :  { %1977 = vadd.xlane.f32.xlu0 %v1976_v56 }
 0x884   :  { %2092 = vadd.xlane.f32.xlu1 %v2091_v61 }
 0x885   :  { %2089 = vadd.xlane.f32.xlu0 %v2088_v52 }
 0x888   :  { %2204 = vadd.xlane.f32.xlu1 %v2203_v47 }
 0x889   :  { %2201 = vadd.xlane.f32.xlu0 %v2200_v54 }
 0x88c   :  { %1974 = vadd.xlane.f32.xlu1 %v1973_v20 }
 0x88d   :  { %1971 = vadd.xlane.f32.xlu0 %v1970_v25 }
 0x890   :  { %2086 = vadd.xlane.f32.xlu1 %v2085_v9 }
 0x891   :  { %2083 = vadd.xlane.f32.xlu0 %v2082_v62 }
 0x894   :  { %2198 = vadd.xlane.f32.xlu1 %v2197_v49 }
 0x895   :  { %2195 = vadd.xlane.f32.xlu0 %v2194_v7 }
 0x898   :  { %1992 = vadd.xlane.f32.xlu1 %v1991_v4 }
 0x899   :  { %1989 = vadd.xlane.f32.xlu0 %v1988_v38 }
 0x89c   :  { %2104 = vadd.xlane.f32.xlu1 %v2103_v58 }
 0x89d   :  { %v4467_v31 = vpop.xlane.xlu0 %1861  ;;  %2101 = vadd.xlane.f32.xlu0 %v2100_v14 }
 0x8a0   :  { %2216 = vadd.xlane.f32.xlu1 %v2215_v21 }
 0x8a1   :  { %v4471_v33 = vpop.xlane.xlu0 %1855  ;;  %2213 = vadd.xlane.f32.xlu0 %v2212_v26 }
 0x8a4   :  { %1986 = vadd.xlane.f32.xlu1 %v1985_v27  ;;  %v4475_v15 = vpop.xlane.xlu1 %1864 }
 0x8a5   :  { %v1939_v51 = vpop.permute.xlu0 %1938  ;;  %1983 = vadd.xlane.f32.xlu0 %v1982_v2 }
 0x8a6   :  { %v2000_v61 = vsel %vm372_vm1, %v1939_v51, 0.0 }
 0x8a8   :  { %2098 = vadd.xlane.f32.xlu1 %v2097_v16  ;;  %v4479_v8 = vpop.xlane.xlu1 %1858 }
 0x8a9   :  { %v2051_v12 = vpop.permute.xlu0 %2050  ;;  %2095 = vadd.xlane.f32.xlu0 %v2094_v41 }
 0x8aa   :  { %v2112_v54 = vsel %vm372_vm1, %v2051_v12, 0.0 }
 0x8ac   :  { %2210 = vadd.xlane.f32.xlu1 %v2209_v50  ;;  %v1941_v56 = vpop.permute.xlu1 %1940 }
 0x8ad   :  { %v2163_v22 = vpop.permute.xlu0 %2162  ;;  %2207 = vadd.xlane.f32.xlu0 %v2206_v13  ;;  %v2003_v59 = vsel %vm372_vm1, %v1941_v56, 0.0 }
 0x8ae   :  { %v2224_v38 = vsel %vm372_vm1, %v2163_v22, 0.0  ;;  %v3152_v22 = vpop.eup %3151 }
 0x8af   :  { %v3154_v0 = vpop.eup %3153 }
 0x8b0   :  { %2004 = vadd.xlane.f32.xlu1 %v2003_v59  ;;  %v2053_v52 = vpop.permute.xlu1 %2052  ;;  %v3156_v24 = vpop.eup %3155 }
 0x8b1   :  { %v1935_v47 = vpop.permute.xlu0 %1934  ;;  %2001 = vadd.xlane.f32.xlu0 %v2000_v61  ;;  %v2115_v23 = vsel %vm372_vm1, %v2053_v52, 0.0  ;;  %v3158_v61 = vpop.eup %3157 }
 0x8b2   :  { %v1994_v25 = vsel %vm372_vm1, %v1935_v47, 0.0 }
 0x8b4   :  { %2116 = vadd.xlane.f32.xlu1 %v2115_v23  ;;  %v2165_v11 = vpop.permute.xlu1 %2164 }
 0x8b5   :  { %2113 = vadd.xlane.f32.xlu0 %v2112_v54  ;;  %v2047_v20 = vpop.permute.xlu0 %2046  ;;  %v2227_v53 = vsel %vm372_vm1, %v2165_v11, 0.0 }
 0x8b6   :  { %v2106_v9 = vsel %vm372_vm1, %v2047_v20, 0.0 }
 0x8b8   :  { %v1937_v57 = vpop.permute.xlu1 %1936 }
 0x8b9   :  { %v1997_v32 = vsel %vm372_vm1, %v1937_v57, 0.0  ;;  %1995 = vadd.xlane.f32.xlu0 %v1994_v25  ;;  %v2159_v49 = vpop.permute.xlu0 %2158 }
 0x8ba   :  { %1998 = vadd.xlane.f32.xlu1 %v1997_v32  ;;  %v2218_v7 = vsel %vm372_vm1, %v2159_v49, 0.0 }
 0x8bc   :  { %v2049_v62 = vpop.permute.xlu1 %2048 }
 0x8bd   :  { %v2109_v28 = vsel %vm372_vm1, %v2049_v62, 0.0  ;;  %2107 = vadd.xlane.f32.xlu0 %v2106_v9 }
 0x8be   :  { %2110 = vadd.xlane.f32.xlu1 %v2109_v28 }
 0x8c0   :  { %v2161_v6 = vpop.permute.xlu1 %2160 }
 0x8c1   :  { %v2221_v4 = vsel %vm372_vm1, %v2161_v6, 0.0  ;;  %2219 = vadd.xlane.f32.xlu0 %v2218_v7 }
 0x8c2   :  { %2222 = vadd.xlane.f32.xlu1 %v2221_v4 }
 0x8c5   :  { %2225 = vadd.xlane.f32.xlu0 %v2224_v38 }
 0x8c6   :  { %2228 = vadd.xlane.f32.xlu1 %v2227_v53 }
 0x8ea   :  { %v4501_v58 = vpop.xlane.xlu0 %1873 }
 0x8ee   :  { %v4503_v14 = vpop.xlane.xlu0 %1867 }
 0x8f1   :  { %v4505_v21 = vpop.xlane.xlu1 %1876 }
 0x8f2   :  { %v1966_v26 = vpop.xlane.xlu0 %1965 }
 0x8f3   :  { %3159 = vrcp.f32 %v1966_v26 }
 0x8f5   :  { %v4507_v1 = vpop.xlane.xlu1 %1870 }
 0x8f6   :  { %v2078_v27 = vpop.xlane.xlu0 %2077 }
 0x8f7   :  { %3161 = vrcp.f32 %v2078_v27 }
 0x8f9   :  { %v1969_v2 = vpop.xlane.xlu1 %1968 }
 0x8fa   :  { %v2190_v51 = vpop.xlane.xlu0 %2189  ;;  %3163 = vrcp.f32 %v1969_v2 }
 0x8fd   :  { %v2081_v16 = vpop.xlane.xlu1 %2080  ;;  %v3160_v43 = vpop.eup %3159 }
 0x8fe   :  { %v1960_v41 = vpop.xlane.xlu0 %1959  ;;  %3165 = vrcp.f32 %v2081_v16  ;;  %v2248_v53 = vsel %vm372_vm1, %v3152_v22, %v3160_v43 }
 0x8ff   :  { %3167 = vrcp.f32 %v1960_v41 }
 0x901   :  { %v2193_v12 = vpop.xlane.xlu1 %2192  ;;  %v3162_v52 = vpop.eup %3161 }
 0x902   :  { %v2072_v50 = vpop.xlane.xlu0 %2071  ;;  %3169 = vrcp.f32 %v2193_v12  ;;  %v2264_v41 = vsel %vm109_vm0, %v2248_v53, %v3162_v52 }
 0x903   :  { %3171 = vrcp.f32 %v2072_v50 }
 0x904   :  { %v3164_v23 = vpop.eup %3163 }
 0x905   :  { %v2075_v13 = vpop.xlane.xlu1 %2074  ;;  %v2249_v49 = vsel %vm372_vm1, %v3156_v24, %v3164_v23 }
 0x906   :  { %v2184_v56 = vpop.xlane.xlu0 %2183 }
 0x907   :  { %3173 = vrcp.f32 %v2184_v56 }
 0x908   :  { %3175 = vrcp.f32 %v2190_v51  ;;  %v3166_v11 = vpop.eup %3165 }
 0x909   :  { %v2187_v59 = vpop.xlane.xlu1 %2186  ;;  %v3168_v20 = vpop.eup %3167  ;;  %v2265_v6 = vsel %vm109_vm0, %v2249_v49, %v3166_v11 }
 0x90a   :  { %v1963_v44 = vpop.xlane.xlu0 %1962  ;;  %v2246_v7 = vsel %vm372_vm1, %v3154_v0, %v3168_v20 }
 0x90b   :  { %3177 = vrcp.f32 %v1963_v44 }
 0x90c   :  { %3179 = vrcp.f32 %v2075_v13  ;;  %v3170_v25 = vpop.eup %3169 }
 0x90d   :  { %3181 = vrcp.f32 %v2187_v59  ;;  %v1981_v47 = vpop.xlane.xlu1 %1980  ;;  %v3172_v32 = vpop.eup %3171  ;;  %v2281_v26 = vsel %vm600_vm5, %v2265_v6, %v3170_v25 }
 0x90e   :  { %v1978_v54 = vpop.xlane.xlu0 %1977  ;;  %3183 = vrcp.f32 %v4443_v29  ;;  %v2262_v38 = vsel %vm109_vm0, %v2246_v7, %v3172_v32  ;;  %v2297_v56 = vmul.f32 %v4220_v39, %v2281_v26 }
 0x90f   :  { %3185 = vrcp.f32 %v1981_v47 }
 0x910   :  { %3187 = vrcp.f32 %v1978_v54 }
 0x911   :  { %v2093_v57 = vpop.xlane.xlu1 %2092  ;;  %v3174_v62 = vpop.eup %3173 }
 0x912   :  { %v2090_v9 = vpop.xlane.xlu0 %2089  ;;  %3189 = vrcp.f32 %v2093_v57  ;;  %v3176_v28 = vpop.eup %3175  ;;  %v2278_v16 = vsel %vm600_vm5, %v2262_v38, %v3174_v62 }
 0x913   :  { %3191 = vrcp.f32 %v2090_v9  ;;  %v2280_v50 = vsel %vm600_vm5, %v2264_v41, %v3176_v28  ;;  %v2294_v0 = vmul.f32 %v4231_v63, %v2278_v16 }
 0x914   :  { %3193 = vrcp.f32 %v4435_v46 }
 0x915   :  { %v3178_v4 = vpop.eup %3177  ;;  %v2205_v29 = vpop.xlane.xlu1 %2204 }
 0x916   :  { %v3180_v27 = vpop.eup %3179  ;;  %3195 = vrcp.f32 %v2205_v29  ;;  %v2202_v2 = vpop.xlane.xlu0 %2201  ;;  %v2247_v51 = vsel %vm372_vm1, %v3158_v61, %v3178_v4  ;;  %v2296_v61 = vmul.f32 %v4208_v37, %v2280_v50 }
 0x917   :  { %v3182_v12 = vpop.eup %3181  ;;  %3197 = vrcp.f32 %v2202_v2  ;;  %v2263_v46 = vsel %vm109_vm0, %v2247_v51, %v3180_v27 }
 0x918   :  { %v2279_v13 = vsel %vm600_vm5, %v2263_v46, %v3182_v12  ;;  %v3184_v24 = vpop.eup %3183  ;;  %3199 = vrcp.f32 %v4448_v34  ;;  %v2311_v23 = vpack.c.bf16 %v2297_v56, %v2296_v61 }
 0x919   :  { %v1975_v22 = vpop.xlane.xlu1 %1974  ;;  %v2295_v59 = vmul.f32 %v4235_v36, %v2279_v13  ;;  %v3186_v43 = vpop.eup %3185 }
 0x91a   :  { %v1972_v44 = vpop.xlane.xlu0 %1971  ;;  %v3188_v47 = vpop.eup %3187  ;;  %3201 = vrcp.f32 %v1975_v22  ;;  %v2253_v37 = vsel %vm372_vm1, %v3184_v24, %v3186_v43 }
 0x91b   :  { %v2310_v52 = vpack.c.bf16 %v2295_v59, %v2294_v0  ;;  %3203 = vrcp.f32 %v1972_v44 }
 0x91c   :  { %v3190_v54 = vpop.eup %3189 }
 0x91d   :  { %2885 = vmatprep.mubr.msk.bf16.mxu0 %vm1169_vm6, %v2310_v52  ;;  %v2087_v39 = vpop.xlane.xlu1 %2086  ;;  %v3192_v11 = vpop.eup %3191  ;;  %v2269_v25 = vsel %vm109_vm0, %v2253_v37, %v3190_v54 }
 0x91e   :  { %v2084_v63 = vpop.xlane.xlu0 %2083  ;;  %2886 = vmatmul.mubr.msk.bf16.vlgmr.msra.gmra.mrb[24].mxu0 %vm1169_vm6, %v2311_v23  ;;  %v3194_v36 = vpop.eup %3193  ;;  %3205 = vrcp.f32 %v2087_v39 }
 0x91f   :  { %2910 = vmatpush3.bf16.msra.mxu0 %v4498_v55  ;;  %3207 = vrcp.f32 %v2084_v63  ;;  %v2252_v34 = vsel %vm372_vm1, %v3194_v36, %v3188_v47 }
 0x920   :  { %v3196_v20 = vpop.eup %3195  ;;  %3209 = vrcp.f32 %v4441_v48  ;;  %v2268_v9 = vsel %vm109_vm0, %v2252_v34, %v3192_v11 }
 0x921   :  { %v3198_v57 = vpop.eup %3197  ;;  %v2199_v32 = vpop.xlane.xlu1 %2198  ;;  %v2285_v62 = vsel %vm600_vm5, %v2269_v25, %v3196_v20 }
 0x922   :  { %3211 = vrcp.f32 %v2199_v32  ;;  %v2196_v49 = vpop.xlane.xlu0 %2195  ;;  %v2284_v28 = vsel %vm600_vm5, %v2268_v9, %v3198_v57  ;;  %v2301_v55 = vmul.f32 %v4275_v3, %v2285_v62  ;;  %v3200_v29 = vpop.eup %3199 }
 0x923   :  { %3213 = vrcp.f32 %v2196_v49  ;;  %v2300_v7 = vmul.f32 %v4271_v60, %v2284_v28 }
 0x924   :  { %v3202_v53 = vpop.eup %3201  ;;  %3215 = vrcp.f32 %v4475_v15 }
 0x925   :  { %v1993_v6 = vpop.xlane.xlu1 %1992  ;;  %v2313_v4 = vpack.c.bf16 %v2301_v55, %v2300_v7  ;;  %v3204_v48 = vpop.eup %3203  ;;  %v2251_v3 = vsel %vm372_vm1, %v3200_v29, %v3202_v53 }
 0x926   :  { %v1990_v38 = vpop.xlane.xlu0 %1989  ;;  %3217 = vrcp.f32 %v1993_v6 }
 0x927   :  { %3219 = vrcp.f32 %v1990_v38 }
 0x928   :  { %v3206_v26 = vpop.eup %3205 }
 0x929   :  { %v2105_v27 = vpop.xlane.xlu1 %2104  ;;  %v3208_v2 = vpop.eup %3207  ;;  %v2267_v12 = vsel %vm109_vm0, %v2251_v3, %v3206_v26 }
 0x92a   :  { %v2102_v51 = vpop.xlane.xlu0 %2101  ;;  %v3210_v16 = vpop.eup %3209  ;;  %3221 = vrcp.f32 %v2105_v27 }
 0x92b   :  { %3223 = vrcp.f32 %v2102_v51  ;;  %v2250_v60 = vsel %vm372_vm1, %v3210_v16, %v3204_v48 }
 0x92c   :  { %v3212_v41 = vpop.eup %3211  ;;  %3225 = vrcp.f32 %v4467_v31  ;;  %v2266_v50 = vsel %vm109_vm0, %v2250_v60, %v3208_v2 }
 0x92d   :  { %v3214_v46 = vpop.eup %3213  ;;  %v2217_v15 = vpop.xlane.xlu1 %2216  ;;  %v2283_v13 = vsel %vm600_vm5, %v2267_v12, %v3212_v41 }
 0x92e   :  { %3227 = vrcp.f32 %v2217_v15  ;;  %v2214_v56 = vpop.xlane.xlu0 %2213  ;;  %v2282_v22 = vsel %vm600_vm5, %v2266_v50, %v3214_v46  ;;  %v2299_v0 = vmul.f32 %v4291_v10, %v2283_v13  ;;  %v3216_v61 = vpop.eup %3215 }
 0x92f   :  { %3229 = vrcp.f32 %v2214_v56  ;;  %v2298_v59 = vmul.f32 %v4287_v35, %v2282_v22 }
 0x930   :  { %v3218_v52 = vpop.eup %3217  ;;  %3231 = vrcp.f32 %v4479_v8 }
 0x931   :  { %v1987_v24 = vpop.xlane.xlu1 %1986  ;;  %v2312_v44 = vpack.c.bf16 %v2299_v0, %v2298_v59  ;;  %v3220_v31 = vpop.eup %3219  ;;  %v2257_v35 = vsel %vm372_vm1, %v3216_v61, %v3218_v52 }
 0x932   :  { %v1984_v43 = vpop.xlane.xlu0 %1983  ;;  %3233 = vrcp.f32 %v1987_v24 }
 0x933   :  { %2889 = vmatprep.mubr.msk.bf16.mxu0 %vm1169_vm6, %v2312_v44  ;;  %3235 = vrcp.f32 %v1984_v43 }
 0x934   :  { %2890 = vmatmul.mubr.msk.bf16.gmra.mrb[28].mxu0 %vm1169_vm6, %v2313_v4  ;;  %v3222_v47 = vpop.eup %3221 }
 0x935   :  { %v2099_v23 = vpop.xlane.xlu1 %2098  ;;  %v3224_v54 = vpop.eup %3223  ;;  %v2273_v36 = vsel %vm109_vm0, %v2257_v35, %v3222_v47 }
 0x936   :  { %v2096_v10 = vpop.xlane.xlu0 %2095  ;;  %v3226_v39 = vpop.eup %3225  ;;  %3237 = vrcp.f32 %v2099_v23 }
 0x937   :  { %3239 = vrcp.f32 %v2096_v10  ;;  %v2256_v63 = vsel %vm372_vm1, %v3226_v39, %v3220_v31 }
 0x938   :  { %v3228_v11 = vpop.eup %3227  ;;  %3241 = vrcp.f32 %v4471_v33  ;;  %v2272_v20 = vsel %vm109_vm0, %v2256_v63, %v3224_v54 }
 0x939   :  { %v3230_v37 = vpop.eup %3229  ;;  %v2211_v8 = vpop.xlane.xlu1 %2210  ;;  %v2289_v34 = vsel %vm600_vm5, %v2273_v36, %v3228_v11 }
 0x93a   :  { %3243 = vrcp.f32 %v2211_v8  ;;  %v2208_v25 = vpop.xlane.xlu0 %2207  ;;  %v2288_v57 = vsel %vm600_vm5, %v2272_v20, %v3230_v37  ;;  %v2305_v32 = vmul.f32 %v4331_v45, %v2289_v34  ;;  %v3232_v28 = vpop.eup %3231 }
 0x93b   :  { %3245 = vrcp.f32 %v2208_v25  ;;  %v2304_v9 = vmul.f32 %v4327_v42, %v2288_v57 }
 0x93c   :  { %v3234_v7 = vpop.eup %3233  ;;  %3247 = vrcp.f32 %v4501_v58 }
 0x93d   :  { %v2005_v62 = vpop.xlane.xlu1 %2004  ;;  %v2315_v49 = vpack.c.bf16 %v2305_v32, %v2304_v9  ;;  %v3236_v33 = vpop.eup %3235  ;;  %v2255_v48 = vsel %vm372_vm1, %v3232_v28, %v3234_v7  ;;  %3249 = vrcp.f32 %v4503_v14  ;;  %v2958_v28 = vld [vmem:[%s4677_s3 + $0x8] sm:$0xff]  }
 0x93e   :  { %v2002_v55 = vpop.xlane.xlu0 %2001  ;;  %3251 = vrcp.f32 %v4507_v1  ;;  %2911 = vmatprep.subr.bf16.mxu0 %v2958_v28 }
 0x93f   :  { %3253 = vrcp.f32 %v2005_v62  ;;  %2912 = vmatpush3.bf16.msra.mxu0 %v2958_v28 }
 0x940   :  { %v3238_v6 = vpop.eup %3237  ;;  %3255 = vrcp.f32 %v2002_v55 }
 0x941   :  { %v3240_v4 = vpop.eup %3239  ;;  %v2117_v53 = vpop.xlane.xlu1 %2116  ;;  %v2271_v45 = vsel %vm109_vm0, %v2255_v48, %v3238_v6 }
 0x942   :  { %v2114_v29 = vpop.xlane.xlu0 %2113  ;;  %v3242_v38 = vpop.eup %3241 }
 0x943   :  { %v2254_v27 = vsel %vm372_vm1, %v3242_v38, %v3236_v33 }
 0x944   :  { %v3244_v26 = vpop.eup %3243  ;;  %v2270_v42 = vsel %vm109_vm0, %v2254_v27, %v3240_v4 }
 0x945   :  { %v3246_v2 = vpop.eup %3245  ;;  %v2287_v51 = vsel %vm600_vm5, %v2271_v45, %v3244_v26 }
 0x946   :  { %v1996_v16 = vpop.xlane.xlu0 %1995  ;;  %v2286_v3 = vsel %vm600_vm5, %v2270_v42, %v3246_v2  ;;  %v2303_v41 = vmul.f32 %v4347_v18, %v2287_v51  ;;  %v3248_v14 = vpop.eup %3247 }
 0x947   :  { %v1999_v60 = vpop.xlane.xlu1 %1998  ;;  %v2302_v12 = vmul.f32 %v4343_v17, %v2286_v3  ;;  %3257 = vrcp.f32 %v1996_v16  ;;  %v3250_v50 = vpop.eup %3249 }
 0x948   :  { %3259 = vrcp.f32 %v1999_v60  ;;  %v3252_v17 = vpop.eup %3251 }
 0x949   :  { %v2314_v46 = vpack.c.bf16 %v2303_v41, %v2302_v12  ;;  %v3254_v13 = vpop.eup %3253 }
 0x94a   :  { %v2108_v58 = vpop.xlane.xlu0 %2107  ;;  %v3256_v22 = vpop.eup %3255 }
 0x94b   :  { %2901 = vmatprep.mubr.msk.bf16.mxu1 %vm1169_vm6, %v2314_v46  ;;  %v2111_v15 = vpop.xlane.xlu1 %2110  ;;  %3261 = vrcp.f32 %v2108_v58  ;;  %v2260_v37 = vsel %vm372_vm1, %v3248_v14, %v3256_v22 }
 0x94c   :  { %2902 = vmatmul.mubr.msk.bf16.vlgmr.msra.gmra.mrb[40].mxu1 %vm1169_vm6, %v2315_v49  ;;  %3263 = vrcp.f32 %v2111_v15 }
 0x94d   :  { %3265 = vrcp.f32 %v2114_v29 }
 0x94e   :  { %v2220_v18 = vpop.xlane.xlu0 %2219 }
 0x94f   :  { %3267 = vrcp.f32 %v2220_v18  ;;  %v2223_v1 = vpop.xlane.xlu1 %2222 }
 0x950   :  { %3269 = vrcp.f32 %v2223_v1 }
 0x951   :  { %3271 = vrcp.f32 %v2117_v53  ;;  %v3258_v59 = vpop.eup %3257 }
 0x952   :  { %3273 = vrcp.f32 %v4505_v21  ;;  %v2226_v56 = vpop.xlane.xlu0 %2225  ;;  %v3260_v24 = vpop.eup %3259  ;;  %v2258_v52 = vsel %vm372_vm1, %v3250_v50, %v3258_v59 }
 0x953   :  { %3275 = vrcp.f32 %v2226_v56  ;;  %v2229_v0 = vpop.xlane.xlu1 %2228  ;;  %v2259_v47 = vsel %vm372_vm1, %v3252_v17, %v3260_v24 }
 0x954   :  { %3277 = vrcp.f32 %v2229_v0 }
 0x955   :  { %v3262_v44 = vpop.eup %3261 }
 0x956   :  { %v3264_v61 = vpop.eup %3263  ;;  %v2274_v23 = vsel %vm109_vm0, %v2258_v52, %v3262_v44 }
 0x957   :  { %v3266_v43 = vpop.eup %3265  ;;  %v2275_v21 = vsel %vm109_vm0, %v2259_v47, %v3264_v61 }
 0x958   :  { %v2276_v34 = vsel %vm109_vm0, %v2260_v37, %v3266_v43 }
 0x959   :  { %v3268_v31 = vpop.eup %3267 }
 0x95a   :  { %v3270_v54 = vpop.eup %3269  ;;  %v2290_v10 = vsel %vm600_vm5, %v2274_v23, %v3268_v31 }
 0x95b   :  { %v3272_v39 = vpop.eup %3271  ;;  %v2291_v35 = vsel %vm600_vm5, %v2275_v21, %v3270_v54  ;;  %v2306_v11 = vmul.f32 %v4399_v30, %v2290_v10 }
 0x95c   :  { %v3274_v63 = vpop.eup %3273  ;;  %v2307_v36 = vmul.f32 %v4403_v40, %v2291_v35 }
 0x95d   :  { %v3276_v8 = vpop.eup %3275  ;;  %v2261_v20 = vsel %vm372_vm1, %v3274_v63, %v3254_v13 }
 0x95e   :  { %v3278_v25 = vpop.eup %3277  ;;  %v2316_v57 = vpack.c.bf16 %v2307_v36, %v2306_v11  ;;  %v2277_v32 = vsel %vm109_vm0, %v2261_v20, %v3272_v39  ;;  %v2292_v9 = vsel %vm600_vm5, %v2276_v34, %v3276_v8 }
 0x95f   :  { %v2293_v62 = vsel %vm600_vm5, %v2277_v32, %v3278_v25  ;;  %v2308_v30 = vmul.f32 %v4383_v5, %v2292_v9 }
 0x960   :  { %2905 = vmatprep.mubr.msk.bf16.mxu1 %vm1169_vm6, %v2316_v57  ;;  %v2309_v40 = vmul.f32 %v4387_v19, %v2293_v62 }
 0x962   :  { %v2317_v49 = vpack.c.bf16 %v2309_v40, %v2308_v30 }
 0x964   :  { %2906 = vmatmul.mubr.msk.bf16.gmra.mrb[44].mxu1 %vm1169_vm6, %v2317_v49 }
 0x9f1   :  { %v2887_v55 = vpop.f32.mrb[24].mxu0 }
 0x9f2   :  { %v2364_v7 = vpop.f32.mrb[25].mxu0 }
 0x9f3   :  { %v2888_v33 = vpop.f32.mrb[26].mxu0 }
 0x9f4   :  { %v2473_v6 = vpack.c.bf16 %v2888_v33, %v2887_v55  ;;  %v2367_v4 = vpop.f32.mrb[27].mxu0 }
 0x9f5   :  { %v2472_v29 = vpack.c.bf16 %v2367_v4, %v2364_v7 }
 0x9f7   :  { %2913 = vmatprep.mubr.msk.bf16.mxu0 %vm109_vm0, %v2472_v29 }
 0x9f8   :  { %2914 = vmatmul.mubr.msk.bf16.vlgmr.msra.gmra.mrb[32].mxu0 %vm109_vm0, %v2473_v6 }
 0xa07   :  { %v2891_v5 = vpop.f32.mrb[28].mxu0 }
 0xa08   :  { %v2380_v19 = vpop.f32.mrb[29].mxu0 }
 0xa09   :  { %v2892_v38 = vpop.f32.mrb[30].mxu0 }
 0xa0a   :  { %v2475_v53 = vpack.c.bf16 %v2892_v38, %v2891_v5  ;;  %v2383_v48 = vpop.f32.mrb[31].mxu0 }
 0xa0b   :  { %v2474_v26 = vpack.c.bf16 %v2383_v48, %v2380_v19 }
 0xa0d   :  { %2917 = vmatprep.mubr.msk.bf16.mxu0 %vm109_vm0, %v2474_v26 }
 0xa0e   :  { %2918 = vmatmul.mubr.msk.bf16.gmra.mrb[36].mxu0 %vm109_vm0, %v2475_v53 }
 0xa1f   :  { %v2903_v27 = vpop.f32.mrb[40].mxu1 }
 0xa20   :  { %v2441_v45 = vpop.f32.mrb[41].mxu1 }
 0xa21   :  { %v2904_v2 = vpop.f32.mrb[42].mxu1 }
 0xa22   :  { %v2477_v42 = vpack.c.bf16 %v2904_v2, %v2903_v27  ;;  %v2444_v51 = vpop.f32.mrb[43].mxu1 }
 0xa23   :  { %v2476_v16 = vpack.c.bf16 %v2444_v51, %v2441_v45 }
 0xa25   :  { %2921 = vmatprep.mubr.msk.bf16.mxu0 %vm109_vm0, %v2476_v16 }
 0xa26   :  { %2922 = vmatmul.mubr.msk.bf16.gmra.mrb[40].mxu0 %vm109_vm0, %v2477_v42 }
 0xa37   :  { %v2907_v3 = vpop.f32.mrb[44].mxu1 }
 0xa38   :  { %v2457_v41 = vpop.f32.mrb[45].mxu1 }
 0xa39   :  { %v2908_v60 = vpop.f32.mrb[46].mxu1 }
 0xa3a   :  { %v2479_v12 = vpack.c.bf16 %v2908_v60, %v2907_v3  ;;  %v2460_v46 = vpop.f32.mrb[47].mxu1 }
 0xa3b   :  { %v2478_v58 = vpack.c.bf16 %v2460_v46, %v2457_v41 }
 0xa3d   :  { %2925 = vmatprep.mubr.msk.bf16.mxu0 %vm109_vm0, %v2478_v58 }
 0xa3e   :  { %2926 = vmatmul.mubr.msk.bf16.gmra.mrb[44].mxu0 %vm109_vm0, %v2479_v12 }
 0xacb   :  { %v2915_v15 = vpop.f32.mrb[32].mxu0 }
 0xacc   :  { %2615 = vst.msk [vmem:[%s4678_s5 + $0x10] sm:$0xff] %vm109_vm0, %v2915_v15  ;;  %v2550_v18 = vpop.f32.mrb[33].mxu0 }
 0xacd   :  { %2613 = vst.msk [vmem:[%s4678_s5] sm:$0xff] %vm109_vm0, %v2550_v18  ;;  %v2916_v14 = vpop.f32.mrb[34].mxu0 }
 0xace   :  { %2616 = vst.msk [vmem:[%s4678_s5 + $0x18] sm:$0xff] %vm109_vm0, %v2916_v14  ;;  %v2553_v1 = vpop.f32.mrb[35].mxu0 }
 0xacf   :  { %2614 = vst.msk [vmem:[%s4678_s5 + $0x8] sm:$0xff] %vm109_vm0, %v2553_v1 }
 0xae1   :  { %v2919_v50 = vpop.f32.mrb[36].mxu0 }
 0xae2   :  { %2619 = vst.msk [vmem:[%s4678_s5 + $0x30] sm:$0xff] %vm109_vm0, %v2919_v50  ;;  %v2566_v17 = vpop.f32.mrb[37].mxu0 }
 0xae3   :  { %2617 = vst.msk [vmem:[%s4678_s5 + $0x20] sm:$0xff] %vm109_vm0, %v2566_v17  ;;  %v2920_v13 = vpop.f32.mrb[38].mxu0 }
 0xae4   :  { %2620 = vst.msk [vmem:[%s4678_s5 + $0x38] sm:$0xff] %vm109_vm0, %v2920_v13  ;;  %v2569_v56 = vpop.f32.mrb[39].mxu0 }
 0xae5   :  { %2618 = vst.msk [vmem:[%s4678_s5 + $0x28] sm:$0xff] %vm109_vm0, %v2569_v56 }
 0xaf9   :  { %v2923_v22 = vpop.f32.mrb[40].mxu0 }
 0xafa   :  { %2623 = vst.msk [vmem:[%s4678_s5 + $0x50] sm:$0xff] %vm109_vm0, %v2923_v22  ;;  %v2582_v0 = vpop.f32.mrb[41].mxu0 }
 0xafb   :  { %2621 = vst.msk [vmem:[%s4678_s5 + $0x40] sm:$0xff] %vm109_vm0, %v2582_v0  ;;  %v2924_v59 = vpop.f32.mrb[42].mxu0 }
 0xafc   :  { %2624 = vst.msk [vmem:[%s4678_s5 + $0x58] sm:$0xff] %vm109_vm0, %v2924_v59  ;;  %v2585_v24 = vpop.f32.mrb[43].mxu0 }
 0xafd   :  { %2622 = vst.msk [vmem:[%s4678_s5 + $0x48] sm:$0xff] %vm109_vm0, %v2585_v24 }
 0xb11   :  { %v2927_v44 = vpop.f32.mrb[44].mxu0 }
 0xb12   :  { %2627 = vst.msk [vmem:[%s4678_s5 + $0x70] sm:$0xff] %vm109_vm0, %v2927_v44  ;;  %v2598_v61 = vpop.f32.mrb[45].mxu0 }
 0xb13   :  { %2625 = vst.msk [vmem:[%s4678_s5 + $0x60] sm:$0xff] %vm109_vm0, %v2598_v61  ;;  %v2928_v43 = vpop.f32.mrb[46].mxu0 }
 0xb14   :  { %2628 = vst.msk [vmem:[%s4678_s5 + $0x78] sm:$0xff] %vm109_vm0, %v2928_v43  ;;  %v2601_v52 = vpop.f32.mrb[47].mxu0 }
 0xb15   :  { %2626 = vst.msk [vmem:[%s4678_s5 + $0x68] sm:$0xff] %vm109_vm0, %v2601_v52 }

</bundles_post_ra>
